<compile_context>
chip_gen: v7x
topology: tpu7x:2x2x1
jax: 0.10.0
libtpu: 0.0.40
codegen_flags: <defaults>
</compile_context>

<pallas_src>
import functools

import jax
import jax.numpy as jnp
from jax.experimental import pallas as pl
from jax.experimental.pallas import tpu as pltpu


def _round_up(x, m):
    return (x + m - 1) // m * m


def _mlp_gen_kernel(z_ref, w1_ref, b1_ref, w2_ref, b2_ref, w3_ref, b3_ref,
                    o_ref):
    # Layer 1: Linear(noise_dim, 256) + ReLU.  bf16 x bf16 -> f32 on the MXU.
    h1 = jnp.dot(z_ref[...], w1_ref[...], preferred_element_type=jnp.float32)
    h1 = jnp.maximum(h1 + b1_ref[...], 0.0)
    # Layer 2: Linear(256, 512) + ReLU.
    h2 = jnp.dot(h1.astype(jnp.bfloat16), w2_ref[...],
                 preferred_element_type=jnp.float32)
    h2 = jnp.maximum(h2 + b2_ref[...], 0.0)
    # Layer 3: Linear(512, img_dim) + Tanh.
    h3 = jnp.dot(h2.astype(jnp.bfloat16), w3_ref[...],
                 preferred_element_type=jnp.float32)
    o_ref[...] = jnp.tanh(h3 + b3_ref[...]).astype(o_ref.dtype)


def _choose_tile(batch, requested):
    """Pick a sublane-aligned batch tile; keep >=2 grid steps for big batches."""
    tile = max(8, _round_up(min(requested, _round_up(batch, 8)), 8))
    b_pad = _round_up(batch, tile)
    if b_pad // tile < 2 and batch >= 256:
        # v7x has 2 TensorCores; a 1-step grid leaves one idle.
        tile = _round_up(pl.cdiv(batch, 2), 128)
        b_pad = _round_up(batch, tile)
    return tile, b_pad


@functools.partial(jax.jit, static_argnames=("batch_tile",))
def mlp_generator_forward(z, params, *, batch_tile=256):
    """Pallas forward pass for MLPGenerator.

    z: (B, noise_dim) float32 (any B; padded internally).
    params: dict with w1 (noise_dim,256), b1 (1,256), w2 (256,512), b2 (1,512),
            w3 (512,img_dim), b3 (1,img_dim) — weights transposed vs PyTorch so
            each layer is y = x @ W + b (identical nn.Linear semantics).
    Returns (B, img_dim) float32 in [-1, 1].
    """
    w1, b1 = params["w1"], params["b1"]
    w2, b2 = params["w2"], params["b2"]
    w3, b3 = params["w3"], params["b3"]

    B, noise_dim = z.shape
    h1_dim, h2_dim = w1.shape[1], w2.shape[1]
    img_dim = w3.shape[1]

    tile, b_pad = _choose_tile(B, batch_tile)
    grid = (b_pad // tile,)

    # Lane-dense output: pad img_dim up to a multiple of 128 (zeros -> tanh(0)=0).
    img_pad = _round_up(img_dim, 128)
    if img_pad != img_dim:
        w3 = jnp.pad(w3, ((0, 0), (0, img_pad - img_dim)))
        b3 = jnp.pad(b3, ((0, 0), (0, img_pad - img_dim)))

    # bf16 matmul operands, f32 biases / accumulation.
    w1b = w1.astype(jnp.bfloat16)
    w2b = w2.astype(jnp.bfloat16)
    w3b = w3.astype(jnp.bfloat16)
    b1f = b1.astype(jnp.float32)
    b2f = b2.astype(jnp.float32)
    b3f = b3.astype(jnp.float32)
    zb = z.astype(jnp.bfloat16)
    if b_pad != B:
        zb = jnp.pad(zb, ((0, b_pad - B), (0, 0)))

    # Constant (grid-invariant) parameter blocks: single-buffered.
    def const_spec(arr):
        return pl.BlockSpec(arr.shape, lambda i: (0, 0),
                            pipeline_mode=pl.Buffered(1))

    flops = 2 * b_pad * (noise_dim * h1_dim + h1_dim * h2_dim + h2_dim * img_pad)
    bytes_accessed = (zb.size * 2
                      + (w1b.size + w2b.size + w3b.size) * 2
                      + (b1f.size + b2f.size + b3f.size) * 4
                      + b_pad * img_pad * 4)
    cost = pl.CostEstimate(flops=flops,
                           transcendentals=b_pad * img_pad,
                           bytes_accessed=bytes_accessed)

    vmem_bytes = (2 * tile * noise_dim * 2          # z tile, double-buffered bf16
                  + 2 * tile * img_pad * 4          # out tile, double-buffered f32
                  + (w1b.size + w2b.size + w3b.size) * 2   # single-buffered weights
                  + (b1f.size + b2f.size + b3f.size) * 4
                  + tile * (h1_dim + h2_dim + img_pad) * 4)  # f32 intermediates
    vmem_limit = max(32 * 1024 * 1024, int(1.5 * vmem_bytes))

    out = pl.pallas_call(
        _mlp_gen_kernel,
        out_shape=jax.ShapeDtypeStruct((b_pad, img_pad), jnp.float32),
        grid_spec=pltpu.PrefetchScalarGridSpec(
            num_scalar_prefetch=0,
            grid=grid,
            in_specs=[
                pl.BlockSpec((tile, noise_dim), lambda i: (i, 0)),  # z
                const_spec(w1b), const_spec(b1f),
                const_spec(w2b), const_spec(b2f),
                const_spec(w3b), const_spec(b3f),
            ],
            out_specs=pl.BlockSpec((tile, img_pad), lambda i: (i, 0)),
        ),
        compiler_params=pltpu.CompilerParams(
            dimension_semantics=("parallel",),
            vmem_limit_bytes=vmem_limit),
        cost_estimate=cost,
    )(zb, w1b, b1f, w2b, b2f, w3b, b3f)

    return out[:B, :img_dim]


def init_mlp_generator_params(key, noise_dim, img_dim):
    """Deterministic init mimicking nn.Linear default: U(-1/sqrt(fan_in), +)."""
    dims = [(noise_dim, 256), (256, 512), (512, img_dim)]
    params = {}
    for idx, (fan_in, fan_out) in enumerate(dims, start=1):
        key, kw, kb = jax.random.split(key, 3)
        bound = 1.0 / jnp.sqrt(jnp.float32(fan_in))
        params[f"w{idx}"] = jax.random.uniform(
            kw, (fan_in, fan_out), jnp.float32, -bound, bound)
        params[f"b{idx}"] = jax.random.uniform(
            kb, (1, fan_out), jnp.float32, -bound, bound)
    return params


def _reference_forward(z, params):
    h = jnp.maximum(z @ params["w1"] + params["b1"], 0.0)
    h = jnp.maximum(h @ params["w2"] + params["b2"], 0.0)
    return jnp.tanh(h @ params["w3"] + params["b3"])


if __name__ == "__main__":
    noise_dim = 32
    img_dim = 784   # MNIST-like; exercises the pad-to-896 lane-dense path
    batch = 300     # not a tile multiple; exercises batch padding + 2-step grid

    key = jax.random.PRNGKey(0)
    k_params, k_z = jax.random.split(key)
    params = init_mlp_generator_params(k_params, noise_dim, img_dim)
    z = jax.random.normal(k_z, (batch, noise_dim), jnp.float32)

    out = mlp_generator_forward(z, params)          # default batch_tile=256
    out = jax.block_until_ready(out)

    ref = _reference_forward(z, params)
    assert out.shape == (batch, img_dim)
    assert bool(jnp.all(jnp.isfinite(out)))
    # bf16 matmul inputs with f32 accumulation => looser tolerance vs f32 ref.
    max_err = float(jnp.max(jnp.abs(out - ref)))
    assert jnp.allclose(out, ref, atol=5e-2, rtol=0.0), (
        f"mismatch vs reference (max abs err {max_err})")

    print("KERNEL_OK")
</pallas_src>

<mosaic_0001>
module attributes {stable_mosaic.version = 11 : i64} {
  func.func @_mlp_gen_kernel(%arg0: i32, %arg1: memref<256x32xbf16, #tpu.memory_space<vmem>>, %arg2: memref<32x256xbf16, #tpu.memory_space<vmem>>, %arg3: memref<1x256xf32, #tpu.memory_space<vmem>>, %arg4: memref<256x512xbf16, #tpu.memory_space<vmem>>, %arg5: memref<1x512xf32, #tpu.memory_space<vmem>>, %arg6: memref<512x896xbf16, #tpu.memory_space<vmem>>, %arg7: memref<1x896xf32, #tpu.memory_space<vmem>>, %arg8: memref<256x896xf32, #tpu.memory_space<vmem>>) attributes {dimension_semantics = [#tpu.dimension_semantics<parallel>], iteration_bounds = array<i64: 2>, scalar_prefetch = 0 : i64, scratch_operands = 0 : i64, tpu.core_type = #tpu.core_type<tc>, window_params = [{transform_indices = @transform_0, window_bounds = array<i64: 256, 32>}, {pipeline_mode = #tpu.pipeline_mode<synchronous>, transform_indices = @transform_1, window_bounds = array<i64: 32, 256>}, {pipeline_mode = #tpu.pipeline_mode<synchronous>, transform_indices = @transform_2, window_bounds = array<i64: 1, 256>}, {pipeline_mode = #tpu.pipeline_mode<synchronous>, transform_indices = @transform_3, window_bounds = array<i64: 256, 512>}, {pipeline_mode = #tpu.pipeline_mode<synchronous>, transform_indices = @transform_4, window_bounds = array<i64: 1, 512>}, {pipeline_mode = #tpu.pipeline_mode<synchronous>, transform_indices = @transform_5, window_bounds = array<i64: 512, 896>}, {pipeline_mode = #tpu.pipeline_mode<synchronous>, transform_indices = @transform_6, window_bounds = array<i64: 1, 896>}, {transform_indices = @transform_7, window_bounds = array<i64: 256, 896>}]} {
    %c0 = arith.constant 0 : index
    %c0_0 = arith.constant 0 : index
    %0 = vector.load %arg1[%c0, %c0_0] : memref<256x32xbf16, #tpu.memory_space<vmem>>, vector<256x32xbf16>
    %c0_1 = arith.constant 0 : index
    %c0_2 = arith.constant 0 : index
    %1 = vector.load %arg2[%c0_1, %c0_2] : memref<32x256xbf16, #tpu.memory_space<vmem>>, vector<32x256xbf16>
    %cst = arith.constant dense<0.000000e+00> : vector<256x256xf32>
    %2 = tpu.matmul %0, %1, %cst {dimension_numbers = #tpu.dot_dimension_numbers<[1], [0], [0], [1], [0, 0, 1, 1], [], []>} : vector<256x32xbf16>, vector<32x256xbf16>, vector<256x256xf32> -> vector<256x256xf32>
    %c0_3 = arith.constant 0 : index
    %c0_4 = arith.constant 0 : index
    %3 = vector.load %arg3[%c0_3, %c0_4] : memref<1x256xf32, #tpu.memory_space<vmem>>, vector<1x256xf32>
    %4 = vector.broadcast %3 : vector<1x256xf32> to vector<256x256xf32>
    %5 = arith.addf %2, %4 : vector<256x256xf32>
    %cst_5 = arith.constant 0.000000e+00 : f32
    %6 = vector.broadcast %cst_5 : f32 to vector<256x256xf32>
    %7 = arith.maximumf %5, %6 : vector<256x256xf32>
    %8 = arith.truncf %7 : vector<256x256xf32> to vector<256x256xbf16>
    %c0_6 = arith.constant 0 : index
    %c0_7 = arith.constant 0 : index
    %9 = vector.load %arg4[%c0_6, %c0_7] : memref<256x512xbf16, #tpu.memory_space<vmem>>, vector<256x512xbf16>
    %cst_8 = arith.constant dense<0.000000e+00> : vector<256x512xf32>
    %10 = tpu.matmul %8, %9, %cst_8 {dimension_numbers = #tpu.dot_dimension_numbers<[1], [0], [0], [1], [0, 0, 1, 1], [], []>} : vector<256x256xbf16>, vector<256x512xbf16>, vector<256x512xf32> -> vector<256x512xf32>
    %c0_9 = arith.constant 0 : index
    %c0_10 = arith.constant 0 : index
    %11 = vector.load %arg5[%c0_9, %c0_10] : memref<1x512xf32, #tpu.memory_space<vmem>>, vector<1x512xf32>
    %12 = vector.broadcast %11 : vector<1x512xf32> to vector<256x512xf32>
    %13 = arith.addf %10, %12 : vector<256x512xf32>
    %cst_11 = arith.constant 0.000000e+00 : f32
    %14 = vector.broadcast %cst_11 : f32 to vector<256x512xf32>
    %15 = arith.maximumf %13, %14 : vector<256x512xf32>
    %16 = arith.truncf %15 : vector<256x512xf32> to vector<256x512xbf16>
    %c0_12 = arith.constant 0 : index
    %c0_13 = arith.constant 0 : index
    %17 = vector.load %arg6[%c0_12, %c0_13] : memref<512x896xbf16, #tpu.memory_space<vmem>>, vector<512x896xbf16>
    %cst_14 = arith.constant dense<0.000000e+00> : vector<256x896xf32>
    %18 = tpu.matmul %16, %17, %cst_14 {dimension_numbers = #tpu.dot_dimension_numbers<[1], [0], [0], [1], [0, 0, 1, 1], [], []>} : vector<256x512xbf16>, vector<512x896xbf16>, vector<256x896xf32> -> vector<256x896xf32>
    %c0_15 = arith.constant 0 : index
    %c0_16 = arith.constant 0 : index
    %19 = vector.load %arg7[%c0_15, %c0_16] : memref<1x896xf32, #tpu.memory_space<vmem>>, vector<1x896xf32>
    %20 = vector.broadcast %19 : vector<1x896xf32> to vector<256x896xf32>
    %21 = arith.addf %18, %20 : vector<256x896xf32>
    %22 = math.tanh %21 : vector<256x896xf32>
    %c0_17 = arith.constant 0 : index
    %c0_18 = arith.constant 0 : index
    %23 = vector.load %arg8[%c0_17, %c0_18] : memref<256x896xf32, #tpu.memory_space<vmem>>, vector<256x896xf32>
    tpu.vector_store %arg8[%c0_17, %c0_18], %22 {strides = array<i32>} : memref<256x896xf32, #tpu.memory_space<vmem>>, vector<256x896xf32>,
    return
  }
  func.func @transform_0(%arg0: i32) -> (i32, i32) {
    %c0_i32 = arith.constant 0 : i32
    %c0_i32_0 = arith.constant 0 : i32
    return %arg0, %c0_i32 : i32, i32
  }
  func.func @transform_1(%arg0: i32) -> (i32, i32) {
    %c0_i32 = arith.constant 0 : i32
    %c0_i32_0 = arith.constant 0 : i32
    %c0_i32_1 = arith.constant 0 : i32
    return %c0_i32, %c0_i32_0 : i32, i32
  }
  func.func @transform_2(%arg0: i32) -> (i32, i32) {
    %c0_i32 = arith.constant 0 : i32
    %c0_i32_0 = arith.constant 0 : i32
    %c0_i32_1 = arith.constant 0 : i32
    return %c0_i32, %c0_i32_0 : i32, i32
  }
  func.func @transform_3(%arg0: i32) -> (i32, i32) {
    %c0_i32 = arith.constant 0 : i32
    %c0_i32_0 = arith.constant 0 : i32
    %c0_i32_1 = arith.constant 0 : i32
    return %c0_i32, %c0_i32_0 : i32, i32
  }
  func.func @transform_4(%arg0: i32) -> (i32, i32) {
    %c0_i32 = arith.constant 0 : i32
    %c0_i32_0 = arith.constant 0 : i32
    %c0_i32_1 = arith.constant 0 : i32
    return %c0_i32, %c0_i32_0 : i32, i32
  }
  func.func @transform_5(%arg0: i32) -> (i32, i32) {
    %c0_i32 = arith.constant 0 : i32
    %c0_i32_0 = arith.constant 0 : i32
    %c0_i32_1 = arith.constant 0 : i32
    return %c0_i32, %c0_i32_0 : i32, i32
  }
  func.func @transform_6(%arg0: i32) -> (i32, i32) {
    %c0_i32 = arith.constant 0 : i32
    %c0_i32_0 = arith.constant 0 : i32
    %c0_i32_1 = arith.constant 0 : i32
    return %c0_i32, %c0_i32_0 : i32, i32
  }
  func.func @transform_7(%arg0: i32) -> (i32, i32) {
    %c0_i32 = arith.constant 0 : i32
    %c0_i32_0 = arith.constant 0 : i32
    return %arg0, %c0_i32 : i32, i32
  }
}

</mosaic_0001>

<bundles_post_ra>
// kernel: mlp_generator_forward.1
= control target key start
LH: loop header
LB: loop body
LE: loop exit
PB: predicated region body
PF: predicated region fallthrough
CT: control target
= control target key end

     0   :  { %s7079_s24 = smov 0   ;;  %s9269_s0 = inlined_call_operand.vmem [shape: bf16[512,32], index: 0, kind: input, shape index: {}]   ;;  %s9270_s1 = inlined_call_operand.vmem [shape: bf16[32,256], index: 1, kind: input, shape index: {}]   ;;  %s9271_s2 = inlined_call_operand.vmem [shape: f32[1,256], index: 2, kind: input, shape index: {}]   ;;  %s9272_s3 = inlined_call_operand.vmem [shape: bf16[256,512], index: 3, kind: input, shape index: {}]   ;;  %s9273_s4 = inlined_call_operand.vmem [shape: f32[1,512], index: 4, kind: input, shape index: {}]   ;;  %s9274_s5 = inlined_call_operand.vmem [shape: bf16[512,896], index: 5, kind: input, shape index: {}]   ;;  %s9275_s6 = inlined_call_operand.vmem [shape: f32[1,896], index: 6, kind: input, shape index: {}]   ;;  %s9276_s7 = inlined_call_operand.vmem [shape: f32[512,896], index: 7, kind: output, shape index: {}]  }
   0x1 LB: > { %s5186_s25 = sadd.s32 4294967295, %s7036_s24   ;;  %p5190_p0 = scmp.ge.s32.totalorder %s7036_s24, 1  ;;  %s7036_s24 = sphi %s7079_s24, %s17_s24  }
   0x2   : > { %p238_p1 = scmp.lt.s32.totalorder %s7036_s24, 3 }
   0x4   : > { %p239_p2 = pnand %p5190_p0, %p238_p1 }
   0x6   : > { %242 = sbr.rel (%p239_p2) target bundleno = 1204 (0x4b4), region = 48 }
   0xd   : > { %v6143_v0 = vld [vmem:[%s9270_s1 + $0x4] ss:$8 sps:$4 sm:$0xff]   ;;  %s5191_s28 = sshll.u32 %s5186_s25, 5  ;;  %v6145_v1 = vld [vmem:[%s9270_s1] ss:$8 sps:$4 sm:$0xff]   ;;  %v7038_v2 = vmov 0  }
   0xe   : > { %514 = vmatprep.mubr.bf16.mxu0 %v7038_v2  ;;  %p272_p3 = scmp.lt.s32.totalorder %s5191_s28, 63  ;;  %594 = vmatprep.mubr.bf16.mxu1 %v7038_v2  ;;  %v6146_v3 = vld [vmem:[%s9270_s1 + $0x14] ss:$8 sps:$4 sm:$0xff]   ;;  %v6148_v4 = vld [vmem:[%s9270_s1 + $0x10] ss:$8 sps:$4 sm:$0xff]   ;;  %vm433_vm0 = vcmask 261120  }
   0xf   : > { %482 = vmatprep.subr.bf16.mxu0 %v6143_v0  ;;  %5745 = vmatprep.subr.bf16.mxu1 %v6143_v0  ;;  %v6167_v5 = vld [vmem:[%s9272_s3 + $0x4] ss:$16 sps:$4 sm:$0xff]   ;;  %v6170_v6 = vld [vmem:[%s9272_s3 + $0xc] ss:$16 sps:$4 sm:$0xff]   ;;  %v6168_v7 = vld [vmem:[%s9272_s3 + $0x8] ss:$16 sps:$4 sm:$0xff]  }
  0x10   : > { %483 = vmatpush1.bf16.msra.mxu0 %v6145_v1  ;;  %s9372_s28 = smov (!%p272_p3, %s5191_s28), 63  ;;  %5747 = vmatpush1.bf16.msra.mxu1 %v6145_v1  ;;  %v6165_v9 = vld [vmem:[%s9272_s3] ss:$16 sps:$4 sm:$0xff]   ;;  %v6173_v12 = vld [vmem:[%s9272_s3 + $0x24] ss:$16 sps:$4 sm:$0xff]  }
  0x11   : > { %484 = vmatprep.subr.bf16.mxu0 %v6146_v3  ;;  %5746 = vmatprep.subr.bf16.mxu1 %v6146_v3  ;;  %s5192_s14 = sshll.u32 %s9372_s28, 2  ;;  %v6171_v13 = vld [vmem:[%s9272_s3 + $0x20] ss:$16 sps:$4 sm:$0xff]   ;;  %v6174_v16 = vld [vmem:[%s9272_s3 + $0x28] ss:$16 sps:$4 sm:$0xff]  }
  0x12   : > { %s7113_s19 = scalar_lea.vmem %s9269_s0, %s5192_s14  ;;  %v6176_v17 = vld [vmem:[%s9272_s3 + $0x2c] ss:$16 sps:$4 sm:$0xff]   ;;  %v6177_v18 = vld [vmem:[%s9272_s3 + $0x40] ss:$16 sps:$4 sm:$0xff]   ;;  %v6179_v19 = vld [vmem:[%s9272_s3 + $0x44] ss:$16 sps:$4 sm:$0xff]  }
  0x13   : > { %v6149_v8 = vld [vmem:[%s7113_s19] sm:$0xff]   ;;  %v6150_v10 = vld [vmem:[%s7113_s19 + $0x8] sm:$0xff]   ;;  %v6151_v15 = vld [vmem:[%s7113_s19 + $0x10] sm:$0xff]   ;;  %s6133_s14 = smul.u32 56, %s9372_s28 }
  0x14   : > { %485 = vmatpush1.bf16.msra.mxu0 %v6148_v4  ;;  %5748 = vmatpush1.bf16.msra.mxu1 %v6148_v4  ;;  %v6157_v11 = vld [vmem:[%s7113_s19 + $0x40] sm:$0xff]   ;;  %v6158_v14 = vld [vmem:[%s7113_s19 + $0x48] sm:$0xff]   ;;  %v6159_v23 = vld [vmem:[%s7113_s19 + $0x50] sm:$0xff]  }
  0x15   : > { %1177 = vmatprep.subr.bf16.mxu1 %v6167_v5  ;;  %1370 = vmatprep.subr.bf16.mxu0 %v6170_v6  ;;  %v6182_v20 = vld [vmem:[%s9272_s3 + $0x4c] ss:$16 sps:$4 sm:$0xff]   ;;  %v6180_v21 = vld [vmem:[%s9272_s3 + $0x48] ss:$16 sps:$4 sm:$0xff]   ;;  %v6185_v22 = vld [vmem:[%s9272_s3 + $0x64] ss:$16 sps:$4 sm:$0xff]   ;;  %s8642_s16 = scalar_lea.vmem %s9276_s7, %s6133_s14 }
  0x16   : > { %v6188_v24 = vld [vmem:[%s9272_s3 + $0x6c] ss:$16 sps:$4 sm:$0xff]   ;;  %v6183_v26 = vld [vmem:[%s9272_s3 + $0x60] ss:$16 sps:$4 sm:$0xff]   ;;  %v6186_v27 = vld [vmem:[%s9272_s3 + $0x68] ss:$16 sps:$4 sm:$0xff]  }
  0x17   : > { %5215 = vmatmul.mubr.msk.bf16.vlgmr.msra.gmra.mrb[0].mxu0 %vm433_vm0, %v6149_v8  ;;  %5223 = vmatmul.mubr.msk.bf16.vlgmr.msra.gmra.mrb[0].mxu1 %vm433_vm0, %v6157_v11  ;;  %v6152_v25 = vld [vmem:[%s7113_s19 + $0x18] sm:$0xff]   ;;  %v6191_v28 = vld [vmem:[%s9272_s3 + $0x84] ss:$16 sps:$4 sm:$0xff]   ;;  %v6189_v31 = vld [vmem:[%s9272_s3 + $0x80] ss:$16 sps:$4 sm:$0xff]  }
  0x18   : > { %524 = vmatprep.mubr.bf16.mxu0 %v7038_v2  ;;  %1371 = vmatpush1.bf16.msra.mxu0 %v6168_v7  ;;  %v6194_v29 = vld [vmem:[%s9272_s3 + $0x8c] ss:$16 sps:$4 sm:$0xff]   ;;  %v6192_v32 = vld [vmem:[%s9272_s3 + $0x88] ss:$16 sps:$4 sm:$0xff]   ;;  %v6197_v33 = vld [vmem:[%s9272_s3 + $0xa4] ss:$16 sps:$4 sm:$0xff]  }
  0x19   : > { %604 = vmatprep.mubr.bf16.mxu1 %v7038_v2  ;;  %1178 = vmatpush1.bf16.msra.mxu1 %v6165_v9  ;;  %v6160_v30 = vld [vmem:[%s7113_s19 + $0x58] sm:$0xff]   ;;  %v6153_v35 = vld [vmem:[%s7113_s19 + $0x20] sm:$0xff]   ;;  %v6154_v45 = vld [vmem:[%s7113_s19 + $0x28] sm:$0xff]  }
  0x1a   : > { %1179 = vmatprep.subr.bf16.mxu1 %v6173_v12  ;;  %1372 = vmatprep.subr.bf16.mxu0 %v6176_v17  ;;  %v6200_v34 = vld [vmem:[%s9272_s3 + $0xac] ss:$16 sps:$4 sm:$0xff]   ;;  %v6195_v36 = vld [vmem:[%s9272_s3 + $0xa0] ss:$16 sps:$4 sm:$0xff]   ;;  %v6198_v37 = vld [vmem:[%s9272_s3 + $0xa8] ss:$16 sps:$4 sm:$0xff]  }
  0x1b   : > { %v6203_v38 = vld [vmem:[%s9272_s3 + $0xc4] ss:$16 sps:$4 sm:$0xff]   ;;  %v6206_v39 = vld [vmem:[%s9272_s3 + $0xcc] ss:$16 sps:$4 sm:$0xff]   ;;  %v6201_v41 = vld [vmem:[%s9272_s3 + $0xc0] ss:$16 sps:$4 sm:$0xff]  }
  0x1c   : > { %1373 = vmatpush1.bf16.msra.mxu0 %v6174_v16  ;;  %v6161_v40 = vld [vmem:[%s7113_s19 + $0x60] sm:$0xff]   ;;  %v6204_v42 = vld [vmem:[%s9272_s3 + $0xc8] ss:$16 sps:$4 sm:$0xff]   ;;  %v6212_v44 = vld [vmem:[%s9272_s3 + $0xec] ss:$16 sps:$4 sm:$0xff]  }
  0x1d   : > { %1180 = vmatpush1.bf16.msra.mxu1 %v6171_v13  ;;  %1374 = vmatprep.subr.bf16.mxu0 %v6182_v20  ;;  %v6209_v43 = vld [vmem:[%s9272_s3 + $0xe4] ss:$16 sps:$4 sm:$0xff]   ;;  %v6207_v46 = vld [vmem:[%s9272_s3 + $0xe0] ss:$16 sps:$4 sm:$0xff]   ;;  %v6210_v47 = vld [vmem:[%s9272_s3 + $0xe8] ss:$16 sps:$4 sm:$0xff]  }
  0x1e   : > { %1181 = vmatprep.subr.bf16.mxu1 %v6179_v19  ;;  %v6215_v48 = vld [vmem:[%s9272_s3 + $0x104] ss:$16 sps:$4 sm:$0xff]   ;;  %v6218_v49 = vld [vmem:[%s9272_s3 + $0x10c] ss:$16 sps:$4 sm:$0xff]   ;;  %v6213_v51 = vld [vmem:[%s9272_s3 + $0x100] ss:$16 sps:$4 sm:$0xff]  }
  0x1f   : > { %5216 = vmatmul.mubr.msk.bf16.gmra.mrb[4].mxu0 %vm433_vm0, %v6150_v10  ;;  %5224 = vmatmul.mubr.msk.bf16.gmra.mrb[4].mxu1 %vm433_vm0, %v6158_v14  ;;  %v6162_v50 = vld [vmem:[%s7113_s19 + $0x68] sm:$0xff]   ;;  %v6221_v53 = vld [vmem:[%s9272_s3 + $0x124] ss:$16 sps:$4 sm:$0xff]   ;;  %v6219_v56 = vld [vmem:[%s9272_s3 + $0x120] ss:$16 sps:$4 sm:$0xff]  }
  0x20   : > { %534 = vmatprep.mubr.bf16.mxu0 %v7038_v2  ;;  %614 = vmatprep.mubr.bf16.mxu1 %v7038_v2  ;;  %v6216_v52 = vld [vmem:[%s9272_s3 + $0x108] ss:$16 sps:$4 sm:$0xff]   ;;  %v6224_v54 = vld [vmem:[%s9272_s3 + $0x12c] ss:$16 sps:$4 sm:$0xff]   ;;  %v6155_v55 = vld [vmem:[%s7113_s19 + $0x30] sm:$0xff]  }
  0x21   : > { %1182 = vmatpush1.bf16.msra.mxu1 %v6177_v18  ;;  %1375 = vmatpush1.bf16.msra.mxu0 %v6180_v21  ;;  %v6222_v57 = vld [vmem:[%s9272_s3 + $0x128] ss:$16 sps:$4 sm:$0xff]   ;;  %v6227_v58 = vld [vmem:[%s9272_s3 + $0x144] ss:$16 sps:$4 sm:$0xff]   ;;  %v6230_v59 = vld [vmem:[%s9272_s3 + $0x14c] ss:$16 sps:$4 sm:$0xff]  }
  0x22   : > { %1183 = vmatprep.subr.bf16.mxu1 %v6185_v22  ;;  %1376 = vmatprep.subr.bf16.mxu0 %v6188_v24  ;;  %v6225_v60 = vld [vmem:[%s9272_s3 + $0x140] ss:$16 sps:$4 sm:$0xff]   ;;  %v6228_v61 = vld [vmem:[%s9272_s3 + $0x148] ss:$16 sps:$4 sm:$0xff]   ;;  %v6233_v62 = vld [vmem:[%s9272_s3 + $0x164] ss:$16 sps:$4 sm:$0xff]  }
  0x23   : > { %v6163_v63 = vld [vmem:[%s7113_s19 + $0x70] sm:$0xff]   ;;  %v6236_v0 = vld [vmem:[%s9272_s3 + $0x16c] ss:$16 sps:$4 sm:$0xff]   ;;  %v6234_v4 = vld [vmem:[%s9272_s3 + $0x168] ss:$16 sps:$4 sm:$0xff]  }
  0x24   : > { %v6156_v1 = vld [vmem:[%s7113_s19 + $0x38] sm:$0xff]   ;;  %v6231_v3 = vld [vmem:[%s9272_s3 + $0x160] ss:$16 sps:$4 sm:$0xff]   ;;  %v6239_v5 = vld [vmem:[%s9272_s3 + $0x184] ss:$16 sps:$4 sm:$0xff]  }
  0x25   : > { %1184 = vmatpush1.bf16.msra.mxu1 %v6183_v26  ;;  %1377 = vmatpush1.bf16.msra.mxu0 %v6186_v27  ;;  %v6242_v6 = vld [vmem:[%s9272_s3 + $0x18c] ss:$16 sps:$4 sm:$0xff]   ;;  %v6237_v7 = vld [vmem:[%s9272_s3 + $0x180] ss:$16 sps:$4 sm:$0xff]   ;;  %v6240_v8 = vld [vmem:[%s9272_s3 + $0x188] ss:$16 sps:$4 sm:$0xff]  }
  0x26   : > { %1185 = vmatprep.subr.bf16.mxu1 %v6191_v28  ;;  %1378 = vmatprep.subr.bf16.mxu0 %v6194_v29  ;;  %v6245_v9 = vld [vmem:[%s9272_s3 + $0x1a4] ss:$16 sps:$4 sm:$0xff]   ;;  %v6164_v10 = vld [vmem:[%s7113_s19 + $0x78] sm:$0xff]   ;;  %v6255_v19 = vld [vmem:[%s9272_s3 + $0x1e0] ss:$16 sps:$4 sm:$0xff]  }
  0x27   : > { %5217 = vmatmul.mubr.msk.bf16.gmra.mrb[8].mxu0 %vm433_vm0, %v6151_v15  ;;  %5225 = vmatmul.mubr.msk.bf16.gmra.mrb[8].mxu1 %vm433_vm0, %v6159_v23  ;;  %v6248_v11 = vld [vmem:[%s9272_s3 + $0x1ac] ss:$16 sps:$4 sm:$0xff]   ;;  %v6246_v12 = vld [vmem:[%s9272_s3 + $0x1a8] ss:$16 sps:$4 sm:$0xff]   ;;  %v6251_v13 = vld [vmem:[%s9272_s3 + $0x1c4] ss:$16 sps:$4 sm:$0xff]   ;;  %v323_v23 = vlaneseq }
  0x28   : > { %544 = vmatprep.mubr.bf16.mxu0 %v7038_v2  ;;  %624 = vmatprep.mubr.bf16.mxu1 %v7038_v2  ;;  %v6254_v14 = vld [vmem:[%s9272_s3 + $0x1cc] ss:$16 sps:$4 sm:$0xff]   ;;  %v6249_v15 = vld [vmem:[%s9272_s3 + $0x1c0] ss:$16 sps:$4 sm:$0xff]   ;;  %v6252_v16 = vld [vmem:[%s9272_s3 + $0x1c8] ss:$16 sps:$4 sm:$0xff]  }
  0x29   : > { %1186 = vmatpush1.bf16.msra.mxu1 %v6189_v31  ;;  %1379 = vmatpush1.bf16.msra.mxu0 %v6192_v32  ;;  %v6257_v17 = vld [vmem:[%s9272_s3 + $0x1e4] ss:$16 sps:$4 sm:$0xff]   ;;  %v6260_v18 = vld [vmem:[%s9272_s3 + $0x1ec] ss:$16 sps:$4 sm:$0xff]   ;;  %v6258_v20 = vld [vmem:[%s9272_s3 + $0x1e8] ss:$16 sps:$4 sm:$0xff]  }
  0x2a   : > { %1187 = vmatprep.subr.bf16.mxu1 %v6197_v33  ;;  %1380 = vmatprep.subr.bf16.mxu0 %v6200_v34  ;;  %v6263_v21 = vld [vmem:[%s9274_s5 + $0xc] ss:$28 sps:$4 sm:$0xff]   ;;  %v6266_v22 = vld [vmem:[%s9274_s5 + $0x4] ss:$28 sps:$4 sm:$0xff]   ;;  %v7353_v24 = vshrl.u32 %v323_v23, 7 }
  0x2b   : > { %v321_v26 = vld [vmem:[%s9271_s2] sm:$0x3] }
  0x2c   : > { %9323 = vst [vmem:[#allocation2_spill] sm:$0xff] %v7353_v24  ;;  %v7362_v27 = vsub.s32 1, %v7353_v24 }
  0x2d   : > { %1188 = vmatpush1.bf16.msra.mxu1 %v6195_v36  ;;  %1381 = vmatpush1.bf16.msra.mxu0 %v6198_v37 }
  0x2e   : > { %1189 = vmatprep.subr.bf16.mxu1 %v6203_v38  ;;  %1382 = vmatprep.subr.bf16.mxu0 %v6206_v39  ;;  %9325 = vst [vmem:[#allocation4_spill] sm:$0xff] %v7362_v27  ;;  %v7368_v29 = vrot.slane %v321_v26, %v7362_v27 }
  0x2f   : > { %5218 = vmatmul.mubr.msk.bf16.gmra.mrb[12].mxu0 %vm433_vm0, %v6152_v25  ;;  %5226 = vmatmul.mubr.msk.bf16.gmra.mrb[12].mxu1 %vm433_vm0, %v6160_v30  ;;  %v7356_v25 = vsub.s32 0, %v7353_v24 }
  0x30   : > { %554 = vmatprep.mubr.bf16.mxu0 %v7038_v2  ;;  %634 = vmatprep.mubr.bf16.mxu1 %v7038_v2 }
  0x31   : > { %1190 = vmatpush1.bf16.msra.mxu1 %v6201_v41  ;;  %1383 = vmatpush1.bf16.msra.mxu0 %v6204_v42  ;;  %9324 = vst [vmem:[#allocation3_spill] sm:$0xff] %v7356_v25  ;;  %v7365_v28 = vrot.slane %v321_v26, %v7356_v25 }
  0x32   : > { %1191 = vmatprep.subr.bf16.mxu1 %v6209_v43  ;;  %1384 = vmatprep.subr.bf16.mxu0 %v6212_v44 }
  0x35   : > { %1192 = vmatpush1.bf16.msra.mxu1 %v6207_v46  ;;  %1385 = vmatpush1.bf16.msra.mxu0 %v6210_v47 }
  0x36   : > { %1193 = vmatprep.subr.bf16.mxu1 %v6215_v48  ;;  %1386 = vmatprep.subr.bf16.mxu0 %v6218_v49  ;;  %v6261_v48 = vld [vmem:[%s9274_s5 + $0x8] ss:$28 sps:$4 sm:$0xff]   ;;  %v6264_v49 = vld [vmem:[%s9274_s5] ss:$28 sps:$4 sm:$0xff]  }
  0x37   : > { %5219 = vmatmul.mubr.msk.bf16.gmra.mrb[16].mxu0 %vm433_vm0, %v6153_v35  ;;  %5227 = vmatmul.mubr.msk.bf16.gmra.mrb[16].mxu1 %vm433_vm0, %v6161_v40 }
  0x38   : > { %564 = vmatprep.mubr.bf16.mxu0 %v7038_v2  ;;  %644 = vmatprep.mubr.bf16.mxu1 %v7038_v2 }
  0x39   : > { %1194 = vmatpush1.bf16.msra.mxu1 %v6213_v51  ;;  %1387 = vmatpush1.bf16.msra.mxu0 %v6216_v52 }
  0x3a   : > { %1195 = vmatprep.subr.bf16.mxu1 %v6221_v53  ;;  %1388 = vmatprep.subr.bf16.mxu0 %v6224_v54  ;;  %v6269_v54 = vld [vmem:[%s9274_s5 + $0x44] ss:$28 sps:$4 sm:$0xff]  }
  0x3d   : > { %1196 = vmatpush1.bf16.msra.mxu1 %v6219_v56  ;;  %1389 = vmatpush1.bf16.msra.mxu0 %v6222_v57 }
  0x3e   : > { %1197 = vmatprep.subr.bf16.mxu1 %v6227_v58  ;;  %1390 = vmatprep.subr.bf16.mxu0 %v6230_v59 }
  0x3f   : > { %5220 = vmatmul.mubr.msk.bf16.gmra.mrb[20].mxu0 %vm433_vm0, %v6154_v45  ;;  %5228 = vmatmul.mubr.msk.bf16.gmra.mrb[20].mxu1 %vm433_vm0, %v6162_v50 }
  0x40   : > { %574 = vmatprep.mubr.bf16.mxu0 %v7038_v2  ;;  %654 = vmatprep.mubr.bf16.mxu1 %v7038_v2 }
  0x41   : > { %1198 = vmatpush1.bf16.msra.mxu1 %v6225_v60  ;;  %1391 = vmatpush1.bf16.msra.mxu0 %v6228_v61 }
  0x42   : > { %1199 = vmatprep.subr.bf16.mxu1 %v6233_v62  ;;  %1392 = vmatprep.subr.bf16.mxu0 %v6236_v0 }
  0x45   : > { %1200 = vmatpush1.bf16.msra.mxu1 %v6231_v3  ;;  %1393 = vmatpush1.bf16.msra.mxu0 %v6234_v4 }
  0x46   : > { %1201 = vmatprep.subr.bf16.mxu1 %v6239_v5  ;;  %1394 = vmatprep.subr.bf16.mxu0 %v6242_v6  ;;  %v6270_v5 = vld [vmem:[%s9274_s5 + $0x38] ss:$28 sps:$4 sm:$0xff]  }
  0x47   : > { %5221 = vmatmul.mubr.msk.bf16.gmra.mrb[24].mxu0 %vm433_vm0, %v6155_v55  ;;  %5229 = vmatmul.mubr.msk.bf16.gmra.mrb[24].mxu1 %vm433_vm0, %v6163_v63  ;;  %v6272_v55 = vld [vmem:[%s9274_s5 + $0x3c] ss:$28 sps:$4 sm:$0xff]  }
  0x48   : > { %584 = vmatprep.mubr.bf16.mxu0 %v7038_v2  ;;  %664 = vmatprep.mubr.bf16.mxu1 %v7038_v2  ;;  %v6243_v2 = vld [vmem:[%s9272_s3 + $0x1a0] ss:$16 sps:$4 sm:$0xff]   ;;  %v6275_v6 = vld [vmem:[%s9274_s5 + $0x7c] ss:$28 sps:$4 sm:$0xff]  }
  0x49   : > { %1202 = vmatpush1.bf16.msra.mxu1 %v6237_v7  ;;  %1395 = vmatpush1.bf16.msra.mxu0 %v6240_v8 }
  0x4a   : > { %1203 = vmatprep.subr.bf16.mxu1 %v6245_v9  ;;  %1396 = vmatprep.subr.bf16.mxu0 %v6248_v11 }
  0x4d   : > { %1204 = vmatpush1.bf16.msra.mxu1 %v6243_v2  ;;  %1397 = vmatpush1.bf16.msra.mxu0 %v6246_v12 }
  0x4e   : > { %1205 = vmatprep.subr.bf16.mxu1 %v6251_v13  ;;  %1398 = vmatprep.subr.bf16.mxu0 %v6254_v14 }
  0x4f   : > { %5222 = vmatmul.mubr.msk.bf16.gmra.mrb[28].mxu0 %vm433_vm0, %v6156_v1  ;;  %5230 = vmatmul.mubr.msk.bf16.gmra.mrb[28].mxu1 %vm433_vm0, %v6164_v10  ;;  %v6267_v1 = vld [vmem:[%s9274_s5 + $0x40] ss:$28 sps:$4 sm:$0xff]   ;;  %v6278_v10 = vld [vmem:[%s9274_s5 + $0x74] ss:$28 sps:$4 sm:$0xff]  }
  0x51   : > { %1206 = vmatpush1.bf16.msra.mxu1 %v6249_v15  ;;  %1399 = vmatpush1.bf16.msra.mxu0 %v6252_v16 }
  0x52   : > { %1207 = vmatprep.subr.bf16.mxu1 %v6257_v17  ;;  %1400 = vmatprep.subr.bf16.mxu0 %v6260_v18 }
  0x55   : > { %1208 = vmatpush1.bf16.msra.mxu1 %v6255_v19  ;;  %1401 = vmatpush1.bf16.msra.mxu0 %v6258_v20  ;;  %v6273_v20 = vld [vmem:[%s9274_s5 + $0x78] ss:$28 sps:$4 sm:$0xff]  }
  0x56   : > { %3586 = vmatprep.subr.bf16.mxu0 %v6263_v21  ;;  %3200 = vmatprep.subr.bf16.mxu1 %v6266_v22  ;;  %v6276_v21 = vld [vmem:[%s9274_s5 + $0x70] ss:$28 sps:$4 sm:$0xff]  }
  0xea   : > { %v516_v30 = vpop.f32.mrb[0].mxu0  ;;  %v596_v43 = vpop.f32.mrb[0].mxu1 }
  0xeb   : > { %v517_v31 = vadd.f32 %v516_v30, %v7365_v28  ;;  %v518_v32 = vpop.f32.mrb[1].mxu0  ;;  %v597_v46 = vadd.f32 %v596_v43, %v7365_v28  ;;  %v598_v47 = vpop.f32.mrb[1].mxu1 }
  0xec   : > { %v519_v33 = vadd.f32 %v518_v32, %v7368_v29  ;;  %v520_v34 = vpop.f32.mrb[2].mxu0  ;;  %v599_v52 = vadd.f32 %v598_v47, %v7368_v29  ;;  %v600_v53 = vpop.f32.mrb[2].mxu1  ;;  %v6284_v32 = vld [vmem:[%s9274_s5 + $0xac] ss:$28 sps:$4 sm:$0xff]  }
  0xed   : > { %v521_v35 = vadd.f32 %v520_v34, %v7365_v28  ;;  %v522_v36 = vpop.f32.mrb[3].mxu0  ;;  %v675_v38 = vmax.f32 %v517_v31, 0.0  ;;  %v707_v58 = vmax.f32 %v597_v46, 0.0  ;;  %v601_v59 = vadd.f32 %v600_v53, %v7365_v28  ;;  %v602_v60 = vpop.f32.mrb[3].mxu1  ;;  %v6281_v31 = vld [vmem:[%s9274_s5 + $0xb4] ss:$28 sps:$4 sm:$0xff]  }
  0xee   : > { %v523_v37 = vadd.f32 %v522_v36, %v7368_v29  ;;  %v676_v40 = vmax.f32 %v519_v33, 0.0  ;;  %v708_v63 = vmax.f32 %v599_v52, 0.0  ;;  %v603_v0 = vadd.f32 %v602_v60, %v7368_v29  ;;  %v6287_v46 = vld [vmem:[%s9274_s5 + $0xec] ss:$28 sps:$4 sm:$0xff]  }
  0xef   : > { %v677_v39 = vmax.f32 %v521_v35, 0.0  ;;  %v709_v4 = vmax.f32 %v601_v59, 0.0 }
  0xf0   : > { %v678_v41 = vmax.f32 %v523_v37, 0.0  ;;  %v710_v9 = vmax.f32 %v603_v0, 0.0 }
  0xf1   : > { %v739_v42 = vpack.c.bf16 %v677_v39, %v675_v38  ;;  %v7406_v12 = vpack.c.bf16 %v709_v4, %v707_v58  ;;  %v6293_v4 = vld [vmem:[%s9274_s5 + $0x124] ss:$28 sps:$4 sm:$0xff]  }
  0xf2   : > { %v526_v44 = vpop.f32.mrb[4].mxu0  ;;  %v740_v45 = vpack.c.bf16 %v678_v41, %v676_v40  ;;  %v7408_v14 = vpack.c.bf16 %v710_v9, %v708_v63  ;;  %v606_v15 = vpop.f32.mrb[4].mxu1 }
  0xf3   : > { %v527_v50 = vadd.f32 %v526_v44, %v7365_v28  ;;  %v528_v51 = vpop.f32.mrb[5].mxu0  ;;  %v607_v18 = vadd.f32 %v606_v15, %v7365_v28  ;;  %v608_v19 = vpop.f32.mrb[5].mxu1 }
  0xf4   : > { %v529_v56 = vadd.f32 %v528_v51, %v7368_v29  ;;  %v530_v57 = vpop.f32.mrb[6].mxu0  ;;  %1209 = vmatprep.mubr.bf16.mxu1 %v740_v45  ;;  %1402 = vmatprep.mubr.bf16.mxu0 %v740_v45  ;;  %v609_v26 = vadd.f32 %v608_v19, %v7368_v29  ;;  %v610_v30 = vpop.f32.mrb[6].mxu1  ;;  %v6282_v45 = vld [vmem:[%s9274_s5 + $0xa8] ss:$28 sps:$4 sm:$0xff]   ;;  %v6294_v19 = vld [vmem:[%s9274_s5 + $0x118] ss:$28 sps:$4 sm:$0xff]  }
  0xf5   : > { %v531_v61 = vadd.f32 %v530_v57, %v7365_v28  ;;  %v532_v62 = vpop.f32.mrb[7].mxu0  ;;  %1210 = vmatmul.mubr.bf16.vlgmr.msra.gmra.mrb[32].mxu1 %v739_v42  ;;  %1403 = vmatmul.mubr.bf16.vlgmr.msra.gmra.mrb[32].mxu0 %v739_v42  ;;  %v679_v7 = vmax.f32 %v527_v50, 0.0  ;;  %v711_v35 = vmax.f32 %v607_v18, 0.0  ;;  %v611_v36 = vadd.f32 %v610_v30, %v7365_v28  ;;  %v612_v37 = vpop.f32.mrb[7].mxu1  ;;  %v6279_v42 = vld [vmem:[%s9274_s5 + $0xb0] ss:$28 sps:$4 sm:$0xff]  }
  0xf6   : > { %v533_v3 = vadd.f32 %v532_v62, %v7368_v29  ;;  %3587 = vmatpush1.bf16.msra.mxu0 %v6261_v48  ;;  %3201 = vmatpush1.bf16.msra.mxu1 %v6264_v49  ;;  %v680_v11 = vmax.f32 %v529_v56, 0.0  ;;  %v712_v40 = vmax.f32 %v609_v26, 0.0  ;;  %v613_v41 = vadd.f32 %v612_v37, %v7368_v29  ;;  %v6290_v50 = vld [vmem:[%s9274_s5 + $0xe4] ss:$28 sps:$4 sm:$0xff]   ;;  %v6302_v26 = vld [vmem:[%s9274_s5 + $0x154] ss:$28 sps:$4 sm:$0xff]  }
  0xf7   : > { %v681_v8 = vmax.f32 %v531_v61, 0.0  ;;  %3588 = vmatprep.subr.bf16.mxu0 %v6269_v54  ;;  %3202 = vmatprep.subr.bf16.mxu1 %v6272_v55  ;;  %v713_v44 = vmax.f32 %v611_v36, 0.0  ;;  %v6285_v61 = vld [vmem:[%s9274_s5 + $0xe8] ss:$28 sps:$4 sm:$0xff]   ;;  %v6288_v62 = vld [vmem:[%s9274_s5 + $0xe0] ss:$28 sps:$4 sm:$0xff]  }
  0xf8   : > { %v682_v2 = vmax.f32 %v533_v3, 0.0  ;;  %v714_v49 = vmax.f32 %v613_v41, 0.0  ;;  %v6300_v41 = vld [vmem:[%s9274_s5 + $0x150] ss:$28 sps:$4 sm:$0xff]  }
  0xf9   : > { %v741_v13 = vpack.c.bf16 %v681_v8, %v679_v7  ;;  %v7442_v53 = vpack.c.bf16 %v713_v44, %v711_v35 }
  0xfa   : > { %v536_v16 = vpop.f32.mrb[8].mxu0  ;;  %v742_v17 = vpack.c.bf16 %v682_v2, %v680_v11  ;;  %3589 = vmatpush1.bf16.msra.mxu0 %v6267_v1  ;;  %3203 = vmatpush1.bf16.msra.mxu1 %v6270_v5  ;;  %v7444_v55 = vpack.c.bf16 %v714_v49, %v712_v40  ;;  %v616_v56 = vpop.f32.mrb[8].mxu1  ;;  %v6296_v5 = vld [vmem:[%s9274_s5 + $0x11c] ss:$28 sps:$4 sm:$0xff]  }
  0xfb   : > { %v537_v22 = vadd.f32 %v536_v16, %v7365_v28  ;;  %v538_v23 = vpop.f32.mrb[9].mxu0  ;;  %3590 = vmatprep.subr.bf16.mxu0 %v6275_v6  ;;  %3204 = vmatprep.subr.bf16.mxu1 %v6278_v10  ;;  %v617_v59 = vadd.f32 %v616_v56, %v7365_v28  ;;  %v618_v60 = vpop.f32.mrb[9].mxu1  ;;  %v6291_v16 = vld [vmem:[%s9274_s5 + $0x120] ss:$28 sps:$4 sm:$0xff]   ;;  %v6297_v40 = vld [vmem:[%s9274_s5 + $0x158] ss:$28 sps:$4 sm:$0xff]  }
  0xfc   : > { %v539_v33 = vadd.f32 %v538_v23, %v7368_v29  ;;  %v540_v34 = vpop.f32.mrb[10].mxu0  ;;  %1219 = vmatprep.mubr.bf16.mxu1 %v742_v17  ;;  %1412 = vmatprep.mubr.bf16.mxu0 %v742_v17  ;;  %v619_v1 = vadd.f32 %v618_v60, %v7368_v29  ;;  %v620_v3 = vpop.f32.mrb[10].mxu1 }
  0xfd   : > { %v541_v38 = vadd.f32 %v540_v34, %v7365_v28  ;;  %v542_v39 = vpop.f32.mrb[11].mxu0  ;;  %1220 = vmatmul.mubr.bf16.gmra.mrb[36].mxu1 %v741_v13  ;;  %1413 = vmatmul.mubr.bf16.gmra.mrb[36].mxu0 %v741_v13  ;;  %v683_v47 = vmax.f32 %v537_v22, 0.0  ;;  %v715_v8 = vmax.f32 %v617_v59, 0.0  ;;  %v621_v9 = vadd.f32 %v620_v3, %v7365_v28  ;;  %v622_v10 = vpop.f32.mrb[11].mxu1  ;;  %v6303_v59 = vld [vmem:[%s9274_s5 + $0x190] ss:$28 sps:$4 sm:$0xff]  }
  0xfe   : > { %v543_v43 = vadd.f32 %v542_v39, %v7368_v29  ;;  %3591 = vmatpush1.bf16.msra.mxu0 %v6273_v20  ;;  %3205 = vmatpush1.bf16.msra.mxu1 %v6276_v21  ;;  %v684_v51 = vmax.f32 %v539_v33, 0.0  ;;  %v716_v13 = vmax.f32 %v619_v1, 0.0  ;;  %v623_v15 = vadd.f32 %v622_v10, %v7368_v29  ;;  %v6299_v20 = vld [vmem:[%s9274_s5 + $0x15c] ss:$28 sps:$4 sm:$0xff]  }
  0xff   : > { %v685_v48 = vmax.f32 %v541_v38, 0.0  ;;  %3592 = vmatprep.subr.bf16.mxu0 %v6281_v31  ;;  %3206 = vmatprep.subr.bf16.mxu1 %v6284_v32  ;;  %v717_v18 = vmax.f32 %v621_v9, 0.0 }
 0x100   : > { %v686_v52 = vmax.f32 %v543_v43, 0.0  ;;  %v718_v23 = vmax.f32 %v623_v15, 0.0 }
 0x101   : > { %v743_v54 = vpack.c.bf16 %v685_v48, %v683_v47  ;;  %v7478_v32 = vpack.c.bf16 %v717_v18, %v715_v8  ;;  %v6308_v47 = vld [vmem:[%s9274_s5 + $0x18c] ss:$28 sps:$4 sm:$0xff]  }
 0x102   : > { %v546_v57 = vpop.f32.mrb[12].mxu0  ;;  %v744_v58 = vpack.c.bf16 %v686_v52, %v684_v51  ;;  %3593 = vmatpush1.bf16.msra.mxu0 %v6279_v42  ;;  %3207 = vmatpush1.bf16.msra.mxu1 %v6282_v45  ;;  %v7480_v34 = vpack.c.bf16 %v718_v23, %v716_v13  ;;  %v626_v35 = vpop.f32.mrb[12].mxu1  ;;  %v6320_v23 = vld [vmem:[%s9274_s5 + $0x1fc] ss:$28 sps:$4 sm:$0xff]  }
 0x103   : > { %v547_v63 = vadd.f32 %v546_v57, %v7365_v28  ;;  %v548_v0 = vpop.f32.mrb[13].mxu0  ;;  %3594 = vmatprep.subr.bf16.mxu0 %v6287_v46  ;;  %3208 = vmatprep.subr.bf16.mxu1 %v6290_v50  ;;  %v627_v38 = vadd.f32 %v626_v35, %v7365_v28  ;;  %v628_v39 = vpop.f32.mrb[13].mxu1  ;;  %v6305_v46 = vld [vmem:[%s9274_s5 + $0x194] ss:$28 sps:$4 sm:$0xff]  }
 0x104   : > { %v549_v6 = vadd.f32 %v548_v0, %v7368_v29  ;;  %v550_v7 = vpop.f32.mrb[14].mxu0  ;;  %1229 = vmatprep.mubr.bf16.mxu1 %v744_v58  ;;  %1422 = vmatprep.mubr.bf16.mxu0 %v744_v58  ;;  %v629_v44 = vadd.f32 %v628_v39, %v7368_v29  ;;  %v630_v45 = vpop.f32.mrb[14].mxu1 }
 0x105   : > { %v551_v11 = vadd.f32 %v550_v7, %v7365_v28  ;;  %v552_v2 = vpop.f32.mrb[15].mxu0  ;;  %1230 = vmatmul.mubr.bf16.gmra.mrb[40].mxu1 %v743_v54  ;;  %1423 = vmatmul.mubr.bf16.gmra.mrb[40].mxu0 %v743_v54  ;;  %v687_v21 = vmax.f32 %v547_v63, 0.0  ;;  %v719_v50 = vmax.f32 %v627_v38, 0.0  ;;  %v631_v51 = vadd.f32 %v630_v45, %v7365_v28  ;;  %v632_v52 = vpop.f32.mrb[15].mxu1  ;;  %v6311_v63 = vld [vmem:[%s9274_s5 + $0x1cc] ss:$28 sps:$4 sm:$0xff]  }
 0x106   : > { %v553_v17 = vadd.f32 %v552_v2, %v7368_v29  ;;  %3595 = vmatpush1.bf16.msra.mxu0 %v6285_v61  ;;  %3209 = vmatpush1.bf16.msra.mxu1 %v6288_v62  ;;  %v688_v30 = vmax.f32 %v549_v6, 0.0  ;;  %v720_v57 = vmax.f32 %v629_v44, 0.0  ;;  %v633_v58 = vadd.f32 %v632_v52, %v7368_v29  ;;  %v6306_v62 = vld [vmem:[%s9274_s5 + $0x188] ss:$28 sps:$4 sm:$0xff]   ;;  %v6323_v44 = vld [vmem:[%s9274_s5 + $0x23c] ss:$28 sps:$4 sm:$0xff]  }
 0x107   : > { %v689_v22 = vmax.f32 %v551_v11, 0.0  ;;  %3596 = vmatprep.subr.bf16.mxu0 %v6293_v4  ;;  %3210 = vmatprep.subr.bf16.mxu1 %v6296_v5  ;;  %v721_v61 = vmax.f32 %v631_v51, 0.0  ;;  %v6314_v4 = vld [vmem:[%s9274_s5 + $0x1c4] ss:$28 sps:$4 sm:$0xff]  }
 0x108   : > { %v690_v31 = vmax.f32 %v553_v17, 0.0  ;;  %v722_v3 = vmax.f32 %v633_v58, 0.0  ;;  %v6312_v17 = vld [vmem:[%s9274_s5 + $0x1c0] ss:$28 sps:$4 sm:$0xff]  }
 0x109   : > { %v745_v33 = vpack.c.bf16 %v689_v22, %v687_v21  ;;  %v7514_v7 = vpack.c.bf16 %v721_v61, %v719_v50  ;;  %v6317_v22 = vld [vmem:[%s9274_s5 + $0x204] ss:$28 sps:$4 sm:$0xff]   ;;  %v6321_v61 = vld [vmem:[%s9274_s5 + $0x238] ss:$28 sps:$4 sm:$0xff]  }
 0x10a   : > { %v556_v36 = vpop.f32.mrb[16].mxu0  ;;  %v746_v37 = vpack.c.bf16 %v690_v31, %v688_v30  ;;  %3597 = vmatpush1.bf16.msra.mxu0 %v6291_v16  ;;  %3211 = vmatpush1.bf16.msra.mxu1 %v6294_v19  ;;  %v7516_v9 = vpack.c.bf16 %v722_v3, %v720_v57  ;;  %v636_v10 = vpop.f32.mrb[16].mxu1  ;;  %v6309_v16 = vld [vmem:[%s9274_s5 + $0x1c8] ss:$28 sps:$4 sm:$0xff]  }
 0x10b   : > { %v557_v42 = vadd.f32 %v556_v36, %v7365_v28  ;;  %v558_v43 = vpop.f32.mrb[17].mxu0  ;;  %3598 = vmatprep.subr.bf16.mxu0 %v6299_v20  ;;  %3212 = vmatprep.subr.bf16.mxu1 %v6302_v26  ;;  %v637_v13 = vadd.f32 %v636_v10, %v7365_v28  ;;  %v638_v15 = vpop.f32.mrb[17].mxu1 }
 0x10c   : > { %v559_v48 = vadd.f32 %v558_v43, %v7368_v29  ;;  %v560_v49 = vpop.f32.mrb[18].mxu0  ;;  %1239 = vmatprep.mubr.bf16.mxu1 %v746_v37  ;;  %1432 = vmatprep.mubr.bf16.mxu0 %v746_v37  ;;  %v639_v20 = vadd.f32 %v638_v15, %v7368_v29  ;;  %v640_v21 = vpop.f32.mrb[18].mxu1  ;;  %v6318_v43 = vld [vmem:[%s9274_s5 + $0x1f8] ss:$28 sps:$4 sm:$0xff]  }
 0x10d   : > { %v561_v54 = vadd.f32 %v560_v49, %v7365_v28  ;;  %v562_v56 = vpop.f32.mrb[19].mxu0  ;;  %1240 = vmatmul.mubr.bf16.gmra.mrb[44].mxu1 %v745_v33  ;;  %1433 = vmatmul.mubr.bf16.gmra.mrb[44].mxu0 %v745_v33  ;;  %v691_v0 = vmax.f32 %v557_v42, 0.0  ;;  %v723_v31 = vmax.f32 %v637_v13, 0.0  ;;  %v641_v33 = vadd.f32 %v640_v21, %v7365_v28  ;;  %v642_v35 = vpop.f32.mrb[19].mxu1  ;;  %v6330_v21 = vld [vmem:[%s9274_s5 + $0x268] ss:$28 sps:$4 sm:$0xff]  }
 0x10e   : > { %v563_v60 = vadd.f32 %v562_v56, %v7368_v29  ;;  %3599 = vmatpush1.bf16.msra.mxu0 %v6297_v40  ;;  %3213 = vmatpush1.bf16.msra.mxu1 %v6300_v41  ;;  %v692_v5 = vmax.f32 %v559_v48, 0.0  ;;  %v724_v38 = vmax.f32 %v639_v20, 0.0  ;;  %v643_v39 = vadd.f32 %v642_v35, %v7368_v29  ;;  %v6315_v40 = vld [vmem:[%s9274_s5 + $0x200] ss:$28 sps:$4 sm:$0xff]   ;;  %v6326_v48 = vld [vmem:[%s9274_s5 + $0x234] ss:$28 sps:$4 sm:$0xff]  }
 0x10f   : > { %v693_v1 = vmax.f32 %v561_v54, 0.0  ;;  %3600 = vmatprep.subr.bf16.mxu0 %v6305_v46  ;;  %3214 = vmatprep.subr.bf16.mxu1 %v6308_v47  ;;  %v725_v42 = vmax.f32 %v641_v33, 0.0 }
 0x110   : > { %v694_v6 = vmax.f32 %v563_v60, 0.0  ;;  %v726_v47 = vmax.f32 %v643_v39, 0.0 }
 0x111   : > { %v747_v8 = vpack.c.bf16 %v693_v1, %v691_v0  ;;  %v7550_v51 = vpack.c.bf16 %v725_v42, %v723_v31  ;;  %v6338_v31 = vld [vmem:[%s9274_s5 + $0x2a4] ss:$28 sps:$4 sm:$0xff]  }
 0x112   : > { %v566_v11 = vpop.f32.mrb[20].mxu0  ;;  %v748_v2 = vpack.c.bf16 %v694_v6, %v692_v5  ;;  %3601 = vmatpush1.bf16.msra.mxu0 %v6303_v59  ;;  %3215 = vmatpush1.bf16.msra.mxu1 %v6306_v62  ;;  %v7552_v54 = vpack.c.bf16 %v726_v47, %v724_v38  ;;  %v646_v56 = vpop.f32.mrb[20].mxu1  ;;  %v6324_v62 = vld [vmem:[%s9274_s5 + $0x230] ss:$28 sps:$4 sm:$0xff]  }
 0x113   : > { %v567_v18 = vadd.f32 %v566_v11, %v7365_v28  ;;  %v568_v19 = vpop.f32.mrb[21].mxu0  ;;  %3602 = vmatprep.subr.bf16.mxu0 %v6311_v63  ;;  %3216 = vmatprep.subr.bf16.mxu1 %v6314_v4  ;;  %v647_v59 = vadd.f32 %v646_v56, %v7365_v28  ;;  %v648_v60 = vpop.f32.mrb[21].mxu1  ;;  %v6329_v4 = vld [vmem:[%s9274_s5 + $0x274] ss:$28 sps:$4 sm:$0xff]   ;;  %v6332_v5 = vld [vmem:[%s9274_s5 + $0x26c] ss:$28 sps:$4 sm:$0xff]  }
 0x114   : > { %v569_v26 = vadd.f32 %v568_v19, %v7368_v29  ;;  %v570_v30 = vpop.f32.mrb[22].mxu0  ;;  %1249 = vmatprep.mubr.bf16.mxu1 %v748_v2  ;;  %1442 = vmatprep.mubr.bf16.mxu0 %v748_v2  ;;  %v649_v1 = vadd.f32 %v648_v60, %v7368_v29  ;;  %v650_v3 = vpop.f32.mrb[22].mxu1 }
 0x115   : > { %v571_v36 = vadd.f32 %v570_v30, %v7365_v28  ;;  %v572_v37 = vpop.f32.mrb[23].mxu0  ;;  %1250 = vmatmul.mubr.bf16.gmra.mrb[48].mxu1 %v747_v8  ;;  %1443 = vmatmul.mubr.bf16.gmra.mrb[48].mxu0 %v747_v8  ;;  %v695_v45 = vmax.f32 %v567_v18, 0.0  ;;  %v727_v10 = vmax.f32 %v647_v59, 0.0  ;;  %v651_v11 = vadd.f32 %v650_v3, %v7365_v28  ;;  %v652_v2 = vpop.f32.mrb[23].mxu1  ;;  %v6327_v18 = vld [vmem:[%s9274_s5 + $0x270] ss:$28 sps:$4 sm:$0xff]  }
 0x116   : > { %v573_v41 = vadd.f32 %v572_v37, %v7368_v29  ;;  %3603 = vmatpush1.bf16.msra.mxu0 %v6309_v16  ;;  %3217 = vmatpush1.bf16.msra.mxu1 %v6312_v17  ;;  %v696_v49 = vmax.f32 %v569_v26, 0.0  ;;  %v728_v16 = vmax.f32 %v649_v1, 0.0  ;;  %v653_v17 = vadd.f32 %v652_v2, %v7368_v29  ;;  %v6339_v1 = vld [vmem:[%s9274_s5 + $0x2e0] ss:$28 sps:$4 sm:$0xff]   ;;  %v6350_v2 = vld [vmem:[%s9274_s5 + $0x314] ss:$28 sps:$4 sm:$0xff]  }
 0x117   : > { %v697_v46 = vmax.f32 %v571_v36, 0.0  ;;  %3604 = vmatprep.subr.bf16.mxu0 %v6317_v22  ;;  %3218 = vmatprep.subr.bf16.mxu1 %v6320_v23  ;;  %v729_v20 = vmax.f32 %v651_v11, 0.0  ;;  %v6335_v22 = vld [vmem:[%s9274_s5 + $0x2ac] ss:$28 sps:$4 sm:$0xff]  }
 0x118   : > { %v698_v50 = vmax.f32 %v573_v41, 0.0  ;;  %v730_v30 = vmax.f32 %v653_v17, 0.0 }
 0x119   : > { %v749_v52 = vpack.c.bf16 %v697_v46, %v695_v45  ;;  %v7586_v36 = vpack.c.bf16 %v729_v20, %v727_v10  ;;  %v6336_v45 = vld [vmem:[%s9274_s5 + $0x2a0] ss:$28 sps:$4 sm:$0xff]  }
 0x11a   : > { %v576_v57 = vpop.f32.mrb[24].mxu0  ;;  %v750_v58 = vpack.c.bf16 %v698_v50, %v696_v49  ;;  %3605 = vmatpush1.bf16.msra.mxu0 %v6315_v40  ;;  %3219 = vmatpush1.bf16.msra.mxu1 %v6318_v43  ;;  %v7588_v38 = vpack.c.bf16 %v730_v30, %v728_v16  ;;  %v656_v39 = vpop.f32.mrb[24].mxu1  ;;  %v6341_v50 = vld [vmem:[%s9274_s5 + $0x2e4] ss:$28 sps:$4 sm:$0xff]   ;;  %v6345_v30 = vld [vmem:[%s9274_s5 + $0x318] ss:$28 sps:$4 sm:$0xff]  }
 0x11b   : > { %v577_v63 = vadd.f32 %v576_v57, %v7365_v28  ;;  %v578_v0 = vpop.f32.mrb[25].mxu0  ;;  %3606 = vmatprep.subr.bf16.mxu0 %v6323_v44  ;;  %3220 = vmatprep.subr.bf16.mxu1 %v6326_v48  ;;  %v657_v42 = vadd.f32 %v656_v39, %v7365_v28  ;;  %v658_v43 = vpop.f32.mrb[25].mxu1  ;;  %v6333_v44 = vld [vmem:[%s9274_s5 + $0x2a8] ss:$28 sps:$4 sm:$0xff]  }
 0x11c   : > { %v579_v6 = vadd.f32 %v578_v0, %v7368_v29  ;;  %v580_v8 = vpop.f32.mrb[26].mxu0  ;;  %1259 = vmatprep.mubr.bf16.mxu1 %v750_v58  ;;  %1452 = vmatprep.mubr.bf16.mxu0 %v750_v58  ;;  %v659_v48 = vadd.f32 %v658_v43, %v7368_v29  ;;  %v660_v49 = vpop.f32.mrb[26].mxu1 }
 0x11d   : > { %v581_v13 = vadd.f32 %v580_v8, %v7365_v28  ;;  %v582_v15 = vpop.f32.mrb[27].mxu0  ;;  %1260 = vmatmul.mubr.bf16.gmra.mrb[52].mxu1 %v749_v52  ;;  %1453 = vmatmul.mubr.bf16.gmra.mrb[52].mxu0 %v749_v52  ;;  %v699_v23 = vmax.f32 %v577_v63, 0.0  ;;  %v6344_v52 = vld [vmem:[%s9274_s5 + $0x2dc] ss:$28 sps:$4 sm:$0xff]   ;;  %v731_v58 = vmax.f32 %v657_v42, 0.0  ;;  %v661_v59 = vadd.f32 %v660_v49, %v7365_v28  ;;  %v662_v60 = vpop.f32.mrb[27].mxu1 }
 0x11e   : > { %v583_v19 = vadd.f32 %v582_v15, %v7368_v29  ;;  %3607 = vmatpush1.bf16.msra.mxu0 %v6321_v61  ;;  %3221 = vmatpush1.bf16.msra.mxu1 %v6324_v62  ;;  %v700_v33 = vmax.f32 %v579_v6, 0.0  ;;  %v732_v63 = vmax.f32 %v659_v48, 0.0  ;;  %v663_v0 = vadd.f32 %v662_v60, %v7368_v29  ;;  %v6347_v6 = vld [vmem:[%s9274_s5 + $0x31c] ss:$28 sps:$4 sm:$0xff]  }
 0x11f   : > { %v701_v26 = vmax.f32 %v581_v13, 0.0  ;;  %3608 = vmatprep.subr.bf16.mxu0 %v6329_v4  ;;  %3222 = vmatprep.subr.bf16.mxu1 %v6332_v5  ;;  %v733_v4 = vmax.f32 %v661_v59, 0.0  ;;  %v6342_v5 = vld [vmem:[%s9274_s5 + $0x2d8] ss:$28 sps:$4 sm:$0xff]  }
 0x120   : > { %v702_v35 = vmax.f32 %v583_v19, 0.0  ;;  %v734_v11 = vmax.f32 %v663_v0, 0.0 }
 0x121   : > { %v751_v37 = vpack.c.bf16 %v701_v26, %v699_v23  ;;  %v7622_v16 = vpack.c.bf16 %v733_v4, %v731_v58 }
 0x122   : > { %v586_v40 = vpop.f32.mrb[28].mxu0  ;;  %v752_v41 = vpack.c.bf16 %v702_v35, %v700_v33  ;;  %3609 = vmatpush1.bf16.msra.mxu0 %v6327_v18  ;;  %3223 = vmatpush1.bf16.msra.mxu1 %v6330_v21  ;;  %v7624_v18 = vpack.c.bf16 %v734_v11, %v732_v63  ;;  %v666_v19 = vpop.f32.mrb[28].mxu1 }
 0x123   : > { %v587_v46 = vadd.f32 %v586_v40, %v7365_v28  ;;  %v588_v47 = vpop.f32.mrb[29].mxu0  ;;  %3610 = vmatprep.subr.bf16.mxu0 %v6335_v22  ;;  %3224 = vmatprep.subr.bf16.mxu1 %v6338_v31  ;;  %v667_v21 = vadd.f32 %v666_v19, %v7365_v28  ;;  %v668_v22 = vpop.f32.mrb[29].mxu1  ;;  %v6348_v31 = vld [vmem:[%s9274_s5 + $0x310] ss:$28 sps:$4 sm:$0xff]   ;;  %v6360_v19 = vld [vmem:[%s9274_s5 + $0x380] ss:$28 sps:$4 sm:$0xff]  }
 0x124   : > { %v589_v56 = vadd.f32 %v588_v47, %v7368_v29  ;;  %v590_v57 = vpop.f32.mrb[30].mxu0  ;;  %1269 = vmatprep.mubr.bf16.mxu1 %v752_v41  ;;  %1462 = vmatprep.mubr.bf16.mxu0 %v752_v41  ;;  %v669_v23 = vadd.f32 %v668_v22, %v7368_v29  ;;  %v670_v26 = vpop.f32.mrb[30].mxu1 }
 0x125   : > { %v591_v61 = vadd.f32 %v590_v57, %v7365_v28  ;;  %v592_v62 = vpop.f32.mrb[31].mxu0  ;;  %1270 = vmatmul.mubr.bf16.gmra.mrb[56].mxu1 %v751_v37  ;;  %1463 = vmatmul.mubr.bf16.gmra.mrb[56].mxu0 %v751_v37  ;;  %v703_v8 = vmax.f32 %v587_v46, 0.0  ;;  %v735_v33 = vmax.f32 %v667_v21, 0.0  ;;  %v671_v35 = vadd.f32 %v670_v26, %v7365_v28  ;;  %v672_v37 = vpop.f32.mrb[31].mxu1  ;;  %v6353_v28 = vld [vmem:[%s9274_s5 + $0x354] ss:$28 sps:$4 sm:$0xff]  }
 0x126   : > { %v593_v3 = vadd.f32 %v592_v62, %v7368_v29  ;;  %3611 = vmatpush1.bf16.msra.mxu0 %v6333_v44  ;;  %3225 = vmatpush1.bf16.msra.mxu1 %v6336_v45  ;;  %v704_v13 = vmax.f32 %v589_v56, 0.0  ;;  %v736_v39 = vmax.f32 %v669_v23, 0.0  ;;  %v673_v40 = vadd.f32 %v672_v37, %v7368_v29  ;;  %v6356_v29 = vld [vmem:[%s9274_s5 + $0x34c] ss:$28 sps:$4 sm:$0xff]   ;;  %v6365_v26 = vld [vmem:[%s9274_s5 + $0x3c4] ss:$28 sps:$4 sm:$0xff]  }
 0x127   : > { %v705_v10 = vmax.f32 %v591_v61, 0.0  ;;  %3612 = vmatprep.subr.bf16.mxu0 %v6341_v50  ;;  %3226 = vmatprep.subr.bf16.mxu1 %v6344_v52  ;;  %v737_v41 = vmax.f32 %v671_v35, 0.0 }
 0x128   : > { %v706_v15 = vmax.f32 %v593_v3, 0.0  ;;  %v738_v42 = vmax.f32 %v673_v40, 0.0 }
 0x129   : > { %v753_v17 = vpack.c.bf16 %v705_v10, %v703_v8  ;;  %v769_v43 = vpack.c.bf16 %v737_v41, %v735_v33 }
 0x12a   : > { %v754_v20 = vpack.c.bf16 %v706_v15, %v704_v13  ;;  %3613 = vmatpush1.bf16.msra.mxu0 %v6339_v1  ;;  %3227 = vmatpush1.bf16.msra.mxu1 %v6342_v5  ;;  %v770_v44 = vpack.c.bf16 %v738_v42, %v736_v39 }
 0x12b   : > { %3614 = vmatprep.subr.bf16.mxu0 %v6347_v6  ;;  %3228 = vmatprep.subr.bf16.mxu1 %v6350_v2 }
 0x12c   : > { %1279 = vmatprep.mubr.bf16.mxu1 %v754_v20  ;;  %1472 = vmatprep.mubr.bf16.mxu0 %v754_v20 }
 0x12d   : > { %1280 = vmatmul.mubr.bf16.gmra.mrb[60].mxu1 %v753_v17  ;;  %1473 = vmatmul.mubr.bf16.gmra.mrb[60].mxu0 %v753_v17 }
 0x12e   : > { %1289 = vmatprep.mubr.bf16.mxu1 %v7408_v14  ;;  %1482 = vmatprep.mubr.bf16.mxu0 %v7408_v14  ;;  %v6354_v14 = vld [vmem:[%s9274_s5 + $0x348] ss:$28 sps:$4 sm:$0xff]  }
 0x12f   : > { %3615 = vmatpush1.bf16.msra.mxu0 %v6345_v30  ;;  %3229 = vmatpush1.bf16.msra.mxu1 %v6348_v31  ;;  %v6368_v30 = vld [vmem:[%s9274_s5 + $0x3bc] ss:$28 sps:$4 sm:$0xff]  }
 0x130   : > { %3616 = vmatprep.subr.bf16.mxu0 %v6353_v28  ;;  %3230 = vmatprep.subr.bf16.mxu1 %v6356_v29  ;;  %v6363_v28 = vld [vmem:[%s9274_s5 + $0x3c0] ss:$28 sps:$4 sm:$0xff]   ;;  %v6366_v29 = vld [vmem:[%s9274_s5 + $0x3b8] ss:$28 sps:$4 sm:$0xff]  }
 0x133   : > { %3231 = vmatpush1.bf16.msra.mxu1 %v6354_v14 }
 0x135   : > { %1290 = vmatmul.mubr.bf16.gmra.mrb[64].mxu1 %v7406_v12  ;;  %1483 = vmatmul.mubr.bf16.gmra.mrb[64].mxu0 %v7406_v12  ;;  %v6351_v12 = vld [vmem:[%s9274_s5 + $0x350] ss:$28 sps:$4 sm:$0xff]  }
 0x136   : > { %1299 = vmatprep.mubr.bf16.mxu1 %v7444_v55  ;;  %1492 = vmatprep.mubr.bf16.mxu0 %v7444_v55  ;;  %v6362_v55 = vld [vmem:[%s9274_s5 + $0x384] ss:$28 sps:$4 sm:$0xff]  }
 0x137   : > { %3617 = vmatpush1.bf16.msra.mxu0 %v6351_v12  ;;  %3393 = vmatprep.subr.bf16.mxu1 %v6362_v55  ;;  %v6371_v12 = vld [vmem:[%s9274_s5 + $0x3fc] ss:$28 sps:$4 sm:$0xff]  }
 0x13d   : > { %1300 = vmatmul.mubr.bf16.gmra.mrb[68].mxu1 %v7442_v53  ;;  %1493 = vmatmul.mubr.bf16.gmra.mrb[68].mxu0 %v7442_v53  ;;  %v6359_v53 = vld [vmem:[%s9274_s5 + $0x38c] ss:$28 sps:$4 sm:$0xff]  }
 0x13e   : > { %1309 = vmatprep.mubr.bf16.mxu1 %v7480_v34  ;;  %1502 = vmatprep.mubr.bf16.mxu0 %v7480_v34  ;;  %v835_v34 = vld [vmem:[%s9273_s4] sm:$0xf] }
 0x13f   : > { %3779 = vmatprep.subr.bf16.mxu0 %v6359_v53 }
 0x145   : > { %1310 = vmatmul.mubr.bf16.gmra.mrb[72].mxu1 %v7478_v32  ;;  %1503 = vmatmul.mubr.bf16.gmra.mrb[72].mxu0 %v7478_v32  ;;  %v9278_v32 = vsub.s32 2, %v7353_v24 }
 0x146   : > { %1319 = vmatprep.mubr.bf16.mxu1 %v7516_v9  ;;  %1512 = vmatprep.mubr.bf16.mxu0 %v7516_v9  ;;  %v7688_v9 = vrot.slane %v835_v34, %v7356_v25 }
 0x14d   : > { %1320 = vmatmul.mubr.bf16.gmra.mrb[76].mxu1 %v7514_v7  ;;  %1513 = vmatmul.mubr.bf16.gmra.mrb[76].mxu0 %v7514_v7  ;;  %v9277_v7 = vsub.s32 3, %v7353_v24 }
 0x14e   : > { %1329 = vmatprep.mubr.bf16.mxu1 %v7552_v54  ;;  %1522 = vmatprep.mubr.bf16.mxu0 %v7552_v54  ;;  %v7695_v54 = vrot.slane %v835_v34, %v7362_v27 }
 0x155   : > { %1330 = vmatmul.mubr.bf16.gmra.mrb[80].mxu1 %v7550_v51  ;;  %1523 = vmatmul.mubr.bf16.gmra.mrb[80].mxu0 %v7550_v51  ;;  %v7692_v51 = vrot.slane %v835_v34, %v9278_v32 }
 0x156   : > { %1339 = vmatprep.mubr.bf16.mxu1 %v7588_v38  ;;  %1532 = vmatprep.mubr.bf16.mxu0 %v7588_v38 }
 0x15d   : > { %1340 = vmatmul.mubr.bf16.gmra.mrb[84].mxu1 %v7586_v36  ;;  %1533 = vmatmul.mubr.bf16.gmra.mrb[84].mxu0 %v7586_v36  ;;  %v7699_v36 = vrot.slane %v835_v34, %v9277_v7 }
 0x15e   : > { %1349 = vmatprep.mubr.bf16.mxu1 %v7624_v18  ;;  %1542 = vmatprep.mubr.bf16.mxu0 %v7624_v18  ;;  %v6357_v18 = vld [vmem:[%s9274_s5 + $0x388] ss:$28 sps:$4 sm:$0xff]  }
 0x165   : > { %1350 = vmatmul.mubr.bf16.gmra.mrb[88].mxu1 %v7622_v16  ;;  %1543 = vmatmul.mubr.bf16.gmra.mrb[88].mxu0 %v7622_v16 }
 0x166   : > { %1359 = vmatprep.mubr.bf16.mxu1 %v770_v44  ;;  %1552 = vmatprep.mubr.bf16.mxu0 %v770_v44 }
 0x16d   : > { %1360 = vmatmul.mubr.bf16.gmra.mrb[92].mxu1 %v769_v43  ;;  %1553 = vmatmul.mubr.bf16.gmra.mrb[92].mxu0 %v769_v43 }
 0x1c8   : > { %v1211_v38 = vpop.f32.mrb[32].mxu1  ;;  %v1404_v45 = vpop.f32.mrb[32].mxu0 }
 0x1c9   : > { %v1212_v46 = vadd.f32 %v1211_v38, %v7688_v9  ;;  %v1405_v47 = vadd.f32 %v1404_v45, %v7692_v51  ;;  %v1213_v48 = vpop.f32.mrb[33].mxu1  ;;  %v1406_v49 = vpop.f32.mrb[33].mxu0  ;;  %v6374_v38 = vld [vmem:[%s9274_s5 + $0x3f4] ss:$28 sps:$4 sm:$0xff]  }
 0x1ca   : > { %v1214_v50 = vadd.f32 %v1213_v48, %v7695_v54  ;;  %v1407_v52 = vadd.f32 %v1406_v49, %v7699_v36  ;;  %v1215_v56 = vpop.f32.mrb[34].mxu1  ;;  %v1408_v57 = vpop.f32.mrb[34].mxu0 }
 0x1cb   : > { %v1216_v58 = vadd.f32 %v1215_v56, %v7688_v9  ;;  %v1409_v59 = vadd.f32 %v1408_v57, %v7692_v51  ;;  %v1217_v60 = vpop.f32.mrb[35].mxu1  ;;  %v1410_v61 = vpop.f32.mrb[35].mxu0  ;;  %v1563_v0 = vmax.f32 %v1212_v46, 0.0  ;;  %v1565_v1 = vmax.f32 %v1405_v47, 0.0 }
 0x1cc   : > { %v1218_v62 = vadd.f32 %v1217_v60, %v7695_v54  ;;  %v1411_v63 = vadd.f32 %v1410_v61, %v7699_v36  ;;  %v1564_v5 = vmax.f32 %v1214_v50, 0.0  ;;  %v1566_v6 = vmax.f32 %v1407_v52, 0.0  ;;  %v6372_v60 = vld [vmem:[%s9274_s5 + $0x3f0] ss:$28 sps:$4 sm:$0xff]  }
 0x1cd   : > { %v1567_v3 = vmax.f32 %v1216_v58, 0.0  ;;  %v1569_v4 = vmax.f32 %v1409_v59, 0.0  ;;  %v6369_v59 = vld [vmem:[%s9274_s5 + $0x3f8] ss:$28 sps:$4 sm:$0xff]  }
 0x1ce   : > { %v1568_v8 = vmax.f32 %v1218_v62, 0.0  ;;  %v1570_v10 = vmax.f32 %v1411_v63, 0.0 }
 0x1cf   : > { %v7709_v11 = vpack.c.bf16 %v1567_v3, %v1563_v0  ;;  %v7711_v2 = vpack.c.bf16 %v1569_v4, %v1565_v1  ;;  %v6377_v1 = vld [vmem:[%s9274_s5 + $0x434] ss:$28 sps:$4 sm:$0xff]   ;;  %v6380_v3 = vld [vmem:[%s9274_s5 + $0x42c] ss:$28 sps:$4 sm:$0xff]  }
 0x1d0   : > { %v7713_v13 = vpack.c.bf16 %v1568_v8, %v1564_v5  ;;  %v7715_v15 = vpack.c.bf16 %v1570_v10, %v1566_v6  ;;  %v1221_v16 = vpop.f32.mrb[36].mxu1  ;;  %v1414_v17 = vpop.f32.mrb[36].mxu0 }
 0x1d1   : > { %v1222_v20 = vadd.f32 %v1221_v16, %v7688_v9  ;;  %v1415_v21 = vadd.f32 %v1414_v17, %v7692_v51  ;;  %v1223_v22 = vpop.f32.mrb[37].mxu1  ;;  %v1416_v23 = vpop.f32.mrb[37].mxu0 }
 0x1d2   : > { %v1224_v31 = vadd.f32 %v1223_v22, %v7695_v54  ;;  %v1417_v33 = vadd.f32 %v1416_v23, %v7699_v36  ;;  %v1225_v35 = vpop.f32.mrb[38].mxu1  ;;  %v1418_v37 = vpop.f32.mrb[38].mxu0  ;;  %3232 = vmatprep.mubr.bf16.mxu1 %v7713_v13  ;;  %3618 = vmatprep.mubr.bf16.mxu0 %v7713_v13  ;;  %v6378_v22 = vld [vmem:[%s9274_s5 + $0x428] ss:$28 sps:$4 sm:$0xff]  }
 0x1d3   : > { %v1226_v39 = vadd.f32 %v1225_v35, %v7688_v9  ;;  %v1419_v40 = vadd.f32 %v1418_v37, %v7692_v51  ;;  %v1227_v41 = vpop.f32.mrb[39].mxu1  ;;  %v1420_v42 = vpop.f32.mrb[39].mxu0  ;;  %3233 = vmatmul.mubr.bf16.vlgmr.msra.gmra.mrb[96].mxu1 %v7709_v11  ;;  %3619 = vmatmul.mubr.bf16.vlgmr.msra.gmra.mrb[96].mxu0 %v7709_v11  ;;  %v1571_v14 = vmax.f32 %v1222_v20, 0.0  ;;  %v1573_v53 = vmax.f32 %v1415_v21, 0.0  ;;  %v6375_v21 = vld [vmem:[%s9274_s5 + $0x430] ss:$28 sps:$4 sm:$0xff]  }
 0x1d4   : > { %v1228_v43 = vadd.f32 %v1227_v41, %v7695_v54  ;;  %v1421_v44 = vadd.f32 %v1420_v42, %v7699_v36  ;;  %3780 = vmatpush1.bf16.msra.mxu0 %v6357_v18  ;;  %3394 = vmatpush1.bf16.msra.mxu1 %v6360_v19  ;;  %v1572_v45 = vmax.f32 %v1224_v31, 0.0  ;;  %v1574_v46 = vmax.f32 %v1417_v33, 0.0  ;;  %v6383_v23 = vld [vmem:[%s9274_s5 + $0x46c] ss:$28 sps:$4 sm:$0xff]   ;;  %v6386_v35 = vld [vmem:[%s9274_s5 + $0x464] ss:$28 sps:$4 sm:$0xff]  }
 0x1d5   : > { %v1575_v55 = vmax.f32 %v1226_v39, 0.0  ;;  %v1577_v34 = vmax.f32 %v1419_v40, 0.0  ;;  %3781 = vmatprep.subr.bf16.mxu0 %v6365_v26  ;;  %3395 = vmatprep.subr.bf16.mxu1 %v6368_v30 }
 0x1d6   : > { %v1576_v47 = vmax.f32 %v1228_v43, 0.0  ;;  %v1578_v48 = vmax.f32 %v1421_v44, 0.0 }
 0x1d7   : > { %v7753_v49 = vpack.c.bf16 %v1575_v55, %v1571_v14  ;;  %v7755_v50 = vpack.c.bf16 %v1577_v34, %v1573_v53  ;;  %v6381_v14 = vld [vmem:[%s9274_s5 + $0x468] ss:$28 sps:$4 sm:$0xff]   ;;  %v6384_v53 = vld [vmem:[%s9274_s5 + $0x460] ss:$28 sps:$4 sm:$0xff]  }
 0x1d8   : > { %v7757_v52 = vpack.c.bf16 %v1576_v47, %v1572_v45  ;;  %v7759_v56 = vpack.c.bf16 %v1578_v48, %v1574_v46  ;;  %v1231_v57 = vpop.f32.mrb[40].mxu1  ;;  %v1424_v58 = vpop.f32.mrb[40].mxu0  ;;  %3782 = vmatpush1.bf16.msra.mxu0 %v6363_v28  ;;  %3396 = vmatpush1.bf16.msra.mxu1 %v6366_v29  ;;  %v6389_v46 = vld [vmem:[%s9274_s5 + $0x4a4] ss:$28 sps:$4 sm:$0xff]   ;;  %v6392_v47 = vld [vmem:[%s9274_s5 + $0x49c] ss:$28 sps:$4 sm:$0xff]  }
 0x1d9   : > { %v1232_v61 = vadd.f32 %v1231_v57, %v7688_v9  ;;  %v1425_v62 = vadd.f32 %v1424_v58, %v7692_v51  ;;  %v1233_v63 = vpop.f32.mrb[41].mxu1  ;;  %v1426_v0 = vpop.f32.mrb[41].mxu0  ;;  %3783 = vmatprep.subr.bf16.mxu0 %v6371_v12  ;;  %3397 = vmatprep.subr.bf16.mxu1 %v6374_v38 }
 0x1da   : > { %v1234_v4 = vadd.f32 %v1233_v63, %v7695_v54  ;;  %v1427_v5 = vadd.f32 %v1426_v0, %v7699_v36  ;;  %v1235_v6 = vpop.f32.mrb[42].mxu1  ;;  %v1428_v8 = vpop.f32.mrb[42].mxu0  ;;  %3242 = vmatprep.mubr.bf16.mxu1 %v7757_v52  ;;  %3628 = vmatprep.mubr.bf16.mxu0 %v7757_v52 }
 0x1db   : > { %v1236_v10 = vadd.f32 %v1235_v6, %v7688_v9  ;;  %v1429_v16 = vadd.f32 %v1428_v8, %v7692_v51  ;;  %v1237_v17 = vpop.f32.mrb[43].mxu1  ;;  %v1430_v18 = vpop.f32.mrb[43].mxu0  ;;  %3243 = vmatmul.mubr.bf16.gmra.mrb[100].mxu1 %v7753_v49  ;;  %3629 = vmatmul.mubr.bf16.gmra.mrb[100].mxu0 %v7753_v49  ;;  %v1579_v26 = vmax.f32 %v1232_v61, 0.0  ;;  %v1581_v30 = vmax.f32 %v1425_v62, 0.0 }
 0x1dc   : > { %v1238_v19 = vadd.f32 %v1237_v17, %v7695_v54  ;;  %v1431_v20 = vadd.f32 %v1430_v18, %v7699_v36  ;;  %3784 = vmatpush1.bf16.msra.mxu0 %v6369_v59  ;;  %3398 = vmatpush1.bf16.msra.mxu1 %v6372_v60  ;;  %v1580_v37 = vmax.f32 %v1234_v4, 0.0  ;;  %v1582_v39 = vmax.f32 %v1427_v5, 0.0  ;;  %v6390_v4 = vld [vmem:[%s9274_s5 + $0x498] ss:$28 sps:$4 sm:$0xff]  }
 0x1dd   : > { %v1583_v31 = vmax.f32 %v1236_v10, 0.0  ;;  %v1585_v33 = vmax.f32 %v1429_v16, 0.0  ;;  %3785 = vmatprep.subr.bf16.mxu0 %v6377_v1  ;;  %3399 = vmatprep.subr.bf16.mxu1 %v6380_v3  ;;  %v6387_v3 = vld [vmem:[%s9274_s5 + $0x4a0] ss:$28 sps:$4 sm:$0xff]   ;;  %v6398_v17 = vld [vmem:[%s9274_s5 + $0x4d4] ss:$28 sps:$4 sm:$0xff]  }
 0x1de   : > { %v1584_v40 = vmax.f32 %v1238_v19, 0.0  ;;  %v1586_v41 = vmax.f32 %v1431_v20, 0.0  ;;  %v6395_v5 = vld [vmem:[%s9274_s5 + $0x4dc] ss:$28 sps:$4 sm:$0xff]  }
 0x1df   : > { %v7797_v42 = vpack.c.bf16 %v1583_v31, %v1579_v26  ;;  %v7799_v43 = vpack.c.bf16 %v1585_v33, %v1581_v30 }
 0x1e0   : > { %v7801_v44 = vpack.c.bf16 %v1584_v40, %v1580_v37  ;;  %v7803_v28 = vpack.c.bf16 %v1586_v41, %v1582_v39  ;;  %v1241_v29 = vpop.f32.mrb[44].mxu1  ;;  %v1434_v12 = vpop.f32.mrb[44].mxu0  ;;  %3786 = vmatpush1.bf16.msra.mxu0 %v6375_v21  ;;  %3400 = vmatpush1.bf16.msra.mxu1 %v6378_v22  ;;  %v6396_v37 = vld [vmem:[%s9274_s5 + $0x4d0] ss:$28 sps:$4 sm:$0xff]  }
 0x1e1   : > { %v1242_v55 = vadd.f32 %v1241_v29, %v7688_v9  ;;  %v1435_v34 = vadd.f32 %v1434_v12, %v7692_v51  ;;  %v1243_v38 = vpop.f32.mrb[45].mxu1  ;;  %v1436_v45 = vpop.f32.mrb[45].mxu0  ;;  %3787 = vmatprep.subr.bf16.mxu0 %v6383_v23  ;;  %3401 = vmatprep.subr.bf16.mxu1 %v6386_v35  ;;  %v6393_v35 = vld [vmem:[%s9274_s5 + $0x4d8] ss:$28 sps:$4 sm:$0xff]  }
 0x1e2   : > { %v1244_v48 = vadd.f32 %v1243_v38, %v7695_v54  ;;  %v1437_v57 = vadd.f32 %v1436_v45, %v7699_v36  ;;  %v1245_v58 = vpop.f32.mrb[46].mxu1  ;;  %v1438_v59 = vpop.f32.mrb[46].mxu0  ;;  %3252 = vmatprep.mubr.bf16.mxu1 %v7801_v44  ;;  %3638 = vmatprep.mubr.bf16.mxu0 %v7801_v44  ;;  %v6401_v12 = vld [vmem:[%s9274_s5 + $0x514] ss:$28 sps:$4 sm:$0xff]  }
 0x1e3   : > { %v1246_v60 = vadd.f32 %v1245_v58, %v7688_v9  ;;  %v1439_v61 = vadd.f32 %v1438_v59, %v7692_v51  ;;  %v1247_v62 = vpop.f32.mrb[47].mxu1  ;;  %v1440_v63 = vpop.f32.mrb[47].mxu0  ;;  %3253 = vmatmul.mubr.bf16.gmra.mrb[104].mxu1 %v7797_v42  ;;  %3639 = vmatmul.mubr.bf16.gmra.mrb[104].mxu0 %v7797_v42  ;;  %v1587_v6 = vmax.f32 %v1242_v55, 0.0  ;;  %v1589_v8 = vmax.f32 %v1435_v34, 0.0  ;;  %v6399_v59 = vld [vmem:[%s9274_s5 + $0x510] ss:$28 sps:$4 sm:$0xff]  }
 0x1e4   : > { %v1248_v0 = vadd.f32 %v1247_v62, %v7695_v54  ;;  %v1441_v1 = vadd.f32 %v1440_v63, %v7699_v36  ;;  %3788 = vmatpush1.bf16.msra.mxu0 %v6381_v14  ;;  %3402 = vmatpush1.bf16.msra.mxu1 %v6384_v53  ;;  %v1588_v18 = vmax.f32 %v1244_v48, 0.0  ;;  %v1590_v19 = vmax.f32 %v1437_v57, 0.0  ;;  %v6404_v14 = vld [vmem:[%s9274_s5 + $0x50c] ss:$28 sps:$4 sm:$0xff]  }
 0x1e5   : > { %v1591_v10 = vmax.f32 %v1246_v60, 0.0  ;;  %v1593_v16 = vmax.f32 %v1439_v61, 0.0  ;;  %3789 = vmatprep.subr.bf16.mxu0 %v6389_v46  ;;  %3403 = vmatprep.subr.bf16.mxu1 %v6392_v47  ;;  %v6402_v60 = vld [vmem:[%s9274_s5 + $0x508] ss:$28 sps:$4 sm:$0xff]  }
 0x1e6   : > { %v1592_v20 = vmax.f32 %v1248_v0, 0.0  ;;  %v1594_v21 = vmax.f32 %v1441_v1, 0.0  ;;  %v6407_v61 = vld [vmem:[%s9274_s5 + $0x54c] ss:$28 sps:$4 sm:$0xff]  }
 0x1e7   : > { %v7841_v22 = vpack.c.bf16 %v1591_v10, %v1587_v6  ;;  %v7843_v23 = vpack.c.bf16 %v1593_v16, %v1589_v8 }
 0x1e8   : > { %v7845_v26 = vpack.c.bf16 %v1592_v20, %v1588_v18  ;;  %v7847_v30 = vpack.c.bf16 %v1594_v21, %v1590_v19  ;;  %v1251_v31 = vpop.f32.mrb[48].mxu1  ;;  %v1444_v33 = vpop.f32.mrb[48].mxu0  ;;  %3790 = vmatpush1.bf16.msra.mxu0 %v6387_v3  ;;  %3404 = vmatpush1.bf16.msra.mxu1 %v6390_v4  ;;  %v6410_v3 = vld [vmem:[%s9274_s5 + $0x544] ss:$28 sps:$4 sm:$0xff]  }
 0x1e9   : > { %v1252_v39 = vadd.f32 %v1251_v31, %v7688_v9  ;;  %v1445_v40 = vadd.f32 %v1444_v33, %v7692_v51  ;;  %v1253_v41 = vpop.f32.mrb[49].mxu1  ;;  %v1446_v29 = vpop.f32.mrb[49].mxu0  ;;  %3791 = vmatprep.subr.bf16.mxu0 %v6395_v5  ;;  %3405 = vmatprep.subr.bf16.mxu1 %v6398_v17  ;;  %v6405_v21 = vld [vmem:[%s9274_s5 + $0x548] ss:$28 sps:$4 sm:$0xff]   ;;  %v6408_v31 = vld [vmem:[%s9274_s5 + $0x540] ss:$28 sps:$4 sm:$0xff]  }
 0x1ea   : > { %v1254_v53 = vadd.f32 %v1253_v41, %v7695_v54  ;;  %v1447_v55 = vadd.f32 %v1446_v29, %v7699_v36  ;;  %v1255_v34 = vpop.f32.mrb[50].mxu1  ;;  %v1448_v38 = vpop.f32.mrb[50].mxu0  ;;  %3262 = vmatprep.mubr.bf16.mxu1 %v7845_v26  ;;  %3648 = vmatprep.mubr.bf16.mxu0 %v7845_v26  ;;  %v6416_v41 = vld [vmem:[%s9274_s5 + $0x57c] ss:$28 sps:$4 sm:$0xff]  }
 0x1eb   : > { %v1256_v45 = vadd.f32 %v1255_v34, %v7688_v9  ;;  %v1449_v46 = vadd.f32 %v1448_v38, %v7692_v51  ;;  %v1257_v47 = vpop.f32.mrb[51].mxu1  ;;  %v1450_v48 = vpop.f32.mrb[51].mxu0  ;;  %3263 = vmatmul.mubr.bf16.gmra.mrb[108].mxu1 %v7841_v22  ;;  %3649 = vmatmul.mubr.bf16.gmra.mrb[108].mxu0 %v7841_v22  ;;  %v1595_v62 = vmax.f32 %v1252_v39, 0.0  ;;  %v1597_v63 = vmax.f32 %v1445_v40, 0.0  ;;  %v6413_v40 = vld [vmem:[%s9274_s5 + $0x584] ss:$28 sps:$4 sm:$0xff]  }
 0x1ec   : > { %v1258_v57 = vadd.f32 %v1257_v47, %v7695_v54  ;;  %v1451_v58 = vadd.f32 %v1450_v48, %v7699_v36  ;;  %3792 = vmatpush1.bf16.msra.mxu0 %v6393_v35  ;;  %3406 = vmatpush1.bf16.msra.mxu1 %v6396_v37  ;;  %v1596_v4 = vmax.f32 %v1254_v53, 0.0  ;;  %v1598_v5 = vmax.f32 %v1447_v55, 0.0  ;;  %v6411_v48 = vld [vmem:[%s9274_s5 + $0x580] ss:$28 sps:$4 sm:$0xff]  }
 0x1ed   : > { %v1599_v0 = vmax.f32 %v1256_v45, 0.0  ;;  %v1601_v1 = vmax.f32 %v1449_v46, 0.0  ;;  %3793 = vmatprep.subr.bf16.mxu0 %v6401_v12  ;;  %3407 = vmatprep.subr.bf16.mxu1 %v6404_v14 }
 0x1ee   : > { %v1600_v6 = vmax.f32 %v1258_v57, 0.0  ;;  %v1602_v8 = vmax.f32 %v1451_v58, 0.0  ;;  %v6414_v57 = vld [vmem:[%s9274_s5 + $0x578] ss:$28 sps:$4 sm:$0xff]  }
 0x1ef   : > { %v7885_v10 = vpack.c.bf16 %v1599_v0, %v1595_v62  ;;  %v7887_v16 = vpack.c.bf16 %v1601_v1, %v1597_v63  ;;  %v6419_v58 = vld [vmem:[%s9274_s5 + $0x5bc] ss:$28 sps:$4 sm:$0xff]   ;;  %v6422_v63 = vld [vmem:[%s9274_s5 + $0x5b4] ss:$28 sps:$4 sm:$0xff]  }
 0x1f0   : > { %v7889_v17 = vpack.c.bf16 %v1600_v6, %v1596_v4  ;;  %v7891_v18 = vpack.c.bf16 %v1602_v8, %v1598_v5  ;;  %v1261_v19 = vpop.f32.mrb[52].mxu1  ;;  %v1454_v20 = vpop.f32.mrb[52].mxu0  ;;  %3794 = vmatpush1.bf16.msra.mxu0 %v6399_v59  ;;  %3408 = vmatpush1.bf16.msra.mxu1 %v6402_v60 }
 0x1f1   : > { %9326 = vst [vmem:[#allocation5_spill] sm:$0xff] %v7885_v10  ;;  %v1262_v33 = vadd.f32 %v1261_v19, %v7688_v9  ;;  %v1455_v35 = vadd.f32 %v1454_v20, %v7692_v51  ;;  %v1263_v37 = vpop.f32.mrb[53].mxu1  ;;  %v1456_v39 = vpop.f32.mrb[53].mxu0  ;;  %3795 = vmatprep.subr.bf16.mxu0 %v6407_v61  ;;  %3409 = vmatprep.subr.bf16.mxu1 %v6410_v3 }
 0x1f2   : > { %v1264_v29 = vadd.f32 %v1263_v37, %v7695_v54  ;;  %v1457_v12 = vadd.f32 %v1456_v39, %v7699_v36  ;;  %v1265_v14 = vpop.f32.mrb[54].mxu1  ;;  %v1458_v53 = vpop.f32.mrb[54].mxu0  ;;  %3272 = vmatprep.mubr.bf16.mxu1 %v7889_v17  ;;  %3658 = vmatprep.mubr.bf16.mxu0 %v7889_v17 }
 0x1f3   : > { %v1266_v55 = vadd.f32 %v1265_v14, %v7688_v9  ;;  %v1459_v34 = vadd.f32 %v1458_v53, %v7692_v51  ;;  %v1267_v38 = vpop.f32.mrb[55].mxu1  ;;  %v1460_v45 = vpop.f32.mrb[55].mxu0  ;;  %3273 = vmatmul.mubr.bf16.gmra.mrb[112].mxu1 %v7885_v10  ;;  %3659 = vmatmul.mubr.bf16.gmra.mrb[112].mxu0 %v7885_v10  ;;  %v1603_v59 = vmax.f32 %v1262_v33, 0.0  ;;  %v1605_v60 = vmax.f32 %v1455_v35, 0.0  ;;  %v6420_v33 = vld [vmem:[%s9274_s5 + $0x5b0] ss:$28 sps:$4 sm:$0xff]  }
 0x1f4   : > { %v1268_v46 = vadd.f32 %v1267_v38, %v7695_v54  ;;  %v1461_v47 = vadd.f32 %v1460_v45, %v7699_v36  ;;  %3796 = vmatpush1.bf16.msra.mxu0 %v6405_v21  ;;  %3410 = vmatpush1.bf16.msra.mxu1 %v6408_v31  ;;  %v1604_v0 = vmax.f32 %v1264_v29, 0.0  ;;  %v1606_v1 = vmax.f32 %v1457_v12, 0.0  ;;  %v6417_v31 = vld [vmem:[%s9274_s5 + $0x5b8] ss:$28 sps:$4 sm:$0xff]   ;;  %v6428_v29 = vld [vmem:[%s9274_s5 + $0x5ec] ss:$28 sps:$4 sm:$0xff]  }
 0x1f5   : > { %v1607_v61 = vmax.f32 %v1266_v55, 0.0  ;;  %v1609_v62 = vmax.f32 %v1459_v34, 0.0  ;;  %3797 = vmatprep.subr.bf16.mxu0 %v6413_v40  ;;  %3411 = vmatprep.subr.bf16.mxu1 %v6416_v41  ;;  %v6425_v41 = vld [vmem:[%s9274_s5 + $0x5f4] ss:$28 sps:$4 sm:$0xff]  }
 0x1f6   : > { %v1608_v3 = vmax.f32 %v1268_v46, 0.0  ;;  %v1610_v4 = vmax.f32 %v1461_v47, 0.0 }
 0x1f7   : > { %v7929_v5 = vpack.c.bf16 %v1607_v61, %v1603_v59  ;;  %v7931_v6 = vpack.c.bf16 %v1609_v62, %v1605_v60  ;;  %v6431_v59 = vld [vmem:[%s9274_s5 + $0x62c] ss:$28 sps:$4 sm:$0xff]  }
 0x1f8   : > { %v7933_v8 = vpack.c.bf16 %v1608_v3, %v1604_v0  ;;  %v7935_v19 = vpack.c.bf16 %v1610_v4, %v1606_v1  ;;  %v1271_v20 = vpop.f32.mrb[56].mxu1  ;;  %v1464_v21 = vpop.f32.mrb[56].mxu0  ;;  %3798 = vmatpush1.bf16.msra.mxu0 %v6411_v48  ;;  %3412 = vmatpush1.bf16.msra.mxu1 %v6414_v57  ;;  %v6423_v57 = vld [vmem:[%s9274_s5 + $0x5f0] ss:$28 sps:$4 sm:$0xff]   ;;  %v6434_v0 = vld [vmem:[%s9274_s5 + $0x624] ss:$28 sps:$4 sm:$0xff]  }
 0x1f9   : > { %9327 = vst [vmem:[#allocation6_spill] sm:$0xff] %v7929_v5  ;;  %v1272_v35 = vadd.f32 %v1271_v20, %v7688_v9  ;;  %v1465_v37 = vadd.f32 %v1464_v21, %v7692_v51  ;;  %v1273_v39 = vpop.f32.mrb[57].mxu1  ;;  %v1466_v40 = vpop.f32.mrb[57].mxu0  ;;  %3799 = vmatprep.subr.bf16.mxu0 %v6419_v58  ;;  %3413 = vmatprep.subr.bf16.mxu1 %v6422_v63  ;;  %v6426_v58 = vld [vmem:[%s9274_s5 + $0x5e8] ss:$28 sps:$4 sm:$0xff]  }
 0x1fa   : > { %9328 = vst [vmem:[#allocation7_spill] sm:$0xff] %v7933_v8  ;;  %v1274_v12 = vadd.f32 %v1273_v39, %v7695_v54  ;;  %v1467_v14 = vadd.f32 %v1466_v40, %v7699_v36  ;;  %v1275_v53 = vpop.f32.mrb[58].mxu1  ;;  %v1468_v55 = vpop.f32.mrb[58].mxu0  ;;  %3282 = vmatprep.mubr.bf16.mxu1 %v7933_v8  ;;  %3668 = vmatprep.mubr.bf16.mxu0 %v7933_v8  ;;  %v6429_v40 = vld [vmem:[%s9274_s5 + $0x628] ss:$28 sps:$4 sm:$0xff]  }
 0x1fb   : > { %v1276_v34 = vadd.f32 %v1275_v53, %v7688_v9  ;;  %v1469_v38 = vadd.f32 %v1468_v55, %v7692_v51  ;;  %v1277_v45 = vpop.f32.mrb[59].mxu1  ;;  %v1470_v46 = vpop.f32.mrb[59].mxu0  ;;  %3283 = vmatmul.mubr.bf16.gmra.mrb[116].mxu1 %v7929_v5  ;;  %3669 = vmatmul.mubr.bf16.gmra.mrb[116].mxu0 %v7929_v5  ;;  %v1611_v60 = vmax.f32 %v1272_v35, 0.0  ;;  %v1613_v61 = vmax.f32 %v1465_v37, 0.0  ;;  %v6437_v55 = vld [vmem:[%s9274_s5 + $0x664] ss:$28 sps:$4 sm:$0xff]  }
 0x1fc   : > { %v1278_v47 = vadd.f32 %v1277_v45, %v7695_v54  ;;  %v1471_v48 = vadd.f32 %v1470_v46, %v7699_v36  ;;  %3800 = vmatpush1.bf16.msra.mxu0 %v6417_v31  ;;  %3414 = vmatpush1.bf16.msra.mxu1 %v6420_v33  ;;  %v1612_v1 = vmax.f32 %v1274_v12, 0.0  ;;  %v1614_v3 = vmax.f32 %v1467_v14, 0.0 }
 0x1fd   : > { %v1615_v62 = vmax.f32 %v1276_v34, 0.0  ;;  %v1617_v63 = vmax.f32 %v1469_v38, 0.0  ;;  %3801 = vmatprep.subr.bf16.mxu0 %v6425_v41  ;;  %3415 = vmatprep.subr.bf16.mxu1 %v6428_v29  ;;  %v6432_v41 = vld [vmem:[%s9274_s5 + $0x620] ss:$28 sps:$4 sm:$0xff]  }
 0x1fe   : > { %v1616_v4 = vmax.f32 %v1278_v47, 0.0  ;;  %v1618_v20 = vmax.f32 %v1471_v48, 0.0  ;;  %v6440_v34 = vld [vmem:[%s9274_s5 + $0x65c] ss:$28 sps:$4 sm:$0xff]  }
 0x1ff   : > { %v7973_v21 = vpack.c.bf16 %v1615_v62, %v1611_v60  ;;  %v7975_v31 = vpack.c.bf16 %v1617_v63, %v1613_v61  ;;  %v6435_v62 = vld [vmem:[%s9274_s5 + $0x660] ss:$28 sps:$4 sm:$0xff]   ;;  %v6438_v63 = vld [vmem:[%s9274_s5 + $0x658] ss:$28 sps:$4 sm:$0xff]  }
 0x200   : > { %v7977_v33 = vpack.c.bf16 %v1616_v4, %v1612_v1  ;;  %v7979_v35 = vpack.c.bf16 %v1618_v20, %v1614_v3  ;;  %v1281_v37 = vpop.f32.mrb[60].mxu1  ;;  %v1474_v39 = vpop.f32.mrb[60].mxu0  ;;  %3802 = vmatpush1.bf16.msra.mxu0 %v6423_v57  ;;  %3416 = vmatpush1.bf16.msra.mxu1 %v6426_v58 }
 0x201   : > { %9329 = vst [vmem:[#allocation8_spill] sm:$0xff] %v7973_v21  ;;  %v1282_v29 = vadd.f32 %v1281_v37, %v7688_v9  ;;  %v1475_v12 = vadd.f32 %v1474_v39, %v7692_v51  ;;  %v1283_v14 = vpop.f32.mrb[61].mxu1  ;;  %v1476_v53 = vpop.f32.mrb[61].mxu0  ;;  %3803 = vmatprep.subr.bf16.mxu0 %v6431_v59  ;;  %3417 = vmatprep.subr.bf16.mxu1 %v6434_v0  ;;  %v6443_v0 = vld [vmem:[%s9274_s5 + $0x69c] ss:$28 sps:$4 sm:$0xff]  }
 0x202   : > { %9330 = vst [vmem:[#allocation9_spill] sm:$0xff] %v7977_v33  ;;  %v1284_v38 = vadd.f32 %v1283_v14, %v7695_v54  ;;  %v1477_v45 = vadd.f32 %v1476_v53, %v7699_v36  ;;  %v1285_v46 = vpop.f32.mrb[62].mxu1  ;;  %v1478_v47 = vpop.f32.mrb[62].mxu0  ;;  %3292 = vmatprep.mubr.bf16.mxu1 %v7977_v33  ;;  %3678 = vmatprep.mubr.bf16.mxu0 %v7977_v33  ;;  %v6446_v37 = vld [vmem:[%s9274_s5 + $0x694] ss:$28 sps:$4 sm:$0xff]  }
 0x203   : > { %v1286_v48 = vadd.f32 %v1285_v46, %v7688_v9  ;;  %v1479_v57 = vadd.f32 %v1478_v47, %v7692_v51  ;;  %v1287_v58 = vpop.f32.mrb[63].mxu1  ;;  %v1480_v59 = vpop.f32.mrb[63].mxu0  ;;  %3293 = vmatmul.mubr.bf16.gmra.mrb[120].mxu1 %v7973_v21  ;;  %3679 = vmatmul.mubr.bf16.gmra.mrb[120].mxu0 %v7973_v21  ;;  %v1619_v1 = vmax.f32 %v1282_v29, 0.0  ;;  %v1621_v3 = vmax.f32 %v1475_v12, 0.0 }
 0x204   : > { %v1288_v60 = vadd.f32 %v1287_v58, %v7695_v54  ;;  %v1481_v61 = vadd.f32 %v1480_v59, %v7699_v36  ;;  %3804 = vmatpush1.bf16.msra.mxu0 %v6429_v40  ;;  %3418 = vmatpush1.bf16.msra.mxu1 %v6432_v41  ;;  %v1620_v39 = vmax.f32 %v1284_v38, 0.0  ;;  %v1622_v40 = vmax.f32 %v1477_v45, 0.0  ;;  %v6449_v59 = vld [vmem:[%s9274_s5 + $0x6d4] ss:$28 sps:$4 sm:$0xff]  }
 0x205   : > { %v1623_v4 = vmax.f32 %v1286_v48, 0.0  ;;  %v1625_v20 = vmax.f32 %v1479_v57, 0.0  ;;  %3805 = vmatprep.subr.bf16.mxu0 %v6437_v55  ;;  %3419 = vmatprep.subr.bf16.mxu1 %v6440_v34  ;;  %v6441_v55 = vld [vmem:[%s9274_s5 + $0x698] ss:$28 sps:$4 sm:$0xff]   ;;  %v6444_v34 = vld [vmem:[%s9274_s5 + $0x690] ss:$28 sps:$4 sm:$0xff]  }
 0x206   : > { %v1624_v41 = vmax.f32 %v1288_v60, 0.0  ;;  %v1626_v14 = vmax.f32 %v1481_v61, 0.0  ;;  %v6452_v60 = vld [vmem:[%s9274_s5 + $0x6cc] ss:$28 sps:$4 sm:$0xff]  }
 0x207   : > { %v8017_v53 = vpack.c.bf16 %v1623_v4, %v1619_v1  ;;  %v8019_v46 = vpack.c.bf16 %v1625_v20, %v1621_v3 }
 0x208   : > { %v8021_v47 = vpack.c.bf16 %v1624_v41, %v1620_v39  ;;  %v8023_v29 = vpack.c.bf16 %v1626_v14, %v1622_v40  ;;  %v1291_v12 = vpop.f32.mrb[64].mxu1  ;;  %v1484_v48 = vpop.f32.mrb[64].mxu0  ;;  %3806 = vmatpush1.bf16.msra.mxu0 %v6435_v62  ;;  %3420 = vmatpush1.bf16.msra.mxu1 %v6438_v63  ;;  %v6447_v40 = vld [vmem:[%s9274_s5 + $0x6d0] ss:$28 sps:$4 sm:$0xff]   ;;  %v6450_v41 = vld [vmem:[%s9274_s5 + $0x6c8] ss:$28 sps:$4 sm:$0xff]  }
 0x209   : > { %9331 = vst [vmem:[#allocation10_spill] sm:$0xff] %v8017_v53  ;;  %v1292_v38 = vadd.f32 %v1291_v12, %v7688_v9  ;;  %v1485_v45 = vadd.f32 %v1484_v48, %v7692_v51  ;;  %v1293_v57 = vpop.f32.mrb[65].mxu1  ;;  %v1486_v58 = vpop.f32.mrb[65].mxu0  ;;  %3807 = vmatprep.subr.bf16.mxu0 %v6443_v0  ;;  %3421 = vmatprep.subr.bf16.mxu1 %v6446_v37  ;;  %v6453_v14 = vld [vmem:[%s9274_s5 + $0x1d8] ss:$28 sps:$4 sm:$0xff]  }
 0x20a   : > { %9332 = vst [vmem:[#allocation11_spill] sm:$0xff] %v8021_v47  ;;  %v1294_v61 = vadd.f32 %v1293_v57, %v7695_v54  ;;  %v1487_v62 = vadd.f32 %v1486_v58, %v7699_v36  ;;  %v1295_v63 = vpop.f32.mrb[66].mxu1  ;;  %v1488_v1 = vpop.f32.mrb[66].mxu0  ;;  %3302 = vmatprep.mubr.bf16.mxu1 %v8021_v47  ;;  %3688 = vmatprep.mubr.bf16.mxu0 %v8021_v47 }
 0x20b   : > { %v1296_v0 = vadd.f32 %v1295_v63, %v7688_v9  ;;  %v1489_v3 = vadd.f32 %v1488_v1, %v7692_v51  ;;  %v1297_v4 = vpop.f32.mrb[67].mxu1  ;;  %v1490_v20 = vpop.f32.mrb[67].mxu0  ;;  %3303 = vmatmul.mubr.bf16.gmra.mrb[124].mxu1 %v8017_v53  ;;  %3689 = vmatmul.mubr.bf16.gmra.mrb[124].mxu0 %v8017_v53  ;;  %v1627_v12 = vmax.f32 %v1292_v38, 0.0  ;;  %v1629_v48 = vmax.f32 %v1485_v45, 0.0 }
 0x20c   : > { %v1298_v37 = vadd.f32 %v1297_v4, %v7695_v54  ;;  %v1491_v39 = vadd.f32 %v1490_v20, %v7699_v36  ;;  %3808 = vmatpush1.bf16.msra.mxu0 %v6441_v55  ;;  %3422 = vmatpush1.bf16.msra.mxu1 %v6444_v34  ;;  %v6457_v55 = vld [vmem:[%s9274_s5 + $0x14] ss:$28 sps:$4 sm:$0xff]   ;;  %v1628_v34 = vmax.f32 %v1294_v61, 0.0  ;;  %v1630_v63 = vmax.f32 %v1487_v62, 0.0 }
 0x20d   : > { %v1631_v57 = vmax.f32 %v1296_v0, 0.0  ;;  %v1633_v58 = vmax.f32 %v1489_v3, 0.0  ;;  %3809 = vmatprep.subr.bf16.mxu0 %v6449_v59  ;;  %3423 = vmatprep.subr.bf16.mxu1 %v6452_v60 }
 0x20e   : > { %v1632_v1 = vmax.f32 %v1298_v37, 0.0  ;;  %v1634_v4 = vmax.f32 %v1491_v39, 0.0 }
 0x20f   : > { %v8061_v20 = vpack.c.bf16 %v1631_v57, %v1627_v12  ;;  %v8063_v7 = vpack.c.bf16 %v1633_v58, %v1629_v48 }
 0x210   : > { %v8065_v32 = vpack.c.bf16 %v1632_v1, %v1628_v34  ;;  %v8067_v38 = vpack.c.bf16 %v1634_v4, %v1630_v63  ;;  %v1301_v45 = vpop.f32.mrb[68].mxu1  ;;  %v1494_v0 = vpop.f32.mrb[68].mxu0  ;;  %3810 = vmatpush1.bf16.msra.mxu0 %v6447_v40  ;;  %3424 = vmatpush1.bf16.msra.mxu1 %v6450_v41 }
 0x211   : > { %9333 = vst [vmem:[#allocation12_spill] sm:$0xff] %v8061_v20  ;;  %v1302_v59 = vadd.f32 %v1301_v45, %v7688_v9  ;;  %v1495_v60 = vadd.f32 %v1494_v0, %v7692_v51  ;;  %v1303_v61 = vpop.f32.mrb[69].mxu1  ;;  %v1496_v62 = vpop.f32.mrb[69].mxu0  ;;  %5521 = vmatprep.subr.bf16.mxu0 %v6453_v14  ;;  %3972 = vmatprep.subr.bf16.mxu1 %v6457_v55 }
 0x212   : > { %9334 = vst [vmem:[#allocation13_spill] sm:$0xff] %v8065_v32  ;;  %v1304_v3 = vadd.f32 %v1303_v61, %v7695_v54  ;;  %v1497_v37 = vadd.f32 %v1496_v62, %v7699_v36  ;;  %v1305_v39 = vpop.f32.mrb[70].mxu1  ;;  %v1498_v12 = vpop.f32.mrb[70].mxu0  ;;  %3312 = vmatprep.mubr.bf16.mxu1 %v8065_v32  ;;  %3698 = vmatprep.mubr.bf16.mxu0 %v8065_v32 }
 0x213   : > { %v1306_v40 = vadd.f32 %v1305_v39, %v7688_v9  ;;  %v1499_v41 = vadd.f32 %v1498_v12, %v7692_v51  ;;  %v1307_v48 = vpop.f32.mrb[71].mxu1  ;;  %v1500_v57 = vpop.f32.mrb[71].mxu0  ;;  %3313 = vmatmul.mubr.bf16.gmra.mrb[128].mxu1 %v8061_v20  ;;  %3699 = vmatmul.mubr.bf16.gmra.mrb[128].mxu0 %v8061_v20  ;;  %v1635_v55 = vmax.f32 %v1302_v59, 0.0  ;;  %v1637_v34 = vmax.f32 %v1495_v60, 0.0 }
 0x214   : > { %v1308_v14 = vadd.f32 %v1307_v48, %v7695_v54  ;;  %v1501_v58 = vadd.f32 %v1500_v57, %v7699_v36  ;;  %v1636_v4 = vmax.f32 %v1304_v3, 0.0  ;;  %v1638_v45 = vmax.f32 %v1497_v37, 0.0 }
 0x215   : > { %v1639_v63 = vmax.f32 %v1306_v40, 0.0  ;;  %v1641_v1 = vmax.f32 %v1499_v41, 0.0 }
 0x216   : > { %v1640_v0 = vmax.f32 %v1308_v14, 0.0  ;;  %v1642_v61 = vmax.f32 %v1501_v58, 0.0 }
 0x217   : > { %v8081_v62 = vpack.c.bf16 %v1639_v63, %v1635_v55  ;;  %v8083_v39 = vpack.c.bf16 %v1641_v1, %v1637_v34 }
 0x218   : > { %v8085_v12 = vpack.c.bf16 %v1640_v0, %v1636_v4  ;;  %v8087_v27 = vpack.c.bf16 %v1642_v61, %v1638_v45  ;;  %v1311_v24 = vpop.f32.mrb[72].mxu1  ;;  %v1504_v48 = vpop.f32.mrb[72].mxu0 }
 0x219   : > { %9335 = vst [vmem:[#allocation14_spill] sm:$0xff] %v8081_v62  ;;  %v1312_v57 = vadd.f32 %v1311_v24, %v7688_v9  ;;  %v1505_v59 = vadd.f32 %v1504_v48, %v7692_v51  ;;  %v1313_v60 = vpop.f32.mrb[73].mxu1  ;;  %v1506_v40 = vpop.f32.mrb[73].mxu0 }
 0x21a   : > { %9336 = vst [vmem:[#allocation15_spill] sm:$0xff] %v8085_v12  ;;  %v1314_v3 = vadd.f32 %v1313_v60, %v7695_v54  ;;  %v1507_v37 = vadd.f32 %v1506_v40, %v7699_v36  ;;  %v1315_v41 = vpop.f32.mrb[74].mxu1  ;;  %v1508_v14 = vpop.f32.mrb[74].mxu0  ;;  %3322 = vmatprep.mubr.bf16.mxu1 %v8085_v12  ;;  %3708 = vmatprep.mubr.bf16.mxu0 %v8085_v12 }
 0x21b   : > { %v1316_v58 = vadd.f32 %v1315_v41, %v7688_v9  ;;  %v1509_v55 = vadd.f32 %v1508_v14, %v7692_v51  ;;  %v1317_v34 = vpop.f32.mrb[75].mxu1  ;;  %v1510_v24 = vpop.f32.mrb[75].mxu0  ;;  %3323 = vmatmul.mubr.bf16.gmra.mrb[132].mxu1 %v8081_v62  ;;  %3709 = vmatmul.mubr.bf16.gmra.mrb[132].mxu0 %v8081_v62  ;;  %v1643_v4 = vmax.f32 %v1312_v57, 0.0  ;;  %v1645_v45 = vmax.f32 %v1505_v59, 0.0 }
 0x21c   : > { %v1318_v63 = vadd.f32 %v1317_v34, %v7695_v54  ;;  %v1511_v1 = vadd.f32 %v1510_v24, %v7699_v36  ;;  %v1644_v48 = vmax.f32 %v1314_v3, 0.0  ;;  %v1646_v60 = vmax.f32 %v1507_v37, 0.0 }
 0x21d   : > { %v1647_v0 = vmax.f32 %v1316_v58, 0.0  ;;  %v1649_v61 = vmax.f32 %v1509_v55, 0.0 }
 0x21e   : > { %v1648_v40 = vmax.f32 %v1318_v63, 0.0  ;;  %v1650_v41 = vmax.f32 %v1511_v1, 0.0 }
 0x21f   : > { %v8101_v25 = vpack.c.bf16 %v1647_v0, %v1643_v4  ;;  %v8103_v14 = vpack.c.bf16 %v1649_v61, %v1645_v45 }
 0x220   : > { %v8105_v12 = vpack.c.bf16 %v1648_v40, %v1644_v48  ;;  %v8107_v20 = vpack.c.bf16 %v1650_v41, %v1646_v60  ;;  %v1321_v62 = vpop.f32.mrb[76].mxu1  ;;  %v1514_v34 = vpop.f32.mrb[76].mxu0 }
 0x221   : > { %9337 = vst [vmem:[#allocation16_spill] sm:$0xff] %v8101_v25  ;;  %v1322_v24 = vadd.f32 %v1321_v62, %v7688_v9  ;;  %v1515_v57 = vadd.f32 %v1514_v34, %v7692_v51  ;;  %v1323_v59 = vpop.f32.mrb[77].mxu1  ;;  %v1516_v58 = vpop.f32.mrb[77].mxu0 }
 0x222   : > { %9338 = vst [vmem:[#allocation17_spill] sm:$0xff] %v8105_v12  ;;  %v1324_v3 = vadd.f32 %v1323_v59, %v7695_v54  ;;  %v1517_v37 = vadd.f32 %v1516_v58, %v7699_v36  ;;  %v1325_v55 = vpop.f32.mrb[78].mxu1  ;;  %v1518_v63 = vpop.f32.mrb[78].mxu0  ;;  %3332 = vmatprep.mubr.bf16.mxu1 %v8105_v12  ;;  %3718 = vmatprep.mubr.bf16.mxu0 %v8105_v12 }
 0x223   : > { %v1326_v1 = vadd.f32 %v1325_v55, %v7688_v9  ;;  %v1519_v4 = vadd.f32 %v1518_v63, %v7692_v51  ;;  %v1327_v45 = vpop.f32.mrb[79].mxu1  ;;  %v1520_v62 = vpop.f32.mrb[79].mxu0  ;;  %3333 = vmatmul.mubr.bf16.gmra.mrb[136].mxu1 %v8101_v25  ;;  %3719 = vmatmul.mubr.bf16.gmra.mrb[136].mxu0 %v8101_v25  ;;  %v1651_v48 = vmax.f32 %v1322_v24, 0.0  ;;  %v1653_v60 = vmax.f32 %v1515_v57, 0.0 }
 0x224   : > { %v1328_v0 = vadd.f32 %v1327_v45, %v7695_v54  ;;  %v1521_v61 = vadd.f32 %v1520_v62, %v7699_v36  ;;  %v1652_v34 = vmax.f32 %v1324_v3, 0.0  ;;  %v1654_v59 = vmax.f32 %v1517_v37, 0.0 }
 0x225   : > { %v1655_v40 = vmax.f32 %v1326_v1, 0.0  ;;  %v1657_v41 = vmax.f32 %v1519_v4, 0.0 }
 0x226   : > { %v1656_v58 = vmax.f32 %v1328_v0, 0.0  ;;  %v1658_v55 = vmax.f32 %v1521_v61, 0.0 }
 0x227   : > { %v8121_v12 = vpack.c.bf16 %v1655_v40, %v1651_v48  ;;  %v8123_v63 = vpack.c.bf16 %v1657_v41, %v1653_v60 }
 0x228   : > { %v8125_v32 = vpack.c.bf16 %v1656_v58, %v1652_v34  ;;  %v8127_v53 = vpack.c.bf16 %v1658_v55, %v1654_v59  ;;  %v1331_v25 = vpop.f32.mrb[80].mxu1  ;;  %v1524_v45 = vpop.f32.mrb[80].mxu0 }
 0x229   : > { %9339 = vst [vmem:[#allocation18_spill] sm:$0xff] %v8121_v12  ;;  %v1332_v62 = vadd.f32 %v1331_v25, %v7688_v9  ;;  %v1525_v24 = vadd.f32 %v1524_v45, %v7692_v51  ;;  %v1333_v57 = vpop.f32.mrb[81].mxu1  ;;  %v1526_v1 = vpop.f32.mrb[81].mxu0 }
 0x22a   : > { %9340 = vst [vmem:[#allocation19_spill] sm:$0xff] %v8125_v32  ;;  %v1334_v3 = vadd.f32 %v1333_v57, %v7695_v54  ;;  %v1527_v37 = vadd.f32 %v1526_v1, %v7699_v36  ;;  %v1335_v4 = vpop.f32.mrb[82].mxu1  ;;  %v1528_v0 = vpop.f32.mrb[82].mxu0  ;;  %3342 = vmatprep.mubr.bf16.mxu1 %v8125_v32  ;;  %3728 = vmatprep.mubr.bf16.mxu0 %v8125_v32 }
 0x22b   : > { %v1336_v61 = vadd.f32 %v1335_v4, %v7688_v9  ;;  %v1529_v48 = vadd.f32 %v1528_v0, %v7692_v51  ;;  %v1337_v60 = vpop.f32.mrb[83].mxu1  ;;  %v1530_v25 = vpop.f32.mrb[83].mxu0  ;;  %3343 = vmatmul.mubr.bf16.gmra.mrb[140].mxu1 %v8121_v12  ;;  %3729 = vmatmul.mubr.bf16.gmra.mrb[140].mxu0 %v8121_v12  ;;  %v1659_v34 = vmax.f32 %v1332_v62, 0.0  ;;  %v1661_v59 = vmax.f32 %v1525_v24, 0.0 }
 0x22c   : > { %v1338_v40 = vadd.f32 %v1337_v60, %v7695_v54  ;;  %v1531_v41 = vadd.f32 %v1530_v25, %v7699_v36  ;;  %v1660_v45 = vmax.f32 %v1334_v3, 0.0  ;;  %v1662_v57 = vmax.f32 %v1527_v37, 0.0 }
 0x22d   : > { %v1663_v58 = vmax.f32 %v1336_v61, 0.0  ;;  %v1665_v55 = vmax.f32 %v1529_v48, 0.0 }
 0x22e   : > { %v1664_v1 = vmax.f32 %v1338_v40, 0.0  ;;  %v1666_v4 = vmax.f32 %v1531_v41, 0.0 }
 0x22f   : > { %v8141_v32 = vpack.c.bf16 %v1663_v58, %v1659_v34  ;;  %v8143_v0 = vpack.c.bf16 %v1665_v55, %v1661_v59 }
 0x230   : > { %v8145_v47 = vpack.c.bf16 %v1664_v1, %v1660_v45  ;;  %v8147_v21 = vpack.c.bf16 %v1666_v4, %v1662_v57  ;;  %v1341_v12 = vpop.f32.mrb[84].mxu1  ;;  %v1534_v60 = vpop.f32.mrb[84].mxu0 }
 0x231   : > { %9341 = vst [vmem:[#allocation20_spill] sm:$0xff] %v8141_v32  ;;  %v1342_v25 = vadd.f32 %v1341_v12, %v7688_v9  ;;  %v1535_v62 = vadd.f32 %v1534_v60, %v7692_v51  ;;  %v1343_v24 = vpop.f32.mrb[85].mxu1  ;;  %v1536_v61 = vpop.f32.mrb[85].mxu0 }
 0x232   : > { %9342 = vst [vmem:[#allocation21_spill] sm:$0xff] %v8145_v47  ;;  %v1344_v3 = vadd.f32 %v1343_v24, %v7695_v54  ;;  %v1537_v37 = vadd.f32 %v1536_v61, %v7699_v36  ;;  %v1345_v48 = vpop.f32.mrb[86].mxu1  ;;  %v1538_v40 = vpop.f32.mrb[86].mxu0  ;;  %3352 = vmatprep.mubr.bf16.mxu1 %v8145_v47  ;;  %3738 = vmatprep.mubr.bf16.mxu0 %v8145_v47 }
 0x233   : > { %v1346_v41 = vadd.f32 %v1345_v48, %v7688_v9  ;;  %v1539_v34 = vadd.f32 %v1538_v40, %v7692_v51  ;;  %v1347_v59 = vpop.f32.mrb[87].mxu1  ;;  %v1540_v12 = vpop.f32.mrb[87].mxu0  ;;  %3353 = vmatmul.mubr.bf16.gmra.mrb[144].mxu1 %v8141_v32  ;;  %3739 = vmatmul.mubr.bf16.gmra.mrb[144].mxu0 %v8141_v32  ;;  %v1667_v45 = vmax.f32 %v1342_v25, 0.0  ;;  %v1669_v57 = vmax.f32 %v1535_v62, 0.0 }
 0x234   : > { %v1348_v58 = vadd.f32 %v1347_v59, %v7695_v54  ;;  %v1541_v55 = vadd.f32 %v1540_v12, %v7699_v36  ;;  %v1668_v60 = vmax.f32 %v1344_v3, 0.0  ;;  %v1670_v24 = vmax.f32 %v1537_v37, 0.0 }
 0x235   : > { %v1671_v1 = vmax.f32 %v1346_v41, 0.0  ;;  %v1673_v4 = vmax.f32 %v1539_v34, 0.0 }
 0x236   : > { %v1672_v61 = vmax.f32 %v1348_v58, 0.0  ;;  %v1674_v48 = vmax.f32 %v1541_v55, 0.0 }
 0x237   : > { %v8161_v47 = vpack.c.bf16 %v1671_v1, %v1667_v45  ;;  %v8163_v40 = vpack.c.bf16 %v1673_v4, %v1669_v57 }
 0x238   : > { %v8165_v33 = vpack.c.bf16 %v1672_v61, %v1668_v60  ;;  %v8167_v5 = vpack.c.bf16 %v1674_v48, %v1670_v24  ;;  %v1351_v32 = vpop.f32.mrb[88].mxu1  ;;  %v1544_v59 = vpop.f32.mrb[88].mxu0 }
 0x239   : > { %9343 = vst [vmem:[#allocation22_spill] sm:$0xff] %v8161_v47  ;;  %v1352_v12 = vadd.f32 %v1351_v32, %v7688_v9  ;;  %v1545_v25 = vadd.f32 %v1544_v59, %v7692_v51  ;;  %v1353_v62 = vpop.f32.mrb[89].mxu1  ;;  %v1546_v41 = vpop.f32.mrb[89].mxu0 }
 0x23a   : > { %9344 = vst [vmem:[#allocation23_spill] sm:$0xff] %v8165_v33  ;;  %v1354_v3 = vadd.f32 %v1353_v62, %v7695_v54  ;;  %v1547_v37 = vadd.f32 %v1546_v41, %v7699_v36  ;;  %v1355_v34 = vpop.f32.mrb[90].mxu1  ;;  %v1548_v58 = vpop.f32.mrb[90].mxu0  ;;  %3362 = vmatprep.mubr.bf16.mxu1 %v8165_v33  ;;  %3748 = vmatprep.mubr.bf16.mxu0 %v8165_v33 }
 0x23b   : > { %v1356_v55 = vadd.f32 %v1355_v34, %v7688_v9  ;;  %v1549_v45 = vadd.f32 %v1548_v58, %v7692_v51  ;;  %v1357_v57 = vpop.f32.mrb[91].mxu1  ;;  %v1550_v32 = vpop.f32.mrb[91].mxu0  ;;  %3363 = vmatmul.mubr.bf16.gmra.mrb[148].mxu1 %v8161_v47  ;;  %3749 = vmatmul.mubr.bf16.gmra.mrb[148].mxu0 %v8161_v47  ;;  %v1675_v60 = vmax.f32 %v1352_v12, 0.0  ;;  %v1677_v24 = vmax.f32 %v1545_v25, 0.0 }
 0x23c   : > { %v1358_v1 = vadd.f32 %v1357_v57, %v7695_v54  ;;  %v1551_v4 = vadd.f32 %v1550_v32, %v7699_v36  ;;  %v1676_v59 = vmax.f32 %v1354_v3, 0.0  ;;  %v1678_v62 = vmax.f32 %v1547_v37, 0.0 }
 0x23d   : > { %v1679_v61 = vmax.f32 %v1356_v55, 0.0  ;;  %v1681_v48 = vmax.f32 %v1549_v45, 0.0 }
 0x23e   : > { %v1680_v41 = vmax.f32 %v1358_v1, 0.0  ;;  %v1682_v34 = vmax.f32 %v1551_v4, 0.0 }
 0x23f   : > { %v8181_v33 = vpack.c.bf16 %v1679_v61, %v1675_v60  ;;  %v8183_v58 = vpack.c.bf16 %v1681_v48, %v1677_v24 }
 0x240   : > { %v8185_v8 = vpack.c.bf16 %v1680_v41, %v1676_v59  ;;  %v8187_v10 = vpack.c.bf16 %v1682_v34, %v1678_v62  ;;  %v1361_v47 = vpop.f32.mrb[92].mxu1  ;;  %v1554_v57 = vpop.f32.mrb[92].mxu0 }
 0x241   : > { %v1362_v32 = vadd.f32 %v1361_v47, %v7688_v9  ;;  %v1555_v12 = vadd.f32 %v1554_v57, %v7692_v51  ;;  %v1363_v25 = vpop.f32.mrb[93].mxu1  ;;  %v1556_v55 = vpop.f32.mrb[93].mxu0 }
 0x242   : > { %9345 = vst [vmem:[#allocation24_spill] sm:$0xff] %v8185_v8  ;;  %v1364_v3 = vadd.f32 %v1363_v25, %v7695_v54  ;;  %v1557_v37 = vadd.f32 %v1556_v55, %v7699_v36  ;;  %v1365_v45 = vpop.f32.mrb[94].mxu1  ;;  %v1558_v1 = vpop.f32.mrb[94].mxu0  ;;  %3372 = vmatprep.mubr.bf16.mxu1 %v8185_v8  ;;  %3758 = vmatprep.mubr.bf16.mxu0 %v8185_v8 }
 0x243   : > { %v1366_v4 = vadd.f32 %v1365_v45, %v7688_v9  ;;  %v1559_v60 = vadd.f32 %v1558_v1, %v7692_v51  ;;  %v1367_v24 = vpop.f32.mrb[95].mxu1  ;;  %v1560_v47 = vpop.f32.mrb[95].mxu0  ;;  %3373 = vmatmul.mubr.bf16.gmra.mrb[152].mxu1 %v8181_v33  ;;  %3759 = vmatmul.mubr.bf16.gmra.mrb[152].mxu0 %v8181_v33  ;;  %v1683_v59 = vmax.f32 %v1362_v32, 0.0  ;;  %v1685_v62 = vmax.f32 %v1555_v12, 0.0  ;;  %v6460_v32 = vld [vmem:[%s9274_s5 + $0x4c] ss:$28 sps:$4 sm:$0xff]  }
 0x244   : > { %v1368_v61 = vadd.f32 %v1367_v24, %v7695_v54  ;;  %v1561_v48 = vadd.f32 %v1560_v47, %v7699_v36  ;;  %v1684_v57 = vmax.f32 %v1364_v3, 0.0  ;;  %v1686_v25 = vmax.f32 %v1557_v37, 0.0  ;;  %v6454_v54 = vld [vmem:[%s9274_s5 + $0x18] ss:$28 sps:$4 sm:$0xff]   ;;  %v6455_v36 = vld [vmem:[%s9274_s5 + $0x10] ss:$28 sps:$4 sm:$0xff]  }
 0x245   : > { %v1687_v41 = vmax.f32 %v1366_v4, 0.0  ;;  %v1689_v34 = vmax.f32 %v1559_v60, 0.0  ;;  %v6461_v12 = vld [vmem:[%s9274_s5 + $0x210] ss:$28 sps:$4 sm:$0xff]   ;;  %v6458_v37 = vld [vmem:[%s9274_s5 + $0x48] ss:$28 sps:$4 sm:$0xff]  }
 0x246   : > { %v1688_v55 = vmax.f32 %v1368_v61, 0.0  ;;  %v1690_v9 = vmax.f32 %v1561_v48, 0.0  ;;  %v6462_v3 = vld [vmem:[%s9274_s5 + $0x50] ss:$28 sps:$4 sm:$0xff]   ;;  %v6469_v4 = vld [vmem:[%s9274_s5 + $0x248] ss:$28 sps:$4 sm:$0xff]  }
 0x247   : > { %v8201_v45 = vpack.c.bf16 %v1687_v41, %v1683_v59  ;;  %v8203_v51 = vpack.c.bf16 %v1689_v34, %v1685_v62  ;;  %v6465_v60 = vld [vmem:[%s9274_s5 + $0x84] ss:$28 sps:$4 sm:$0xff]   ;;  %v6468_v61 = vld [vmem:[%s9274_s5 + $0xbc] ss:$28 sps:$4 sm:$0xff]   ;;  %v6473_v41 = vld [vmem:[%s9274_s5 + $0xf4] ss:$28 sps:$4 sm:$0xff]  }
 0x248   : > { %v8205_v1 = vpack.c.bf16 %v1688_v55, %v1684_v57  ;;  %v8207_v8 = vpack.c.bf16 %v1690_v9, %v1686_v25  ;;  %v6463_v24 = vld [vmem:[%s9274_s5 + $0x80] ss:$28 sps:$4 sm:$0xff]   ;;  %v6470_v47 = vld [vmem:[%s9274_s5 + $0x88] ss:$28 sps:$4 sm:$0xff]   ;;  %v6466_v59 = vld [vmem:[%s9274_s5 + $0xb8] ss:$28 sps:$4 sm:$0xff]  }
 0x249   : > { %v6477_v48 = vld [vmem:[%s9274_s5 + $0x280] ss:$28 sps:$4 sm:$0xff]   ;;  %v6485_v34 = vld [vmem:[%s9274_s5 + $0x2b8] ss:$28 sps:$4 sm:$0xff]   ;;  %v6471_v57 = vld [vmem:[%s9274_s5 + $0xf0] ss:$28 sps:$4 sm:$0xff]  }
 0x24a   : > { %3382 = vmatprep.mubr.bf16.mxu1 %v8205_v1  ;;  %3768 = vmatprep.mubr.bf16.mxu0 %v8205_v1  ;;  %v6478_v62 = vld [vmem:[%s9274_s5 + $0xc0] ss:$28 sps:$4 sm:$0xff]   ;;  %v6486_v25 = vld [vmem:[%s9274_s5 + $0xf8] ss:$28 sps:$4 sm:$0xff]   ;;  %v6476_v55 = vld [vmem:[%s9274_s5 + $0x12c] ss:$28 sps:$4 sm:$0xff]  }
 0x24b   : > { %3383 = vmatmul.mubr.bf16.gmra.mrb[156].mxu1 %v8201_v45  ;;  %3769 = vmatmul.mubr.bf16.gmra.mrb[156].mxu0 %v8201_v45  ;;  %v6493_v9 = vld [vmem:[%s9274_s5 + $0x2f0] ss:$28 sps:$4 sm:$0xff]  }
 0x24c   : > { %3425 = vmatprep.mubr.bf16.mxu1 %v7715_v15  ;;  %3811 = vmatprep.mubr.bf16.mxu0 %v7715_v15 }
 0x253   : > { %3426 = vmatmul.mubr.bf16.vlgmr.msra.gmra.mrb[96].mxu1 %v7711_v2  ;;  %3812 = vmatmul.mubr.bf16.vlgmr.msra.gmra.mrb[96].mxu0 %v7711_v2 }
 0x254   : > { %5522 = vmatpush3.bf16.msra.mxu0 %v6454_v54  ;;  %3435 = vmatprep.mubr.bf16.mxu1 %v7759_v56  ;;  %v6474_v54 = vld [vmem:[%s9274_s5 + $0x128] ss:$28 sps:$4 sm:$0xff]  }
 0x255   : > { %3821 = vmatprep.mubr.bf16.mxu0 %v7759_v56  ;;  %3973 = vmatpush1.bf16.msra.mxu1 %v6455_v36  ;;  %v6494_v36 = vld [vmem:[%s9274_s5 + $0x130] ss:$28 sps:$4 sm:$0xff]  }
 0x256   : > { %3974 = vmatprep.subr.bf16.mxu1 %v6460_v32  ;;  %5523 = vmatprep.subr.bf16.mxu0 %v6461_v12  ;;  %v6481_v32 = vld [vmem:[%s9274_s5 + $0x164] ss:$28 sps:$4 sm:$0xff]  }
 0x257   : > { %v6501_v12 = vld [vmem:[%s9274_s5 + $0x328] ss:$28 sps:$4 sm:$0xff]  }
 0x258   : > { %5524 = vmatpush3.bf16.msra.mxu0 %v6462_v3  ;;  %v6479_v3 = vld [vmem:[%s9274_s5 + $0x160] ss:$28 sps:$4 sm:$0xff]  }
 0x259   : > { %3975 = vmatpush1.bf16.msra.mxu1 %v6458_v37  ;;  %5525 = vmatprep.subr.bf16.mxu0 %v6469_v4  ;;  %v6502_v37 = vld [vmem:[%s9274_s5 + $0x168] ss:$28 sps:$4 sm:$0xff]   ;;  %v6484_v4 = vld [vmem:[%s9274_s5 + $0x19c] ss:$28 sps:$4 sm:$0xff]  }
 0x25a   : > { %3976 = vmatprep.subr.bf16.mxu1 %v6465_v60  ;;  %v6509_v60 = vld [vmem:[%s9274_s5 + $0x360] ss:$28 sps:$4 sm:$0xff]  }
 0x25b   : > { %3436 = vmatmul.mubr.bf16.gmra.mrb[100].mxu1 %v7755_v50  ;;  %3822 = vmatmul.mubr.bf16.gmra.mrb[100].mxu0 %v7755_v50 }
 0x25c   : > { %3445 = vmatprep.mubr.bf16.mxu1 %v7803_v28  ;;  %3831 = vmatprep.mubr.bf16.mxu0 %v7803_v28 }
 0x25d   : > { %3977 = vmatpush1.bf16.msra.mxu1 %v6463_v24  ;;  %5526 = vmatpush3.bf16.msra.mxu0 %v6470_v47  ;;  %v6482_v24 = vld [vmem:[%s9274_s5 + $0x198] ss:$28 sps:$4 sm:$0xff]   ;;  %v6510_v47 = vld [vmem:[%s9274_s5 + $0x1a0] ss:$28 sps:$4 sm:$0xff]  }
 0x25e   : > { %3978 = vmatprep.subr.bf16.mxu1 %v6468_v61  ;;  %5527 = vmatprep.subr.bf16.mxu0 %v6477_v48  ;;  %v6489_v61 = vld [vmem:[%s9274_s5 + $0x1d4] ss:$28 sps:$4 sm:$0xff]  }
 0x25f   : > { %v6517_v48 = vld [vmem:[%s9274_s5 + $0x558] ss:$28 sps:$4 sm:$0xff]  }
 0x261   : > { %3979 = vmatpush1.bf16.msra.mxu1 %v6466_v59  ;;  %5528 = vmatpush3.bf16.msra.mxu0 %v6478_v62  ;;  %v6487_v59 = vld [vmem:[%s9274_s5 + $0x1d0] ss:$28 sps:$4 sm:$0xff]  }
 0x262   : > { %3980 = vmatprep.subr.bf16.mxu1 %v6473_v41  ;;  %5529 = vmatprep.subr.bf16.mxu0 %v6485_v34  ;;  %v6492_v62 = vld [vmem:[%s9274_s5 + $0x20c] ss:$28 sps:$4 sm:$0xff]   ;;  %v6497_v34 = vld [vmem:[%s9274_s5 + $0x244] ss:$28 sps:$4 sm:$0xff]  }
 0x263   : > { %3446 = vmatmul.mubr.bf16.gmra.mrb[104].mxu1 %v7799_v43  ;;  %3832 = vmatmul.mubr.bf16.gmra.mrb[104].mxu0 %v7799_v43  ;;  %v6490_v41 = vld [vmem:[%s9274_s5 + $0x208] ss:$28 sps:$4 sm:$0xff]  }
 0x264   : > { %3455 = vmatprep.mubr.bf16.mxu1 %v7847_v30  ;;  %3841 = vmatprep.mubr.bf16.mxu0 %v7847_v30 }
 0x265   : > { %3981 = vmatpush1.bf16.msra.mxu1 %v6471_v57  ;;  %5530 = vmatpush3.bf16.msra.mxu0 %v6486_v25  ;;  %v6495_v57 = vld [vmem:[%s9274_s5 + $0x240] ss:$28 sps:$4 sm:$0xff]  }
 0x266   : > { %3982 = vmatprep.subr.bf16.mxu1 %v6476_v55  ;;  %5531 = vmatprep.subr.bf16.mxu0 %v6493_v9  ;;  %v6500_v25 = vld [vmem:[%s9274_s5 + $0x27c] ss:$28 sps:$4 sm:$0xff]   ;;  %v6505_v9 = vld [vmem:[%s9274_s5 + $0x2b4] ss:$28 sps:$4 sm:$0xff]  }
 0x267   : > { %v6498_v55 = vld [vmem:[%s9274_s5 + $0x278] ss:$28 sps:$4 sm:$0xff]  }
 0x269   : > { %3983 = vmatpush1.bf16.msra.mxu1 %v6474_v54  ;;  %5532 = vmatpush3.bf16.msra.mxu0 %v6494_v36  ;;  %v6503_v54 = vld [vmem:[%s9274_s5 + $0x2b0] ss:$28 sps:$4 sm:$0xff]  }
 0x26a   : > { %3984 = vmatprep.subr.bf16.mxu1 %v6481_v32  ;;  %5533 = vmatprep.subr.bf16.mxu0 %v6501_v12  ;;  %v6508_v36 = vld [vmem:[%s9274_s5 + $0x2ec] ss:$28 sps:$4 sm:$0xff]   ;;  %v6513_v12 = vld [vmem:[%s9274_s5 + $0x324] ss:$28 sps:$4 sm:$0xff]  }
 0x26b   : > { %3456 = vmatmul.mubr.bf16.gmra.mrb[108].mxu1 %v7843_v23  ;;  %3842 = vmatmul.mubr.bf16.gmra.mrb[108].mxu0 %v7843_v23  ;;  %v6506_v32 = vld [vmem:[%s9274_s5 + $0x2e8] ss:$28 sps:$4 sm:$0xff]  }
 0x26c   : > { %3465 = vmatprep.mubr.bf16.mxu1 %v7891_v18  ;;  %3851 = vmatprep.mubr.bf16.mxu0 %v7891_v18 }
 0x26d   : > { %3985 = vmatpush1.bf16.msra.mxu1 %v6479_v3  ;;  %5534 = vmatpush3.bf16.msra.mxu0 %v6502_v37  ;;  %v6511_v3 = vld [vmem:[%s9274_s5 + $0x320] ss:$28 sps:$4 sm:$0xff]  }
 0x26e   : > { %3986 = vmatprep.subr.bf16.mxu1 %v6484_v4  ;;  %5535 = vmatprep.subr.bf16.mxu0 %v6509_v60  ;;  %v6516_v37 = vld [vmem:[%s9274_s5 + $0x35c] ss:$28 sps:$4 sm:$0xff]   ;;  %v6521_v60 = vld [vmem:[%s9274_s5 + $0x394] ss:$28 sps:$4 sm:$0xff]  }
 0x26f   : > { %v6514_v4 = vld [vmem:[%s9274_s5 + $0x358] ss:$28 sps:$4 sm:$0xff]  }
 0x271   : > { %3987 = vmatpush1.bf16.msra.mxu1 %v6482_v24  ;;  %5536 = vmatpush3.bf16.msra.mxu0 %v6510_v47  ;;  %v6518_v24 = vld [vmem:[%s9274_s5 + $0x398] ss:$28 sps:$4 sm:$0xff]   ;;  %v6519_v47 = vld [vmem:[%s9274_s5 + $0x390] ss:$28 sps:$4 sm:$0xff]  }
 0x272   : > { %3988 = vmatprep.subr.bf16.mxu1 %v6489_v61  ;;  %5633 = vmatprep.subr.bf16.mxu0 %v6517_v48  ;;  %v6524_v61 = vld [vmem:[%s9274_s5 + $0x3cc] ss:$28 sps:$4 sm:$0xff]  }
 0x273   : > { %3466 = vmatmul.mubr.bf16.gmra.mrb[112].mxu1 %v7887_v16  ;;  %3852 = vmatmul.mubr.bf16.gmra.mrb[112].mxu0 %v7887_v16  ;;  %v6525_v48 = vld [vmem:[%s9274_s5 + $0x590] ss:$28 sps:$4 sm:$0xff]  }
 0x274   : > { %3475 = vmatprep.mubr.bf16.mxu1 %v7935_v19  ;;  %3861 = vmatprep.mubr.bf16.mxu0 %v7935_v19 }
 0x275   : > { %3989 = vmatpush1.bf16.msra.mxu1 %v6487_v59  ;;  %v6522_v59 = vld [vmem:[%s9274_s5 + $0x3c8] ss:$28 sps:$4 sm:$0xff]  }
 0x276   : > { %3990 = vmatprep.subr.bf16.mxu1 %v6492_v62  ;;  %v6533_v62 = vld [vmem:[%s9274_s5 + $0x5c8] ss:$28 sps:$4 sm:$0xff]  }
 0x279   : > { %3991 = vmatpush1.bf16.msra.mxu1 %v6490_v41  ;;  %v6534_v41 = vld [vmem:[%s9274_s5 + $0x408] ss:$28 sps:$4 sm:$0xff]  }
 0x27a   : > { %3992 = vmatprep.subr.bf16.mxu1 %v6497_v34  ;;  %v6532_v34 = vld [vmem:[%s9274_s5 + $0x43c] ss:$28 sps:$4 sm:$0xff]  }
 0x27b   : > { %3476 = vmatmul.mubr.bf16.gmra.mrb[116].mxu1 %v7931_v6  ;;  %3862 = vmatmul.mubr.bf16.gmra.mrb[116].mxu0 %v7931_v6 }
 0x27c   : > { %3485 = vmatprep.mubr.bf16.mxu1 %v7979_v35  ;;  %3871 = vmatprep.mubr.bf16.mxu0 %v7979_v35 }
 0x27d   : > { %3993 = vmatpush1.bf16.msra.mxu1 %v6495_v57  ;;  %v6541_v57 = vld [vmem:[%s9274_s5 + $0x600] ss:$28 sps:$4 sm:$0xff]  }
 0x27e   : > { %3994 = vmatprep.subr.bf16.mxu1 %v6500_v25  ;;  %v6530_v25 = vld [vmem:[%s9274_s5 + $0x438] ss:$28 sps:$4 sm:$0xff]  }
 0x281   : > { %3995 = vmatpush1.bf16.msra.mxu1 %v6498_v55  ;;  %v6542_v55 = vld [vmem:[%s9274_s5 + $0x440] ss:$28 sps:$4 sm:$0xff]  }
 0x282   : > { %3996 = vmatprep.subr.bf16.mxu1 %v6505_v9  ;;  %v6537_v9 = vld [vmem:[%s9274_s5 + $0x474] ss:$28 sps:$4 sm:$0xff]  }
 0x283   : > { %3486 = vmatmul.mubr.bf16.gmra.mrb[120].mxu1 %v7975_v31  ;;  %3872 = vmatmul.mubr.bf16.gmra.mrb[120].mxu0 %v7975_v31 }
 0x284   : > { %3495 = vmatprep.mubr.bf16.mxu1 %v8023_v29  ;;  %3881 = vmatprep.mubr.bf16.mxu0 %v8023_v29 }
 0x285   : > { %3997 = vmatpush1.bf16.msra.mxu1 %v6503_v54  ;;  %v6550_v54 = vld [vmem:[%s9274_s5 + $0x478] ss:$28 sps:$4 sm:$0xff]  }
 0x286   : > { %3998 = vmatprep.subr.bf16.mxu1 %v6508_v36  ;;  %v6540_v36 = vld [vmem:[%s9274_s5 + $0x4ac] ss:$28 sps:$4 sm:$0xff]  }
 0x289   : > { %3999 = vmatpush1.bf16.msra.mxu1 %v6506_v32  ;;  %v6557_v32 = vld [vmem:[%s9274_s5 + $0x670] ss:$28 sps:$4 sm:$0xff]  }
 0x28a   : > { %4000 = vmatprep.subr.bf16.mxu1 %v6513_v12  ;;  %v6538_v12 = vld [vmem:[%s9274_s5 + $0x4a8] ss:$28 sps:$4 sm:$0xff]  }
 0x28b   : > { %3496 = vmatmul.mubr.bf16.gmra.mrb[124].mxu1 %v8019_v46  ;;  %3882 = vmatmul.mubr.bf16.gmra.mrb[124].mxu0 %v8019_v46 }
 0x28c   : > { %3505 = vmatprep.mubr.bf16.mxu1 %v8067_v38  ;;  %3891 = vmatprep.mubr.bf16.mxu0 %v8067_v38 }
 0x28d   : > { %4001 = vmatpush1.bf16.msra.mxu1 %v6511_v3  ;;  %v6558_v3 = vld [vmem:[%s9274_s5 + $0x4b0] ss:$28 sps:$4 sm:$0xff]  }
 0x28e   : > { %4002 = vmatprep.subr.bf16.mxu1 %v6516_v37  ;;  %v6545_v37 = vld [vmem:[%s9274_s5 + $0x4e4] ss:$28 sps:$4 sm:$0xff]  }
 0x291   : > { %4003 = vmatpush1.bf16.msra.mxu1 %v6514_v4  ;;  %v6566_v4 = vld [vmem:[%s9274_s5 + $0x4e8] ss:$28 sps:$4 sm:$0xff]  }
 0x292   : > { %4165 = vmatprep.subr.bf16.mxu1 %v6521_v60  ;;  %v6548_v60 = vld [vmem:[%s9274_s5 + $0x51c] ss:$28 sps:$4 sm:$0xff]  }
 0x293   : > { %3506 = vmatmul.mubr.bf16.gmra.mrb[128].mxu1 %v8063_v7  ;;  %3892 = vmatmul.mubr.bf16.gmra.mrb[128].mxu0 %v8063_v7 }
 0x294   : > { %3515 = vmatprep.mubr.bf16.mxu1 %v8087_v27  ;;  %3901 = vmatprep.mubr.bf16.mxu0 %v8087_v27 }
 0x29b   : > { %3516 = vmatmul.mubr.bf16.gmra.mrb[132].mxu1 %v8083_v39  ;;  %3902 = vmatmul.mubr.bf16.gmra.mrb[132].mxu0 %v8083_v39 }
 0x29c   : > { %3525 = vmatprep.mubr.bf16.mxu1 %v8107_v20  ;;  %3911 = vmatprep.mubr.bf16.mxu0 %v8107_v20 }
 0x2a3   : > { %3526 = vmatmul.mubr.bf16.gmra.mrb[136].mxu1 %v8103_v14  ;;  %3912 = vmatmul.mubr.bf16.gmra.mrb[136].mxu0 %v8103_v14 }
 0x2a4   : > { %3535 = vmatprep.mubr.bf16.mxu1 %v8127_v53  ;;  %3921 = vmatprep.mubr.bf16.mxu0 %v8127_v53 }
 0x2ab   : > { %3536 = vmatmul.mubr.bf16.gmra.mrb[140].mxu1 %v8123_v63  ;;  %3922 = vmatmul.mubr.bf16.gmra.mrb[140].mxu0 %v8123_v63 }
 0x2ac   : > { %3545 = vmatprep.mubr.bf16.mxu1 %v8147_v21  ;;  %3931 = vmatprep.mubr.bf16.mxu0 %v8147_v21 }
 0x2b3   : > { %3546 = vmatmul.mubr.bf16.gmra.mrb[144].mxu1 %v8143_v0  ;;  %3932 = vmatmul.mubr.bf16.gmra.mrb[144].mxu0 %v8143_v0 }
 0x2b4   : > { %3555 = vmatprep.mubr.bf16.mxu1 %v8167_v5  ;;  %3941 = vmatprep.mubr.bf16.mxu0 %v8167_v5 }
 0x2bb   : > { %3556 = vmatmul.mubr.bf16.gmra.mrb[148].mxu1 %v8163_v40  ;;  %3942 = vmatmul.mubr.bf16.gmra.mrb[148].mxu0 %v8163_v40 }
 0x2bc   : > { %3565 = vmatprep.mubr.bf16.mxu1 %v8187_v10  ;;  %3951 = vmatprep.mubr.bf16.mxu0 %v8187_v10 }
 0x2c3   : > { %3566 = vmatmul.mubr.bf16.gmra.mrb[152].mxu1 %v8183_v58  ;;  %3952 = vmatmul.mubr.bf16.gmra.mrb[152].mxu0 %v8183_v58 }
 0x2c4   : > { %3575 = vmatprep.mubr.bf16.mxu1 %v8207_v8  ;;  %3961 = vmatprep.mubr.bf16.mxu0 %v8207_v8 }
 0x2cb   : > { %3576 = vmatmul.mubr.bf16.gmra.mrb[156].mxu1 %v8203_v51  ;;  %3962 = vmatmul.mubr.bf16.gmra.mrb[156].mxu0 %v8203_v51 }
 0x2cc   : > { %4004 = vmatprep.mubr.bf16.mxu1 %v7713_v13  ;;  %4390 = vmatprep.mubr.bf16.mxu0 %v7713_v13  ;;  %v6526_v13 = vld [vmem:[%s9274_s5 + $0x3d0] ss:$28 sps:$4 sm:$0xff]  }
 0x2d3   : > { %4005 = vmatmul.mubr.bf16.vlgmr.msra.gmra.mrb[160].mxu1 %v7709_v11  ;;  %4391 = vmatmul.mubr.bf16.vlgmr.msra.gmra.mrb[160].mxu0 %v7709_v11  ;;  %v6529_v11 = vld [vmem:[%s9274_s5 + $0x404] ss:$28 sps:$4 sm:$0xff]  }
 0x2d4   : > { %5634 = vmatpush3.bf16.msra.mxu0 %v6518_v24  ;;  %4014 = vmatprep.mubr.bf16.mxu1 %v7757_v52  ;;  %v6573_v24 = vld [vmem:[%s9274_s5 + $0x6e0] ss:$28 sps:$4 sm:$0xff]  }
 0x2d5   : > { %4398 = vmatprep.mubr.bf16.mxu0 %v7757_v52  ;;  %4166 = vmatpush1.bf16.msra.mxu1 %v6519_v47  ;;  %v6527_v52 = vld [vmem:[%s9274_s5 + $0x400] ss:$28 sps:$4 sm:$0xff]   ;;  %v6546_v47 = vld [vmem:[%s9274_s5 + $0x518] ss:$28 sps:$4 sm:$0xff]  }
 0x2d6   : > { %4167 = vmatprep.subr.bf16.mxu1 %v6524_v61  ;;  %5635 = vmatprep.subr.bf16.mxu0 %v6525_v48  ;;  %v6574_v61 = vld [vmem:[%s9274_s5 + $0x520] ss:$28 sps:$4 sm:$0xff]   ;;  %v6553_v48 = vld [vmem:[%s9274_s5 + $0x554] ss:$28 sps:$4 sm:$0xff]  }
 0x2d8   : > { %5636 = vmatpush3.bf16.msra.mxu0 %v6526_v13  ;;  %v9346_v13 = vld [vmem:[#allocation5_spill] sm:$0xff] }
 0x2d9   : > { %4168 = vmatpush1.bf16.msra.mxu1 %v6522_v59  ;;  %5637 = vmatprep.subr.bf16.mxu0 %v6533_v62  ;;  %v9347_v59 = vld [vmem:[#allocation7_spill] sm:$0xff] }
 0x2da   : > { %4169 = vmatprep.subr.bf16.mxu1 %v6529_v11  ;;  %v6554_v62 = vld [vmem:[%s9274_s5 + $0x588] ss:$28 sps:$4 sm:$0xff]  }
 0x2db   : > { %4015 = vmatmul.mubr.bf16.gmra.mrb[164].mxu1 %v7753_v49  ;;  %4399 = vmatmul.mubr.bf16.gmra.mrb[164].mxu0 %v7753_v49  ;;  %v6549_v49 = vld [vmem:[%s9274_s5 + $0x638] ss:$28 sps:$4 sm:$0xff]   ;;  %v6561_v11 = vld [vmem:[%s9274_s5 + $0x5c4] ss:$28 sps:$4 sm:$0xff]  }
 0x2dc   : > { %4024 = vmatprep.mubr.bf16.mxu1 %v7801_v44  ;;  %4406 = vmatprep.mubr.bf16.mxu0 %v7801_v44  ;;  %v6535_v44 = vld [vmem:[%s9274_s5 + $0x470] ss:$28 sps:$4 sm:$0xff]  }
 0x2dd   : > { %4170 = vmatpush1.bf16.msra.mxu1 %v6527_v52  ;;  %5638 = vmatpush3.bf16.msra.mxu0 %v6534_v41  ;;  %v6559_v52 = vld [vmem:[%s9274_s5 + $0x5c0] ss:$28 sps:$4 sm:$0xff]  }
 0x2de   : > { %4171 = vmatprep.subr.bf16.mxu1 %v6532_v34  ;;  %5639 = vmatprep.subr.bf16.mxu0 %v6541_v57  ;;  %v6564_v41 = vld [vmem:[%s9274_s5 + $0x5fc] ss:$28 sps:$4 sm:$0xff]   ;;  %v9348_v34 = vld [vmem:[#allocation6_spill] sm:$0xff] }
 0x2df   : > { %v9349_v57 = vld [vmem:[#allocation9_spill] sm:$0xff] }
 0x2e1   : > { %4172 = vmatpush1.bf16.msra.mxu1 %v6530_v25  ;;  %5640 = vmatpush3.bf16.msra.mxu0 %v6542_v55  ;;  %v6562_v25 = vld [vmem:[%s9274_s5 + $0x5f8] ss:$28 sps:$4 sm:$0xff]  }
 0x2e2   : > { %4173 = vmatprep.subr.bf16.mxu1 %v6537_v9  ;;  %5641 = vmatprep.subr.bf16.mxu0 %v6549_v49  ;;  %v6569_v55 = vld [vmem:[%s9274_s5 + $0x634] ss:$28 sps:$4 sm:$0xff]   ;;  %v6572_v49 = vld [vmem:[%s9274_s5 + $0x66c] ss:$28 sps:$4 sm:$0xff]  }
 0x2e3   : > { %4025 = vmatmul.mubr.bf16.gmra.mrb[168].mxu1 %v7797_v42  ;;  %4407 = vmatmul.mubr.bf16.gmra.mrb[168].mxu0 %v7797_v42  ;;  %v6565_v42 = vld [vmem:[%s9274_s5 + $0x6a8] ss:$28 sps:$4 sm:$0xff]   ;;  %v6567_v9 = vld [vmem:[%s9274_s5 + $0x630] ss:$28 sps:$4 sm:$0xff]  }
 0x2e4   : > { %4034 = vmatprep.mubr.bf16.mxu1 %v7845_v26  ;;  %4414 = vmatprep.mubr.bf16.mxu0 %v7845_v26  ;;  %v6543_v26 = vld [vmem:[%s9274_s5 + $0x4e0] ss:$28 sps:$4 sm:$0xff]  }
 0x2e5   : > { %4174 = vmatpush1.bf16.msra.mxu1 %v6535_v44  ;;  %5642 = vmatpush3.bf16.msra.mxu0 %v6550_v54  ;;  %v9350_v44 = vld [vmem:[#allocation8_spill] sm:$0xff]  ;;  %v9351_v54 = vld [vmem:[#allocation11_spill] sm:$0xff] }
 0x2e6   : > { %4175 = vmatprep.subr.bf16.mxu1 %v6540_v36  ;;  %5643 = vmatprep.subr.bf16.mxu0 %v6557_v32  ;;  %v6570_v36 = vld [vmem:[%s9274_s5 + $0x668] ss:$28 sps:$4 sm:$0xff]  }
 0x2e7   : > { %v6577_v32 = vld [vmem:[%s9274_s5 + $0x6a4] ss:$28 sps:$4 sm:$0xff]  }
 0x2e9   : > { %4176 = vmatpush1.bf16.msra.mxu1 %v6538_v12  ;;  %5644 = vmatpush3.bf16.msra.mxu0 %v6558_v3  ;;  %v6575_v12 = vld [vmem:[%s9274_s5 + $0x6a0] ss:$28 sps:$4 sm:$0xff]  }
 0x2ea   : > { %4177 = vmatprep.subr.bf16.mxu1 %v6545_v37  ;;  %5645 = vmatprep.subr.bf16.mxu0 %v6565_v42  ;;  %v6580_v3 = vld [vmem:[%s9274_s5 + $0x6dc] ss:$28 sps:$4 sm:$0xff]   ;;  %v9352_v37 = vld [vmem:[#allocation10_spill] sm:$0xff] }
 0x2eb   : > { %4035 = vmatmul.mubr.bf16.gmra.mrb[172].mxu1 %v7841_v22  ;;  %4415 = vmatmul.mubr.bf16.gmra.mrb[172].mxu0 %v7841_v22  ;;  %v6551_v22 = vld [vmem:[%s9274_s5 + $0x550] ss:$28 sps:$4 sm:$0xff]   ;;  %v9353_v42 = vld [vmem:[#allocation13_spill] sm:$0xff] }
 0x2ec   : > { %4044 = vmatprep.mubr.bf16.mxu1 %v7889_v17  ;;  %4422 = vmatprep.mubr.bf16.mxu0 %v7889_v17  ;;  %v6556_v17 = vld [vmem:[%s9274_s5 + $0x58c] ss:$28 sps:$4 sm:$0xff]  }
 0x2ed   : > { %4178 = vmatpush1.bf16.msra.mxu1 %v6543_v26  ;;  %5646 = vmatpush3.bf16.msra.mxu0 %v6566_v4  ;;  %v6578_v26 = vld [vmem:[%s9274_s5 + $0x6d8] ss:$28 sps:$4 sm:$0xff]  }
 0x2ee   : > { %4179 = vmatprep.subr.bf16.mxu1 %v6548_v60  ;;  %5647 = vmatprep.subr.bf16.mxu0 %v6573_v24  ;;  %v9354_v4 = vld [vmem:[#allocation12_spill] sm:$0xff]  ;;  %v9355_v60 = vld [vmem:[#allocation15_spill] sm:$0xff]  ;;  %v9356_v24 = vld [vmem:[#allocation14_spill] sm:$0xff] }
 0x2f1   : > { %4180 = vmatpush1.bf16.msra.mxu1 %v6546_v47  ;;  %5648 = vmatpush3.bf16.msra.mxu0 %v6574_v61  ;;  %v9357_v47 = vld [vmem:[#allocation17_spill] sm:$0xff]  ;;  %v2011_v61 = vld [vmem:[%s9275_s6] sm:$0xff] }
 0x2f2   : > { %4181 = vmatprep.subr.bf16.mxu1 %v6553_v48  ;;  %v9358_v48 = vld [vmem:[#allocation16_spill] sm:$0xff] }
 0x2f3   : > { %4045 = vmatmul.mubr.bf16.gmra.mrb[176].mxu1 %v9346_v13  ;;  %4423 = vmatmul.mubr.bf16.gmra.mrb[176].mxu0 %v9346_v13  ;;  %v9360_v13 = vld [vmem:[#allocation2_spill] sm:$0xff] }
 0x2f4   : > { %4054 = vmatprep.mubr.bf16.mxu1 %v9347_v59  ;;  %4430 = vmatprep.mubr.bf16.mxu0 %v9347_v59  ;;  %v9361_v59 = vsub.s32 2, %v9360_v13 }
 0x2f5   : > { %4182 = vmatpush1.bf16.msra.mxu1 %v6551_v22  ;;  %v9359_v22 = vld [vmem:[#allocation3_spill] sm:$0xff] }
 0x2f6   : > { %4183 = vmatprep.subr.bf16.mxu1 %v6556_v17  ;;  %v8607_v17 = vrot.slane %v2011_v61, %v9359_v22 }
 0x2f9   : > { %4184 = vmatpush1.bf16.msra.mxu1 %v6554_v62  ;;  %v8611_v62 = vrot.slane %v2011_v61, %v9361_v59 }
 0x2fa   : > { %4185 = vmatprep.subr.bf16.mxu1 %v6561_v11  ;;  %v9362_v11 = vld [vmem:[#allocation19_spill] sm:$0xff] }
 0x2fb   : > { %4055 = vmatmul.mubr.bf16.gmra.mrb[180].mxu1 %v9348_v34  ;;  %4431 = vmatmul.mubr.bf16.gmra.mrb[180].mxu0 %v9348_v34  ;;  %v9364_v34 = vsub.s32 3, %v9360_v13 }
 0x2fc   : > { %4064 = vmatprep.mubr.bf16.mxu1 %v9349_v57  ;;  %4438 = vmatprep.mubr.bf16.mxu0 %v9349_v57 }
 0x2fd   : > { %4186 = vmatpush1.bf16.msra.mxu1 %v6559_v52  ;;  %v9363_v52 = vld [vmem:[#allocation4_spill] sm:$0xff]  ;;  %v8620_v57 = vrot.slane %v2011_v61, %v9364_v34 }
 0x2fe   : > { %4187 = vmatprep.subr.bf16.mxu1 %v6564_v41  ;;  %v8616_v41 = vrot.slane %v2011_v61, %v9363_v52  ;;  %v9366_v61 = vld [vmem:[#allocation21_spill] sm:$0xff] }
 0x301   : > { %4188 = vmatpush1.bf16.msra.mxu1 %v6562_v25 }
 0x302   : > { %4189 = vmatprep.subr.bf16.mxu1 %v6569_v55 }
 0x303   : > { %4065 = vmatmul.mubr.bf16.gmra.mrb[184].mxu1 %v9350_v44  ;;  %4439 = vmatmul.mubr.bf16.gmra.mrb[184].mxu0 %v9350_v44 }
 0x304   : > { %4074 = vmatprep.mubr.bf16.mxu1 %v9351_v54  ;;  %4446 = vmatprep.mubr.bf16.mxu0 %v9351_v54 }
 0x305   : > { %4190 = vmatpush1.bf16.msra.mxu1 %v6567_v9 }
 0x306   : > { %4191 = vmatprep.subr.bf16.mxu1 %v6572_v49 }
 0x309   : > { %4192 = vmatpush1.bf16.msra.mxu1 %v6570_v36 }
 0x30a   : > { %4193 = vmatprep.subr.bf16.mxu1 %v6577_v32 }
 0x30b   : > { %4075 = vmatmul.mubr.bf16.gmra.mrb[188].mxu1 %v9352_v37  ;;  %4447 = vmatmul.mubr.bf16.gmra.mrb[188].mxu0 %v9352_v37 }
 0x30c   : > { %4084 = vmatprep.mubr.bf16.mxu1 %v9353_v42  ;;  %4454 = vmatprep.mubr.bf16.mxu0 %v9353_v42 }
 0x30d   : > { %4194 = vmatpush1.bf16.msra.mxu1 %v6575_v12 }
 0x30e   : > { %4195 = vmatprep.subr.bf16.mxu1 %v6580_v3 }
 0x311   : > { %4196 = vmatpush1.bf16.msra.mxu1 %v6578_v26 }
 0x313   : > { %4085 = vmatmul.mubr.bf16.gmra.mrb[192].mxu1 %v9354_v4  ;;  %4455 = vmatmul.mubr.bf16.gmra.mrb[192].mxu0 %v9354_v4 }
 0x314   : > { %4094 = vmatprep.mubr.bf16.mxu1 %v9355_v60  ;;  %4462 = vmatprep.mubr.bf16.mxu0 %v9355_v60 }
 0x31b   : > { %4095 = vmatmul.mubr.bf16.gmra.mrb[196].mxu1 %v9356_v24  ;;  %4463 = vmatmul.mubr.bf16.gmra.mrb[196].mxu0 %v9356_v24  ;;  %v9365_v24 = vld [vmem:[#allocation18_spill] sm:$0xff] }
 0x31c   : > { %4104 = vmatprep.mubr.bf16.mxu1 %v9357_v47  ;;  %4470 = vmatprep.mubr.bf16.mxu0 %v9357_v47 }
 0x323   : > { %4105 = vmatmul.mubr.bf16.gmra.mrb[200].mxu1 %v9358_v48  ;;  %4471 = vmatmul.mubr.bf16.gmra.mrb[200].mxu0 %v9358_v48 }
 0x324   : > { %4114 = vmatprep.mubr.bf16.mxu1 %v9362_v11  ;;  %4478 = vmatprep.mubr.bf16.mxu0 %v9362_v11 }
 0x326   : > { %v3427_v25 = vpop.f32.mrb[96].mxu1  ;;  %v3813_v55 = vpop.f32.mrb[96].mxu0 }
 0x327   : > { %v5749_v9 = vadd.f32 %v3427_v25, %v8607_v17  ;;  %v5813_v49 = vadd.f32 %v3813_v55, %v8611_v62  ;;  %v3429_v44 = vpop.f32.mrb[97].mxu1  ;;  %v3815_v54 = vpop.f32.mrb[97].mxu0 }
 0x328   : > { %v5750_v36 = vadd.f32 %v3429_v44, %v8616_v41  ;;  %v5814_v32 = vadd.f32 %v3815_v54, %v8620_v57  ;;  %v3431_v12 = vpop.f32.mrb[98].mxu1  ;;  %v3817_v3 = vpop.f32.mrb[98].mxu0 }
 0x329   : > { %6581 = vtanh.f32 %v5749_v9  ;;  %v5751_v37 = vadd.f32 %v3431_v12, %v8607_v17  ;;  %v3433_v42 = vpop.f32.mrb[99].mxu1  ;;  %v3819_v26 = vpop.f32.mrb[99].mxu0  ;;  %v5815_v4 = vadd.f32 %v3817_v3, %v8611_v62 }
 0x32a   : > { %6583 = vtanh.f32 %v5813_v49  ;;  %v5752_v60 = vadd.f32 %v3433_v42, %v8616_v41  ;;  %v5816_v47 = vadd.f32 %v3819_v26, %v8620_v57 }
 0x32b   : > { %6585 = vtanh.f32 %v5750_v36  ;;  %4115 = vmatmul.mubr.bf16.gmra.mrb[204].mxu1 %v9365_v24  ;;  %4479 = vmatmul.mubr.bf16.gmra.mrb[204].mxu0 %v9365_v24 }
 0x32c   : > { %6587 = vtanh.f32 %v5814_v32  ;;  %4124 = vmatprep.mubr.bf16.mxu1 %v9366_v61  ;;  %4486 = vmatprep.mubr.bf16.mxu0 %v9366_v61 }
 0x32d   : > { %6589 = vtanh.f32 %v5751_v37  ;;  %v9367_v37 = vld [vmem:[#allocation20_spill] sm:$0xff] }
 0x32e   : > { %6591 = vtanh.f32 %v5815_v4  ;;  %v3437_v48 = vpop.f32.mrb[100].mxu1  ;;  %v3823_v22 = vpop.f32.mrb[100].mxu0  ;;  %v9368_v4 = vld [vmem:[#allocation23_spill] sm:$0xff] }
 0x32f   : > { %6593 = vtanh.f32 %v5752_v60  ;;  %v5753_v59 = vadd.f32 %v3437_v48, %v8607_v17  ;;  %v5817_v11 = vadd.f32 %v3823_v22, %v8611_v62  ;;  %v3439_v52 = vpop.f32.mrb[101].mxu1  ;;  %v3825_v34 = vpop.f32.mrb[101].mxu0 }
 0x330   : > { %6595 = vtanh.f32 %v5816_v47  ;;  %v5754_v25 = vadd.f32 %v3439_v52, %v8616_v41  ;;  %v5818_v55 = vadd.f32 %v3825_v34, %v8620_v57  ;;  %v3441_v9 = vpop.f32.mrb[102].mxu1  ;;  %v3827_v49 = vpop.f32.mrb[102].mxu0 }
 0x331   : > { %6597 = vtanh.f32 %v5753_v59  ;;  %v5755_v44 = vadd.f32 %v3441_v9, %v8607_v17  ;;  %v3443_v54 = vpop.f32.mrb[103].mxu1  ;;  %v3829_v36 = vpop.f32.mrb[103].mxu0  ;;  %v5819_v32 = vadd.f32 %v3827_v49, %v8611_v62 }
 0x332   : > { %6599 = vtanh.f32 %v5817_v11  ;;  %v5756_v3 = vadd.f32 %v3443_v54, %v8616_v41  ;;  %v5820_v26 = vadd.f32 %v3829_v36, %v8620_v57 }
 0x333   : > { %v6582_v12 = vpop.eup %6581  ;;  %6601 = vtanh.f32 %v5754_v25  ;;  %4125 = vmatmul.mubr.bf16.gmra.mrb[208].mxu1 %v9367_v37  ;;  %4487 = vmatmul.mubr.bf16.gmra.mrb[208].mxu0 %v9367_v37 }
 0x334   : > { %v6584_v42 = vpop.eup %6583  ;;  %4904 = vst [vmem:[%s8642_s16] sm:$0xff] %v6582_v12  ;;  %6603 = vtanh.f32 %v5818_v55  ;;  %4134 = vmatprep.mubr.bf16.mxu1 %v9368_v4  ;;  %4494 = vmatprep.mubr.bf16.mxu0 %v9368_v4 }
 0x335   : > { %v6586_v60 = vpop.eup %6585  ;;  %4906 = vst [vmem:[%s8642_s16 + $0x10] sm:$0xff] %v6584_v42  ;;  %6605 = vtanh.f32 %v5755_v44 }
 0x336   : > { %v6588_v24 = vpop.eup %6587  ;;  %4905 = vst [vmem:[%s8642_s16 + $0x8] sm:$0xff] %v6586_v60  ;;  %6607 = vtanh.f32 %v5819_v32  ;;  %v3447_v47 = vpop.f32.mrb[104].mxu1 }
 0x337   : > { %v3833_v61 = vpop.f32.mrb[104].mxu0  ;;  %v6590_v48 = vpop.eup %6589  ;;  %4907 = vst [vmem:[%s8642_s16 + $0x18] sm:$0xff] %v6588_v24  ;;  %6609 = vtanh.f32 %v5756_v3  ;;  %v5757_v22 = vadd.f32 %v3447_v47, %v8607_v17  ;;  %v9370_v24 = vld [vmem:[#allocation24_spill] sm:$0xff] }
 0x338   : > { %v5821_v59 = vadd.f32 %v3833_v61, %v8611_v62  ;;  %v3449_v11 = vpop.f32.mrb[105].mxu1  ;;  %v3835_v52 = vpop.f32.mrb[105].mxu0  ;;  %4911 = vst [vmem:[%s8642_s16 + $0x38] sm:$0xff] %v6590_v48  ;;  %6611 = vtanh.f32 %v5820_v26  ;;  %v9369_v26 = vld [vmem:[#allocation22_spill] sm:$0xff] }
 0x339   : > { %v6592_v34 = vpop.eup %6591  ;;  %v5758_v25 = vadd.f32 %v3449_v11, %v8616_v41  ;;  %v5822_v55 = vadd.f32 %v3835_v52, %v8620_v57  ;;  %v3451_v9 = vpop.f32.mrb[106].mxu1  ;;  %6613 = vtanh.f32 %v5757_v22 }
 0x33a   : > { %v3837_v49 = vpop.f32.mrb[106].mxu0  ;;  %v6594_v44 = vpop.eup %6593  ;;  %4913 = vst [vmem:[%s8642_s16 + $0x48] sm:$0xff] %v6592_v34  ;;  %v5759_v54 = vadd.f32 %v3451_v9, %v8607_v17  ;;  %6615 = vtanh.f32 %v5821_v59 }
 0x33b   : > { %v3453_v36 = vpop.f32.mrb[107].mxu1  ;;  %v3839_v32 = vpop.f32.mrb[107].mxu0  ;;  %4912 = vst [vmem:[%s8642_s16 + $0x40] sm:$0xff] %v6594_v44  ;;  %v5823_v3 = vadd.f32 %v3837_v49, %v8611_v62  ;;  %6617 = vtanh.f32 %v5758_v25  ;;  %4135 = vmatmul.mubr.bf16.gmra.mrb[212].mxu1 %v9369_v26  ;;  %4495 = vmatmul.mubr.bf16.gmra.mrb[212].mxu0 %v9369_v26 }
 0x33c   : > { %v6596_v12 = vpop.eup %6595  ;;  %v5760_v42 = vadd.f32 %v3453_v36, %v8616_v41  ;;  %6619 = vtanh.f32 %v5822_v55  ;;  %v5824_v60 = vadd.f32 %v3839_v32, %v8620_v57  ;;  %4144 = vmatprep.mubr.bf16.mxu1 %v9370_v24  ;;  %4502 = vmatprep.mubr.bf16.mxu0 %v9370_v24 }
 0x33d   : > { %v6598_v37 = vpop.eup %6597  ;;  %4914 = vst [vmem:[%s8642_s16 + $0x50] sm:$0xff] %v6596_v12  ;;  %6621 = vtanh.f32 %v5759_v54 }
 0x33e   : > { %v6600_v4 = vpop.eup %6599  ;;  %4918 = vst [vmem:[%s8642_s16 + $0x70] sm:$0xff] %v6598_v37  ;;  %6623 = vtanh.f32 %v5823_v3  ;;  %v3457_v48 = vpop.f32.mrb[108].mxu1 }
 0x33f   : > { %v6602_v47 = vpop.eup %6601  ;;  %4920 = vst [vmem:[%s8642_s16 + $0x80] sm:$0xff] %v6600_v4  ;;  %v3843_v22 = vpop.f32.mrb[108].mxu0  ;;  %6625 = vtanh.f32 %v5760_v42  ;;  %v5761_v11 = vadd.f32 %v3457_v48, %v8607_v17 }
 0x340   : > { %v6604_v61 = vpop.eup %6603  ;;  %4919 = vst [vmem:[%s8642_s16 + $0x78] sm:$0xff] %v6602_v47  ;;  %v5825_v52 = vadd.f32 %v3843_v22, %v8611_v62  ;;  %v3459_v34 = vpop.f32.mrb[109].mxu1  ;;  %6627 = vtanh.f32 %v5824_v60 }
 0x341   : > { %v6606_v59 = vpop.eup %6605  ;;  %4921 = vst [vmem:[%s8642_s16 + $0x88] sm:$0xff] %v6604_v61  ;;  %v3845_v25 = vpop.f32.mrb[109].mxu0  ;;  %v5762_v9 = vadd.f32 %v3459_v34, %v8616_v41  ;;  %6629 = vtanh.f32 %v5761_v11 }
 0x342   : > { %v6608_v55 = vpop.eup %6607  ;;  %4925 = vst [vmem:[%s8642_s16 + $0xa8] sm:$0xff] %v6606_v59  ;;  %v5826_v49 = vadd.f32 %v3845_v25, %v8620_v57  ;;  %v3461_v44 = vpop.f32.mrb[110].mxu1  ;;  %6631 = vtanh.f32 %v5825_v52 }
 0x343   : > { %v3847_v54 = vpop.f32.mrb[110].mxu0  ;;  %v6610_v36 = vpop.eup %6609  ;;  %4927 = vst [vmem:[%s8642_s16 + $0xb8] sm:$0xff] %v6608_v55  ;;  %v5763_v32 = vadd.f32 %v3461_v44, %v8607_v17  ;;  %6633 = vtanh.f32 %v5762_v9  ;;  %4145 = vmatmul.mubr.bf16.gmra.mrb[216].mxu1 %v8181_v33  ;;  %4503 = vmatmul.mubr.bf16.gmra.mrb[216].mxu0 %v8181_v33 }
 0x344   : > { %v3463_v12 = vpop.f32.mrb[111].mxu1  ;;  %v3849_v3 = vpop.f32.mrb[111].mxu0  ;;  %4926 = vst [vmem:[%s8642_s16 + $0xb0] sm:$0xff] %v6610_v36  ;;  %v5827_v42 = vadd.f32 %v3847_v54, %v8611_v62  ;;  %6635 = vtanh.f32 %v5826_v49  ;;  %4154 = vmatprep.mubr.bf16.mxu1 %v8205_v1  ;;  %4510 = vmatprep.mubr.bf16.mxu0 %v8205_v1 }
 0x345   : > { %v6612_v37 = vpop.eup %6611  ;;  %v5764_v4 = vadd.f32 %v3463_v12, %v8616_v41  ;;  %v5828_v24 = vadd.f32 %v3849_v3, %v8620_v57  ;;  %6637 = vtanh.f32 %v5763_v32 }
 0x346   : > { %v6614_v26 = vpop.eup %6613  ;;  %4928 = vst [vmem:[%s8642_s16 + $0xc0] sm:$0xff] %v6612_v37  ;;  %6639 = vtanh.f32 %v5827_v42  ;;  %v3467_v48 = vpop.f32.mrb[112].mxu1 }
 0x347   : > { %v6616_v60 = vpop.eup %6615  ;;  %4932 = vst [vmem:[%s8642_s16 + $0xe0] sm:$0xff] %v6614_v26  ;;  %v3853_v22 = vpop.f32.mrb[112].mxu0  ;;  %6641 = vtanh.f32 %v5764_v4  ;;  %v5765_v59 = vadd.f32 %v3467_v48, %v8607_v17 }
 0x348   : > { %v6618_v47 = vpop.eup %6617  ;;  %4934 = vst [vmem:[%s8642_s16 + $0xf0] sm:$0xff] %v6616_v60  ;;  %v5829_v11 = vadd.f32 %v3853_v22, %v8611_v62  ;;  %v3469_v52 = vpop.f32.mrb[113].mxu1  ;;  %6643 = vtanh.f32 %v5828_v24 }
 0x349   : > { %v6620_v61 = vpop.eup %6619  ;;  %4933 = vst [vmem:[%s8642_s16 + $0xe8] sm:$0xff] %v6618_v47  ;;  %v3855_v1 = vpop.f32.mrb[113].mxu0  ;;  %v5766_v25 = vadd.f32 %v3469_v52, %v8616_v41  ;;  %6645 = vtanh.f32 %v5765_v59 }
 0x34a   : > { %v6622_v33 = vpop.eup %6621  ;;  %4935 = vst [vmem:[%s8642_s16 + $0xf8] sm:$0xff] %v6620_v61  ;;  %v5830_v55 = vadd.f32 %v3855_v1, %v8620_v57  ;;  %v3471_v9 = vpop.f32.mrb[114].mxu1  ;;  %6647 = vtanh.f32 %v5829_v11 }
 0x34b   : > { %v6624_v34 = vpop.eup %6623  ;;  %4939 = vst [vmem:[%s8642_s16 + $0x118] sm:$0xff] %v6622_v33  ;;  %v3857_v49 = vpop.f32.mrb[114].mxu0  ;;  %v5767_v54 = vadd.f32 %v3471_v9, %v8607_v17  ;;  %6649 = vtanh.f32 %v5766_v25  ;;  %4155 = vmatmul.mubr.bf16.gmra.mrb[220].mxu1 %v8201_v45  ;;  %4511 = vmatmul.mubr.bf16.gmra.mrb[220].mxu0 %v8201_v45 }
 0x34c   : > { %v6626_v44 = vpop.eup %6625  ;;  %4941 = vst [vmem:[%s8642_s16 + $0x128] sm:$0xff] %v6624_v34  ;;  %v3473_v36 = vpop.f32.mrb[115].mxu1  ;;  %v5831_v3 = vadd.f32 %v3857_v49, %v8611_v62  ;;  %6651 = vtanh.f32 %v5830_v55  ;;  %4197 = vmatprep.mubr.bf16.mxu1 %v7715_v15  ;;  %4551 = vmatprep.mubr.bf16.mxu0 %v7715_v15 }
 0x34d   : > { %v3859_v32 = vpop.f32.mrb[115].mxu0  ;;  %v6628_v12 = vpop.eup %6627  ;;  %4940 = vst [vmem:[%s8642_s16 + $0x120] sm:$0xff] %v6626_v44  ;;  %v5768_v42 = vadd.f32 %v3473_v36, %v8616_v41  ;;  %6653 = vtanh.f32 %v5767_v54 }
 0x34e   : > { %v6630_v37 = vpop.eup %6629  ;;  %4942 = vst [vmem:[%s8642_s16 + $0x130] sm:$0xff] %v6628_v12  ;;  %v5832_v4 = vadd.f32 %v3859_v32, %v8620_v57  ;;  %6655 = vtanh.f32 %v5831_v3  ;;  %v3477_v47 = vpop.f32.mrb[116].mxu1 }
 0x34f   : > { %v6632_v26 = vpop.eup %6631  ;;  %4946 = vst [vmem:[%s8642_s16 + $0x150] sm:$0xff] %v6630_v37  ;;  %v3863_v61 = vpop.f32.mrb[116].mxu0  ;;  %6657 = vtanh.f32 %v5768_v42  ;;  %v5769_v48 = vadd.f32 %v3477_v47, %v8607_v17 }
 0x350   : > { %v6634_v60 = vpop.eup %6633  ;;  %4948 = vst [vmem:[%s8642_s16 + $0x160] sm:$0xff] %v6632_v26  ;;  %v5833_v22 = vadd.f32 %v3863_v61, %v8611_v62  ;;  %v3479_v33 = vpop.f32.mrb[117].mxu1  ;;  %6659 = vtanh.f32 %v5832_v4 }
 0x351   : > { %v6636_v24 = vpop.eup %6635  ;;  %4947 = vst [vmem:[%s8642_s16 + $0x158] sm:$0xff] %v6634_v60  ;;  %v3865_v15 = vpop.f32.mrb[117].mxu0  ;;  %v5770_v11 = vadd.f32 %v3479_v33, %v8616_v41  ;;  %6661 = vtanh.f32 %v5769_v48 }
 0x352   : > { %v6638_v45 = vpop.eup %6637  ;;  %4949 = vst [vmem:[%s8642_s16 + $0x168] sm:$0xff] %v6636_v24  ;;  %v5834_v52 = vadd.f32 %v3865_v15, %v8620_v57  ;;  %v3481_v1 = vpop.f32.mrb[118].mxu1  ;;  %6663 = vtanh.f32 %v5833_v22 }
 0x353   : > { %v6640_v59 = vpop.eup %6639  ;;  %4953 = vst [vmem:[%s8642_s16 + $0x188] sm:$0xff] %v6638_v45  ;;  %v3867_v34 = vpop.f32.mrb[118].mxu0  ;;  %v5771_v55 = vadd.f32 %v3481_v1, %v8607_v17  ;;  %6665 = vtanh.f32 %v5770_v11  ;;  %4198 = vmatmul.mubr.bf16.vlgmr.msra.gmra.mrb[160].mxu1 %v7711_v2  ;;  %4552 = vmatmul.mubr.bf16.vlgmr.msra.gmra.mrb[224].mxu0 %v7711_v2 }
 0x354   : > { %v6642_v25 = vpop.eup %6641  ;;  %4955 = vst [vmem:[%s8642_s16 + $0x198] sm:$0xff] %v6640_v59  ;;  %v3483_v9 = vpop.f32.mrb[119].mxu1  ;;  %v5835_v54 = vadd.f32 %v3867_v34, %v8611_v62  ;;  %6667 = vtanh.f32 %v5834_v52  ;;  %4207 = vmatprep.mubr.bf16.mxu1 %v7759_v56  ;;  %4559 = vmatprep.mubr.bf16.mxu0 %v7759_v56 }
 0x355   : > { %v3869_v49 = vpop.f32.mrb[119].mxu0  ;;  %v6644_v44 = vpop.eup %6643  ;;  %4954 = vst [vmem:[%s8642_s16 + $0x190] sm:$0xff] %v6642_v25  ;;  %v5772_v32 = vadd.f32 %v3483_v9, %v8616_v41  ;;  %6669 = vtanh.f32 %v5771_v55 }
 0x356   : > { %v6646_v36 = vpop.eup %6645  ;;  %4956 = vst [vmem:[%s8642_s16 + $0x1a0] sm:$0xff] %v6644_v44  ;;  %v5836_v3 = vadd.f32 %v3869_v49, %v8620_v57  ;;  %6671 = vtanh.f32 %v5835_v54  ;;  %v3487_v26 = vpop.f32.mrb[120].mxu1 }
 0x357   : > { %v6648_v12 = vpop.eup %6647  ;;  %4960 = vst [vmem:[%s8642_s16 + $0x1c0] sm:$0xff] %v6646_v36  ;;  %v3873_v4 = vpop.f32.mrb[120].mxu0  ;;  %6673 = vtanh.f32 %v5772_v32  ;;  %v5773_v60 = vadd.f32 %v3487_v26, %v8607_v17 }
 0x358   : > { %v6650_v37 = vpop.eup %6649  ;;  %4962 = vst [vmem:[%s8642_s16 + $0x1d0] sm:$0xff] %v6648_v12  ;;  %v5837_v24 = vadd.f32 %v3873_v4, %v8611_v62  ;;  %v3489_v47 = vpop.f32.mrb[121].mxu1  ;;  %6675 = vtanh.f32 %v5836_v3 }
 0x359   : > { %v6652_v42 = vpop.eup %6651  ;;  %4961 = vst [vmem:[%s8642_s16 + $0x1c8] sm:$0xff] %v6650_v37  ;;  %v3875_v56 = vpop.f32.mrb[121].mxu0  ;;  %v5774_v45 = vadd.f32 %v3489_v47, %v8616_v41  ;;  %6677 = vtanh.f32 %v5773_v60 }
 0x35a   : > { %v6654_v2 = vpop.eup %6653  ;;  %4963 = vst [vmem:[%s8642_s16 + $0x1d8] sm:$0xff] %v6652_v42  ;;  %v5838_v48 = vadd.f32 %v3875_v56, %v8620_v57  ;;  %v3491_v22 = vpop.f32.mrb[122].mxu1  ;;  %6679 = vtanh.f32 %v5837_v24 }
 0x35b   : > { %v6656_v61 = vpop.eup %6655  ;;  %4967 = vst [vmem:[%s8642_s16 + $0x1f8] sm:$0xff] %v6654_v2  ;;  %v3877_v33 = vpop.f32.mrb[122].mxu0  ;;  %v5775_v59 = vadd.f32 %v3491_v22, %v8607_v17  ;;  %6681 = vtanh.f32 %v5774_v45  ;;  %4208 = vmatmul.mubr.bf16.gmra.mrb[164].mxu1 %v7755_v50  ;;  %4560 = vmatmul.mubr.bf16.gmra.mrb[228].mxu0 %v7755_v50 }
 0x35c   : > { %v6658_v15 = vpop.eup %6657  ;;  %4969 = vst [vmem:[%s8642_s16 + $0x208] sm:$0xff] %v6656_v61  ;;  %v3493_v11 = vpop.f32.mrb[123].mxu1  ;;  %v5839_v34 = vadd.f32 %v3877_v33, %v8611_v62  ;;  %6683 = vtanh.f32 %v5838_v48  ;;  %4217 = vmatprep.mubr.bf16.mxu1 %v7803_v28  ;;  %4567 = vmatprep.mubr.bf16.mxu0 %v7803_v28 }
 0x35d   : > { %v3879_v52 = vpop.f32.mrb[123].mxu0  ;;  %v6660_v1 = vpop.eup %6659  ;;  %4968 = vst [vmem:[%s8642_s16 + $0x200] sm:$0xff] %v6658_v15  ;;  %v5776_v55 = vadd.f32 %v3493_v11, %v8616_v41  ;;  %6685 = vtanh.f32 %v5775_v59 }
 0x35e   : > { %v6662_v25 = vpop.eup %6661  ;;  %4970 = vst [vmem:[%s8642_s16 + $0x210] sm:$0xff] %v6660_v1  ;;  %v5840_v49 = vadd.f32 %v3879_v52, %v8620_v57  ;;  %6687 = vtanh.f32 %v5839_v34  ;;  %v3497_v36 = vpop.f32.mrb[124].mxu1 }
 0x35f   : > { %v6664_v9 = vpop.eup %6663  ;;  %4974 = vst [vmem:[%s8642_s16 + $0x230] sm:$0xff] %v6662_v25  ;;  %v3883_v32 = vpop.f32.mrb[124].mxu0  ;;  %6689 = vtanh.f32 %v5776_v55  ;;  %v5777_v12 = vadd.f32 %v3497_v36, %v8607_v17 }
 0x360   : > { %v6666_v44 = vpop.eup %6665  ;;  %4976 = vst [vmem:[%s8642_s16 + $0x240] sm:$0xff] %v6664_v9  ;;  %v5841_v3 = vadd.f32 %v3883_v32, %v8611_v62  ;;  %v3499_v37 = vpop.f32.mrb[125].mxu1  ;;  %6691 = vtanh.f32 %v5840_v49 }
 0x361   : > { %v6668_v54 = vpop.eup %6667  ;;  %4975 = vst [vmem:[%s8642_s16 + $0x238] sm:$0xff] %v6666_v44  ;;  %v3885_v28 = vpop.f32.mrb[125].mxu0  ;;  %v5778_v26 = vadd.f32 %v3499_v37, %v8616_v41  ;;  %6693 = vtanh.f32 %v5777_v12 }
 0x362   : > { %v6670_v50 = vpop.eup %6669  ;;  %4977 = vst [vmem:[%s8642_s16 + $0x248] sm:$0xff] %v6668_v54  ;;  %v5842_v4 = vadd.f32 %v3885_v28, %v8620_v57  ;;  %v3501_v2 = vpop.f32.mrb[126].mxu1  ;;  %6695 = vtanh.f32 %v5841_v3 }
 0x363   : > { %v6672_v42 = vpop.eup %6671  ;;  %4981 = vst [vmem:[%s8642_s16 + $0x268] sm:$0xff] %v6670_v50  ;;  %v3887_v60 = vpop.f32.mrb[126].mxu0  ;;  %v5779_v47 = vadd.f32 %v3501_v2, %v8607_v17  ;;  %6697 = vtanh.f32 %v5778_v26  ;;  %4218 = vmatmul.mubr.bf16.gmra.mrb[168].mxu1 %v7799_v43  ;;  %4568 = vmatmul.mubr.bf16.gmra.mrb[232].mxu0 %v7799_v43 }
 0x364   : > { %v6674_v24 = vpop.eup %6673  ;;  %4983 = vst [vmem:[%s8642_s16 + $0x278] sm:$0xff] %v6672_v42  ;;  %v3503_v56 = vpop.f32.mrb[127].mxu1  ;;  %v5843_v48 = vadd.f32 %v3887_v60, %v8611_v62  ;;  %6699 = vtanh.f32 %v5842_v4  ;;  %4227 = vmatprep.mubr.bf16.mxu1 %v7847_v30  ;;  %4575 = vmatprep.mubr.bf16.mxu0 %v7847_v30 }
 0x365   : > { %v3889_v61 = vpop.f32.mrb[127].mxu0  ;;  %v6676_v45 = vpop.eup %6675  ;;  %4982 = vst [vmem:[%s8642_s16 + $0x270] sm:$0xff] %v6674_v24  ;;  %v5780_v33 = vadd.f32 %v3503_v56, %v8616_v41  ;;  %6701 = vtanh.f32 %v5779_v47 }
 0x366   : > { %v6678_v22 = vpop.eup %6677  ;;  %4984 = vst [vmem:[%s8642_s16 + $0x280] sm:$0xff] %v6676_v45  ;;  %v5844_v59 = vadd.f32 %v3889_v61, %v8620_v57  ;;  %6703 = vtanh.f32 %v5843_v48  ;;  %v3507_v1 = vpop.f32.mrb[128].mxu1 }
 0x367   : > { %v6680_v15 = vpop.eup %6679  ;;  %4988 = vst [vmem:[%s8642_s16 + $0x2a0] sm:$0xff] %v6678_v22  ;;  %v3893_v34 = vpop.f32.mrb[128].mxu0  ;;  %6705 = vtanh.f32 %v5780_v33  ;;  %v5781_v25 = vadd.f32 %v3507_v1, %v8607_v17 }
 0x368   : > { %v6682_v11 = vpop.eup %6681  ;;  %4990 = vst [vmem:[%s8642_s16 + $0x2b0] sm:$0xff] %v6680_v15  ;;  %v5845_v55 = vadd.f32 %v3893_v34, %v8611_v62  ;;  %v3509_v9 = vpop.f32.mrb[129].mxu1  ;;  %6707 = vtanh.f32 %v5844_v59 }
 0x369   : > { %v6684_v52 = vpop.eup %6683  ;;  %4989 = vst [vmem:[%s8642_s16 + $0x2a8] sm:$0xff] %v6682_v11  ;;  %v3895_v30 = vpop.f32.mrb[129].mxu0  ;;  %v5782_v44 = vadd.f32 %v3509_v9, %v8616_v41  ;;  %6709 = vtanh.f32 %v5781_v25 }
 0x36a   : > { %v6686_v43 = vpop.eup %6685  ;;  %4991 = vst [vmem:[%s8642_s16 + $0x2b8] sm:$0xff] %v6684_v52  ;;  %v5846_v54 = vadd.f32 %v3895_v30, %v8620_v57  ;;  %v3511_v36 = vpop.f32.mrb[130].mxu1  ;;  %6711 = vtanh.f32 %v5845_v55 }
 0x36b   : > { %v6688_v49 = vpop.eup %6687  ;;  %4995 = vst [vmem:[%s8642_s16 + $0x2d8] sm:$0xff] %v6686_v43  ;;  %v3897_v32 = vpop.f32.mrb[130].mxu0  ;;  %v5783_v12 = vadd.f32 %v3511_v36, %v8607_v17  ;;  %6713 = vtanh.f32 %v5782_v44  ;;  %4228 = vmatmul.mubr.bf16.gmra.mrb[172].mxu1 %v7843_v23  ;;  %4576 = vmatmul.mubr.bf16.gmra.mrb[236].mxu0 %v7843_v23 }
 0x36c   : > { %v6690_v50 = vpop.eup %6689  ;;  %4997 = vst [vmem:[%s8642_s16 + $0x2e8] sm:$0xff] %v6688_v49  ;;  %v3513_v3 = vpop.f32.mrb[131].mxu1  ;;  %v5847_v42 = vadd.f32 %v3897_v32, %v8611_v62  ;;  %6715 = vtanh.f32 %v5846_v54  ;;  %4237 = vmatprep.mubr.bf16.mxu1 %v7891_v18  ;;  %4583 = vmatprep.mubr.bf16.mxu0 %v7891_v18 }
 0x36d   : > { %v3899_v37 = vpop.f32.mrb[131].mxu0  ;;  %v6692_v28 = vpop.eup %6691  ;;  %4996 = vst [vmem:[%s8642_s16 + $0x2e0] sm:$0xff] %v6690_v50  ;;  %v5784_v4 = vadd.f32 %v3513_v3, %v8616_v41  ;;  %6717 = vtanh.f32 %v5783_v12 }
 0x36e   : > { %v6694_v26 = vpop.eup %6693  ;;  %4998 = vst [vmem:[%s8642_s16 + $0x2f0] sm:$0xff] %v6692_v28  ;;  %v5848_v60 = vadd.f32 %v3899_v37, %v8620_v57  ;;  %6719 = vtanh.f32 %v5847_v42  ;;  %v3517_v56 = vpop.f32.mrb[132].mxu1 }
 0x36f   : > { %v6696_v2 = vpop.eup %6695  ;;  %5002 = vst [vmem:[%s8642_s16 + $0x310] sm:$0xff] %v6694_v26  ;;  %v3903_v61 = vpop.f32.mrb[132].mxu0  ;;  %6721 = vtanh.f32 %v5784_v4  ;;  %v5785_v45 = vadd.f32 %v3517_v56, %v8607_v17 }
 0x370   : > { %v6698_v24 = vpop.eup %6697  ;;  %5004 = vst [vmem:[%s8642_s16 + $0x320] sm:$0xff] %v6696_v2  ;;  %v5849_v48 = vadd.f32 %v3903_v61, %v8611_v62  ;;  %v3519_v22 = vpop.f32.mrb[133].mxu1  ;;  %6723 = vtanh.f32 %v5848_v60 }
 0x371   : > { %v6700_v47 = vpop.eup %6699  ;;  %5003 = vst [vmem:[%s8642_s16 + $0x318] sm:$0xff] %v6698_v24  ;;  %v3905_v18 = vpop.f32.mrb[133].mxu0  ;;  %v5786_v15 = vadd.f32 %v3519_v22, %v8616_v41  ;;  %6725 = vtanh.f32 %v5785_v45 }
 0x372   : > { %v6702_v23 = vpop.eup %6701  ;;  %5005 = vst [vmem:[%s8642_s16 + $0x328] sm:$0xff] %v6700_v47  ;;  %v5850_v59 = vadd.f32 %v3905_v18, %v8620_v57  ;;  %v3521_v11 = vpop.f32.mrb[134].mxu1  ;;  %6727 = vtanh.f32 %v5849_v48 }
 0x373   : > { %v6704_v33 = vpop.eup %6703  ;;  %5009 = vst [vmem:[%s8642_s16 + $0x348] sm:$0xff] %v6702_v23  ;;  %v3907_v52 = vpop.f32.mrb[134].mxu0  ;;  %v5787_v34 = vadd.f32 %v3521_v11, %v8607_v17  ;;  %6729 = vtanh.f32 %v5786_v15  ;;  %4238 = vmatmul.mubr.bf16.gmra.mrb[176].mxu1 %v7887_v16  ;;  %4584 = vmatmul.mubr.bf16.gmra.mrb[240].mxu0 %v7887_v16 }
 0x374   : > { %v6706_v1 = vpop.eup %6705  ;;  %5011 = vst [vmem:[%s8642_s16 + $0x358] sm:$0xff] %v6704_v33  ;;  %v3523_v43 = vpop.f32.mrb[135].mxu1  ;;  %v5851_v9 = vadd.f32 %v3907_v52, %v8611_v62  ;;  %6731 = vtanh.f32 %v5850_v59  ;;  %4247 = vmatprep.mubr.bf16.mxu1 %v7935_v19  ;;  %4591 = vmatprep.mubr.bf16.mxu0 %v7935_v19 }
 0x375   : > { %v3909_v25 = vpop.f32.mrb[135].mxu0  ;;  %v6708_v55 = vpop.eup %6707  ;;  %5010 = vst [vmem:[%s8642_s16 + $0x350] sm:$0xff] %v6706_v1  ;;  %v5788_v49 = vadd.f32 %v3523_v43, %v8616_v41  ;;  %6733 = vtanh.f32 %v5787_v34 }
 0x376   : > { %v6710_v30 = vpop.eup %6709  ;;  %5012 = vst [vmem:[%s8642_s16 + $0x360] sm:$0xff] %v6708_v55  ;;  %v5852_v54 = vadd.f32 %v3909_v25, %v8620_v57  ;;  %6735 = vtanh.f32 %v5851_v9  ;;  %v3527_v50 = vpop.f32.mrb[136].mxu1 }
 0x377   : > { %v6712_v44 = vpop.eup %6711  ;;  %5016 = vst [vmem:[%s8642_s16 + $0x380] sm:$0xff] %v6710_v30  ;;  %v3913_v12 = vpop.f32.mrb[136].mxu0  ;;  %6737 = vtanh.f32 %v5788_v49  ;;  %v5789_v3 = vadd.f32 %v3527_v50, %v8607_v17 }
 0x378   : > { %v6714_v36 = vpop.eup %6713  ;;  %5018 = vst [vmem:[%s8642_s16 + $0x390] sm:$0xff] %v6712_v44  ;;  %v5853_v37 = vadd.f32 %v3913_v12, %v8611_v62  ;;  %v3529_v28 = vpop.f32.mrb[137].mxu1  ;;  %6739 = vtanh.f32 %v5852_v54 }
 0x379   : > { %v6716_v32 = vpop.eup %6715  ;;  %5017 = vst [vmem:[%s8642_s16 + $0x388] sm:$0xff] %v6714_v36  ;;  %v3915_v19 = vpop.f32.mrb[137].mxu0  ;;  %v5790_v26 = vadd.f32 %v3529_v28, %v8616_v41  ;;  %6741 = vtanh.f32 %v5789_v3 }
 0x37a   : > { %v6718_v16 = vpop.eup %6717  ;;  %5019 = vst [vmem:[%s8642_s16 + $0x398] sm:$0xff] %v6716_v32  ;;  %v5854_v4 = vadd.f32 %v3915_v19, %v8620_v57  ;;  %v3531_v2 = vpop.f32.mrb[138].mxu1  ;;  %6743 = vtanh.f32 %v5853_v37 }
 0x37b   : > { %v6720_v42 = vpop.eup %6719  ;;  %5023 = vst [vmem:[%s8642_s16 + $0x3b8] sm:$0xff] %v6718_v16  ;;  %v3917_v60 = vpop.f32.mrb[138].mxu0  ;;  %v5791_v47 = vadd.f32 %v3531_v2, %v8607_v17  ;;  %6745 = vtanh.f32 %v5790_v26  ;;  %4248 = vmatmul.mubr.bf16.gmra.mrb[180].mxu1 %v7931_v6  ;;  %4592 = vmatmul.mubr.bf16.gmra.mrb[244].mxu0 %v7931_v6 }
 0x37c   : > { %v6722_v24 = vpop.eup %6721  ;;  %5025 = vst [vmem:[%s8642_s16 + $0x3c8] sm:$0xff] %v6720_v42  ;;  %v3533_v56 = vpop.f32.mrb[139].mxu1  ;;  %v5855_v45 = vadd.f32 %v3917_v60, %v8611_v62  ;;  %6747 = vtanh.f32 %v5854_v4  ;;  %4257 = vmatprep.mubr.bf16.mxu1 %v7979_v35  ;;  %4599 = vmatprep.mubr.bf16.mxu0 %v7979_v35 }
 0x37d   : > { %v3919_v61 = vpop.f32.mrb[139].mxu0  ;;  %v6724_v23 = vpop.eup %6723  ;;  %5024 = vst [vmem:[%s8642_s16 + $0x3c0] sm:$0xff] %v6722_v24  ;;  %v5792_v22 = vadd.f32 %v3533_v56, %v8616_v41  ;;  %6749 = vtanh.f32 %v5791_v47 }
 0x37e   : > { %v6726_v48 = vpop.eup %6725  ;;  %5026 = vst [vmem:[%s8642_s16 + $0x3d0] sm:$0xff] %v6724_v23  ;;  %v5856_v33 = vadd.f32 %v3919_v61, %v8620_v57  ;;  %6751 = vtanh.f32 %v5855_v45  ;;  %v3537_v11 = vpop.f32.mrb[140].mxu1 }
 0x37f   : > { %v6728_v18 = vpop.eup %6727  ;;  %5030 = vst [vmem:[%s8642_s16 + $0x3f0] sm:$0xff] %v6726_v48  ;;  %v3923_v52 = vpop.f32.mrb[140].mxu0  ;;  %6753 = vtanh.f32 %v5792_v22  ;;  %v5793_v1 = vadd.f32 %v3537_v11, %v8607_v17 }
 0x380   : > { %v6730_v15 = vpop.eup %6729  ;;  %5032 = vst [vmem:[%s8642_s16 + $0x400] sm:$0xff] %v6728_v18  ;;  %v5857_v34 = vadd.f32 %v3923_v52, %v8611_v62  ;;  %v3539_v43 = vpop.f32.mrb[141].mxu1  ;;  %6755 = vtanh.f32 %v5856_v33 }
 0x381   : > { %v6732_v59 = vpop.eup %6731  ;;  %5031 = vst [vmem:[%s8642_s16 + $0x3f8] sm:$0xff] %v6730_v15  ;;  %v3925_v35 = vpop.f32.mrb[141].mxu0  ;;  %v5794_v55 = vadd.f32 %v3539_v43, %v8616_v41  ;;  %6757 = vtanh.f32 %v5793_v1 }
 0x382   : > { %v6734_v6 = vpop.eup %6733  ;;  %5033 = vst [vmem:[%s8642_s16 + $0x408] sm:$0xff] %v6732_v59  ;;  %v5858_v9 = vadd.f32 %v3925_v35, %v8620_v57  ;;  %v3541_v30 = vpop.f32.mrb[142].mxu1  ;;  %6759 = vtanh.f32 %v5857_v34 }
 0x383   : > { %v6736_v25 = vpop.eup %6735  ;;  %5037 = vst [vmem:[%s8642_s16 + $0x428] sm:$0xff] %v6734_v6  ;;  %v3927_v49 = vpop.f32.mrb[142].mxu0  ;;  %v5795_v54 = vadd.f32 %v3541_v30, %v8607_v17  ;;  %6761 = vtanh.f32 %v5794_v55  ;;  %4258 = vmatmul.mubr.bf16.gmra.mrb[184].mxu1 %v7975_v31  ;;  %4600 = vmatmul.mubr.bf16.gmra.mrb[248].mxu0 %v7975_v31 }
 0x384   : > { %v6738_v44 = vpop.eup %6737  ;;  %5039 = vst [vmem:[%s8642_s16 + $0x438] sm:$0xff] %v6736_v25  ;;  %v3543_v36 = vpop.f32.mrb[143].mxu1  ;;  %v5859_v12 = vadd.f32 %v3927_v49, %v8611_v62  ;;  %6763 = vtanh.f32 %v5858_v9  ;;  %4267 = vmatprep.mubr.bf16.mxu1 %v8023_v29  ;;  %4607 = vmatprep.mubr.bf16.mxu0 %v8023_v29 }
 0x385   : > { %v3929_v32 = vpop.f32.mrb[143].mxu0  ;;  %v6740_v50 = vpop.eup %6739  ;;  %5038 = vst [vmem:[%s8642_s16 + $0x430] sm:$0xff] %v6738_v44  ;;  %v5796_v3 = vadd.f32 %v3543_v36, %v8616_v41  ;;  %6765 = vtanh.f32 %v5795_v54 }
 0x386   : > { %v6742_v16 = vpop.eup %6741  ;;  %5040 = vst [vmem:[%s8642_s16 + $0x440] sm:$0xff] %v6740_v50  ;;  %v5860_v28 = vadd.f32 %v3929_v32, %v8620_v57  ;;  %6767 = vtanh.f32 %v5859_v12  ;;  %v3547_v26 = vpop.f32.mrb[144].mxu1 }
 0x387   : > { %v6744_v37 = vpop.eup %6743  ;;  %5044 = vst [vmem:[%s8642_s16 + $0x460] sm:$0xff] %v6742_v16  ;;  %v3933_v4 = vpop.f32.mrb[144].mxu0  ;;  %6769 = vtanh.f32 %v5796_v3  ;;  %v5797_v2 = vadd.f32 %v3547_v26, %v8607_v17 }
 0x388   : > { %v6746_v19 = vpop.eup %6745  ;;  %5046 = vst [vmem:[%s8642_s16 + $0x470] sm:$0xff] %v6744_v37  ;;  %v5861_v60 = vadd.f32 %v3933_v4, %v8611_v62  ;;  %v3549_v24 = vpop.f32.mrb[145].mxu1  ;;  %6771 = vtanh.f32 %v5860_v28 }
 0x389   : > { %v6748_v42 = vpop.eup %6747  ;;  %5045 = vst [vmem:[%s8642_s16 + $0x468] sm:$0xff] %v6746_v19  ;;  %v3935_v29 = vpop.f32.mrb[145].mxu0  ;;  %v5798_v56 = vadd.f32 %v3549_v24, %v8616_v41  ;;  %6773 = vtanh.f32 %v5797_v2 }
 0x38a   : > { %v6750_v31 = vpop.eup %6749  ;;  %5047 = vst [vmem:[%s8642_s16 + $0x478] sm:$0xff] %v6748_v42  ;;  %v5862_v61 = vadd.f32 %v3935_v29, %v8620_v57  ;;  %v3551_v23 = vpop.f32.mrb[146].mxu1  ;;  %6775 = vtanh.f32 %v5861_v60 }
 0x38b   : > { %v6752_v47 = vpop.eup %6751  ;;  %5051 = vst [vmem:[%s8642_s16 + $0x498] sm:$0xff] %v6750_v31  ;;  %v3937_v45 = vpop.f32.mrb[146].mxu0  ;;  %v5799_v22 = vadd.f32 %v3551_v23, %v8607_v17  ;;  %6777 = vtanh.f32 %v5798_v56  ;;  %4268 = vmatmul.mubr.bf16.gmra.mrb[188].mxu1 %v8019_v46  ;;  %4608 = vmatmul.mubr.bf16.gmra.mrb[252].mxu0 %v8019_v46 }
 0x38c   : > { %v6754_v48 = vpop.eup %6753  ;;  %5053 = vst [vmem:[%s8642_s16 + $0x4a8] sm:$0xff] %v6752_v47  ;;  %v3553_v18 = vpop.f32.mrb[147].mxu1  ;;  %v5863_v59 = vadd.f32 %v3937_v45, %v8611_v62  ;;  %6779 = vtanh.f32 %v5862_v61  ;;  %4277 = vmatprep.mubr.bf16.mxu1 %v8067_v38  ;;  %4615 = vmatprep.mubr.bf16.mxu0 %v8067_v38 }
 0x38d   : > { %v3939_v33 = vpop.f32.mrb[147].mxu0  ;;  %v6756_v15 = vpop.eup %6755  ;;  %5052 = vst [vmem:[%s8642_s16 + $0x4a0] sm:$0xff] %v6754_v48  ;;  %v5800_v52 = vadd.f32 %v3553_v18, %v8616_v41  ;;  %6781 = vtanh.f32 %v5799_v22 }
 0x38e   : > { %v6758_v11 = vpop.eup %6757  ;;  %5054 = vst [vmem:[%s8642_s16 + $0x4b0] sm:$0xff] %v6756_v15  ;;  %v5864_v1 = vadd.f32 %v3939_v33, %v8620_v57  ;;  %6783 = vtanh.f32 %v5863_v59  ;;  %v3557_v35 = vpop.f32.mrb[148].mxu1 }
 0x38f   : > { %v6760_v6 = vpop.eup %6759  ;;  %5058 = vst [vmem:[%s8642_s16 + $0x4d0] sm:$0xff] %v6758_v11  ;;  %v3943_v25 = vpop.f32.mrb[148].mxu0  ;;  %6785 = vtanh.f32 %v5800_v52  ;;  %v5801_v55 = vadd.f32 %v3557_v35, %v8607_v17 }
 0x390   : > { %v6762_v34 = vpop.eup %6761  ;;  %5060 = vst [vmem:[%s8642_s16 + $0x4e0] sm:$0xff] %v6760_v6  ;;  %v5865_v9 = vadd.f32 %v3943_v25, %v8611_v62  ;;  %v3559_v30 = vpop.f32.mrb[149].mxu1  ;;  %6787 = vtanh.f32 %v5864_v1 }
 0x391   : > { %v6764_v43 = vpop.eup %6763  ;;  %5059 = vst [vmem:[%s8642_s16 + $0x4d8] sm:$0xff] %v6762_v34  ;;  %v3945_v38 = vpop.f32.mrb[149].mxu0  ;;  %v5802_v44 = vadd.f32 %v3559_v30, %v8616_v41  ;;  %6789 = vtanh.f32 %v5801_v55 }
 0x392   : > { %v6766_v46 = vpop.eup %6765  ;;  %5061 = vst [vmem:[%s8642_s16 + $0x4e8] sm:$0xff] %v6764_v43  ;;  %v5866_v54 = vadd.f32 %v3945_v38, %v8620_v57  ;;  %v3561_v36 = vpop.f32.mrb[150].mxu1  ;;  %6791 = vtanh.f32 %v5865_v9 }
 0x393   : > { %v6768_v49 = vpop.eup %6767  ;;  %5065 = vst [vmem:[%s8642_s16 + $0x508] sm:$0xff] %v6766_v46  ;;  %v3947_v32 = vpop.f32.mrb[150].mxu0  ;;  %v5803_v12 = vadd.f32 %v3561_v36, %v8607_v17  ;;  %6793 = vtanh.f32 %v5802_v44  ;;  %4278 = vmatmul.mubr.bf16.gmra.mrb[192].mxu1 %v8063_v7  ;;  %4616 = vmatmul.mubr.bf16.gmra.mrb[0].mxu0 %v8063_v7 }
 0x394   : > { %v6770_v50 = vpop.eup %6769  ;;  %5067 = vst [vmem:[%s8642_s16 + $0x518] sm:$0xff] %v6768_v49  ;;  %v3563_v16 = vpop.f32.mrb[151].mxu1  ;;  %v5867_v28 = vadd.f32 %v3947_v32, %v8611_v62  ;;  %6795 = vtanh.f32 %v5866_v54  ;;  %4287 = vmatprep.mubr.bf16.mxu1 %v8087_v27  ;;  %4623 = vmatprep.mubr.bf16.mxu0 %v8087_v27 }
 0x395   : > { %v3949_v3 = vpop.f32.mrb[151].mxu0  ;;  %v6772_v37 = vpop.eup %6771  ;;  %5066 = vst [vmem:[%s8642_s16 + $0x510] sm:$0xff] %v6770_v50  ;;  %v5804_v42 = vadd.f32 %v3563_v16, %v8616_v41  ;;  %6797 = vtanh.f32 %v5803_v12 }
 0x396   : > { %v6774_v19 = vpop.eup %6773  ;;  %5068 = vst [vmem:[%s8642_s16 + $0x520] sm:$0xff] %v6772_v37  ;;  %v5868_v4 = vadd.f32 %v3949_v3, %v8620_v57  ;;  %6799 = vtanh.f32 %v5867_v28  ;;  %v3567_v60 = vpop.f32.mrb[152].mxu1 }
 0x397   : > { %v6776_v26 = vpop.eup %6775  ;;  %5072 = vst [vmem:[%s8642_s16 + $0x540] sm:$0xff] %v6774_v19  ;;  %v3953_v24 = vpop.f32.mrb[152].mxu0  ;;  %6801 = vtanh.f32 %v5804_v42  ;;  %v5805_v29 = vadd.f32 %v3567_v60, %v8607_v17 }
 0x398   : > { %v6778_v31 = vpop.eup %6777  ;;  %5074 = vst [vmem:[%s8642_s16 + $0x550] sm:$0xff] %v6776_v26  ;;  %v5869_v47 = vadd.f32 %v3953_v24, %v8611_v62  ;;  %v3569_v56 = vpop.f32.mrb[153].mxu1  ;;  %6803 = vtanh.f32 %v5868_v4 }
 0x399   : > { %v6780_v2 = vpop.eup %6779  ;;  %5073 = vst [vmem:[%s8642_s16 + $0x548] sm:$0xff] %v6778_v31  ;;  %v3955_v27 = vpop.f32.mrb[153].mxu0  ;;  %v5806_v23 = vadd.f32 %v3569_v56, %v8616_v41  ;;  %6805 = vtanh.f32 %v5805_v29 }
 0x39a   : > { %v6782_v7 = vpop.eup %6781  ;;  %5075 = vst [vmem:[%s8642_s16 + $0x558] sm:$0xff] %v6780_v2  ;;  %v5870_v45 = vadd.f32 %v3955_v27, %v8620_v57  ;;  %v3571_v48 = vpop.f32.mrb[154].mxu1  ;;  %6807 = vtanh.f32 %v5869_v47 }
 0x39b   : > { %v6784_v61 = vpop.eup %6783  ;;  %5079 = vst [vmem:[%s8642_s16 + $0x578] sm:$0xff] %v6782_v7  ;;  %v3957_v22 = vpop.f32.mrb[154].mxu0  ;;  %v5807_v33 = vadd.f32 %v3571_v48, %v8607_v17  ;;  %6809 = vtanh.f32 %v5806_v23  ;;  %4288 = vmatmul.mubr.bf16.gmra.mrb[196].mxu1 %v8083_v39  ;;  %4624 = vmatmul.mubr.bf16.gmra.mrb[4].mxu0 %v8083_v39 }
 0x39c   : > { %v6786_v18 = vpop.eup %6785  ;;  %5081 = vst [vmem:[%s8642_s16 + $0x588] sm:$0xff] %v6784_v61  ;;  %v3573_v15 = vpop.f32.mrb[155].mxu1  ;;  %v5871_v52 = vadd.f32 %v3957_v22, %v8611_v62  ;;  %6811 = vtanh.f32 %v5870_v45  ;;  %4297 = vmatprep.mubr.bf16.mxu1 %v8107_v20  ;;  %4631 = vmatprep.mubr.bf16.mxu0 %v8107_v20 }
 0x39d   : > { %v3959_v59 = vpop.f32.mrb[155].mxu0  ;;  %v6788_v11 = vpop.eup %6787  ;;  %5080 = vst [vmem:[%s8642_s16 + $0x580] sm:$0xff] %v6786_v18  ;;  %v5808_v1 = vadd.f32 %v3573_v15, %v8616_v41  ;;  %6813 = vtanh.f32 %v5807_v33 }
 0x39e   : > { %v6790_v6 = vpop.eup %6789  ;;  %5082 = vst [vmem:[%s8642_s16 + $0x590] sm:$0xff] %v6788_v11  ;;  %v5872_v43 = vadd.f32 %v3959_v59, %v8620_v57  ;;  %6815 = vtanh.f32 %v5871_v52  ;;  %v3577_v46 = vpop.f32.mrb[156].mxu1 }
 0x39f   : > { %v6792_v34 = vpop.eup %6791  ;;  %5086 = vst [vmem:[%s8642_s16 + $0x5b0] sm:$0xff] %v6790_v6  ;;  %v3963_v55 = vpop.f32.mrb[156].mxu0  ;;  %6817 = vtanh.f32 %v5808_v1  ;;  %v5809_v9 = vadd.f32 %v3577_v46, %v8607_v17 }
 0x3a0   : > { %v6794_v35 = vpop.eup %6793  ;;  %5088 = vst [vmem:[%s8642_s16 + $0x5c0] sm:$0xff] %v6792_v34  ;;  %v5873_v30 = vadd.f32 %v3963_v55, %v8611_v62  ;;  %v3579_v38 = vpop.f32.mrb[157].mxu1  ;;  %6819 = vtanh.f32 %v5872_v43 }
 0x3a1   : > { %v6796_v25 = vpop.eup %6795  ;;  %5087 = vst [vmem:[%s8642_s16 + $0x5b8] sm:$0xff] %v6794_v35  ;;  %v3965_v20 = vpop.f32.mrb[157].mxu0  ;;  %v5810_v44 = vadd.f32 %v3579_v38, %v8616_v41  ;;  %6821 = vtanh.f32 %v5809_v9 }
 0x3a2   : > { %v6798_v39 = vpop.eup %6797  ;;  %5089 = vst [vmem:[%s8642_s16 + $0x5c8] sm:$0xff] %v6796_v25  ;;  %v5874_v54 = vadd.f32 %v3965_v20, %v8620_v57  ;;  %v3581_v36 = vpop.f32.mrb[158].mxu1  ;;  %6823 = vtanh.f32 %v5873_v30 }
 0x3a3   : > { %v6800_v49 = vpop.eup %6799  ;;  %5093 = vst [vmem:[%s8642_s16 + $0x5e8] sm:$0xff] %v6798_v39  ;;  %v3967_v32 = vpop.f32.mrb[158].mxu0  ;;  %v5811_v12 = vadd.f32 %v3581_v36, %v8607_v17  ;;  %6825 = vtanh.f32 %v5810_v44  ;;  %4298 = vmatmul.mubr.bf16.gmra.mrb[200].mxu1 %v8103_v14  ;;  %4632 = vmatmul.mubr.bf16.gmra.mrb[8].mxu0 %v8103_v14 }
 0x3a4   : > { %v6802_v50 = vpop.eup %6801  ;;  %5095 = vst [vmem:[%s8642_s16 + $0x5f8] sm:$0xff] %v6800_v49  ;;  %v3583_v16 = vpop.f32.mrb[159].mxu1  ;;  %v5875_v28 = vadd.f32 %v3967_v32, %v8611_v62  ;;  %6827 = vtanh.f32 %v5874_v54  ;;  %4307 = vmatprep.mubr.bf16.mxu1 %v8127_v53  ;;  %4639 = vmatprep.mubr.bf16.mxu0 %v8127_v53 }
 0x3a5   : > { %v3969_v3 = vpop.f32.mrb[159].mxu0  ;;  %v6804_v37 = vpop.eup %6803  ;;  %5094 = vst [vmem:[%s8642_s16 + $0x5f0] sm:$0xff] %v6802_v50  ;;  %v5812_v42 = vadd.f32 %v3583_v16, %v8616_v41  ;;  %6829 = vtanh.f32 %v5811_v12 }
 0x3a6   : > { %v6806_v19 = vpop.eup %6805  ;;  %5096 = vst [vmem:[%s8642_s16 + $0x600] sm:$0xff] %v6804_v37  ;;  %v5876_v26 = vadd.f32 %v3969_v3, %v8620_v57  ;;  %6831 = vtanh.f32 %v5875_v28  ;;  %v5537_v4 = vpop.f32.mrb[160].mxu0 }
 0x3a7   : > { %v6808_v17 = vpop.eup %6807  ;;  %5100 = vst [vmem:[%s8642_s16 + $0x620] sm:$0xff] %v6806_v19  ;;  %6833 = vtanh.f32 %v5812_v42  ;;  %v5538_v31 = vpop.f32.mrb[161].mxu0 }
 0x3a8   : > { %v6810_v62 = vpop.eup %6809  ;;  %5102 = vst [vmem:[%s8642_s16 + $0x630] sm:$0xff] %v6808_v17  ;;  %6835 = vtanh.f32 %v5876_v26  ;;  %v8937_v57 = vadd.f32 %v5538_v31, %v5537_v4  ;;  %v5540_v53 = vpop.f32.mrb[162].mxu0 }
 0x3a9   : > { %v6812_v41 = vpop.eup %6811  ;;  %5101 = vst [vmem:[%s8642_s16 + $0x628] sm:$0xff] %v6810_v62  ;;  %v5541_v24 = vpop.f32.mrb[163].mxu0 }
 0x3aa   : > { %v6814_v14 = vpop.eup %6813  ;;  %5103 = vst [vmem:[%s8642_s16 + $0x638] sm:$0xff] %v6812_v41  ;;  %v8941_v29 = vadd.f32 %v5541_v24, %v5540_v53 }
 0x3ab   : > { %v6816_v2 = vpop.eup %6815  ;;  %5107 = vst [vmem:[%s8642_s16 + $0x658] sm:$0xff] %v6814_v14  ;;  %4308 = vmatmul.mubr.bf16.gmra.mrb[204].mxu1 %v8123_v63  ;;  %4640 = vmatmul.mubr.bf16.gmra.mrb[12].mxu0 %v8123_v63 }
 0x3ac   : > { %v6818_v60 = vpop.eup %6817  ;;  %5109 = vst [vmem:[%s8642_s16 + $0x668] sm:$0xff] %v6816_v2  ;;  %4317 = vmatprep.mubr.bf16.mxu1 %v8147_v21  ;;  %4647 = vmatprep.mubr.bf16.mxu0 %v8147_v21 }
 0x3ad   : > { %v6820_v7 = vpop.eup %6819  ;;  %5108 = vst [vmem:[%s8642_s16 + $0x660] sm:$0xff] %v6818_v60 }
 0x3ae   : > { %v6822_v47 = vpop.eup %6821  ;;  %5110 = vst [vmem:[%s8642_s16 + $0x670] sm:$0xff] %v6820_v7  ;;  %v5543_v23 = vpop.f32.mrb[164].mxu0 }
 0x3af   : > { %v6824_v56 = vpop.eup %6823  ;;  %5114 = vst [vmem:[%s8642_s16 + $0x690] sm:$0xff] %v6822_v47  ;;  %v5544_v48 = vpop.f32.mrb[165].mxu0 }
 0x3b0   : > { %v6826_v27 = vpop.eup %6825  ;;  %5116 = vst [vmem:[%s8642_s16 + $0x6a0] sm:$0xff] %v6824_v56  ;;  %v8953_v63 = vadd.f32 %v5544_v48, %v5543_v23  ;;  %v5546_v18 = vpop.f32.mrb[166].mxu0 }
 0x3b1   : > { %v6828_v61 = vpop.eup %6827  ;;  %5115 = vst [vmem:[%s8642_s16 + $0x698] sm:$0xff] %v6826_v27  ;;  %v5547_v15 = vpop.f32.mrb[167].mxu0 }
 0x3b2   : > { %v6830_v45 = vpop.eup %6829  ;;  %5117 = vst [vmem:[%s8642_s16 + $0x6a8] sm:$0xff] %v6828_v61  ;;  %v8957_v21 = vadd.f32 %v5547_v15, %v5546_v18 }
 0x3b3   : > { %v6832_v22 = vpop.eup %6831  ;;  %5121 = vst [vmem:[%s8642_s16 + $0x6c8] sm:$0xff] %v6830_v45  ;;  %4318 = vmatmul.mubr.bf16.gmra.mrb[208].mxu1 %v8143_v0  ;;  %4648 = vmatmul.mubr.bf16.gmra.mrb[16].mxu0 %v8143_v0 }
 0x3b4   : > { %v6834_v33 = vpop.eup %6833  ;;  %5123 = vst [vmem:[%s8642_s16 + $0x6d8] sm:$0xff] %v6832_v22  ;;  %4327 = vmatprep.mubr.bf16.mxu1 %v8167_v5  ;;  %4655 = vmatprep.mubr.bf16.mxu0 %v8167_v5 }
 0x3b5   : > { %v6836_v59 = vpop.eup %6835  ;;  %5122 = vst [vmem:[%s8642_s16 + $0x6d0] sm:$0xff] %v6834_v33 }
 0x3b6   : > { %5124 = vst [vmem:[%s8642_s16 + $0x6e0] sm:$0xff] %v6836_v59  ;;  %v5549_v11 = vpop.f32.mrb[168].mxu0 }
 0x3b7   : > { %v5550_v52 = vpop.f32.mrb[169].mxu0 }
 0x3b8   : > { %v8964_v6 = vadd.f32 %v5550_v52, %v5549_v11  ;;  %v5552_v1 = vpop.f32.mrb[170].mxu0 }
 0x3b9   : > { %v5553_v34 = vpop.f32.mrb[171].mxu0 }
 0x3ba   : > { %v8966_v43 = vadd.f32 %v5553_v34, %v5552_v1 }
 0x3bb   : > { %4328 = vmatmul.mubr.bf16.gmra.mrb[212].mxu1 %v8163_v40  ;;  %4656 = vmatmul.mubr.bf16.gmra.mrb[20].mxu0 %v8163_v40 }
 0x3bc   : > { %4337 = vmatprep.mubr.bf16.mxu1 %v8187_v10  ;;  %4663 = vmatprep.mubr.bf16.mxu0 %v8187_v10 }
 0x3be   : > { %v5555_v0 = vpop.f32.mrb[172].mxu0 }
 0x3bf   : > { %v5556_v35 = vpop.f32.mrb[173].mxu0 }
 0x3c0   : > { %v8972_v25 = vadd.f32 %v5556_v35, %v5555_v0  ;;  %v5558_v5 = vpop.f32.mrb[174].mxu0 }
 0x3c1   : > { %v5559_v46 = vpop.f32.mrb[175].mxu0 }
 0x3c2   : > { %v8974_v55 = vadd.f32 %v5559_v46, %v5558_v5 }
 0x3c3   : > { %4338 = vmatmul.mubr.bf16.gmra.mrb[216].mxu1 %v8183_v58  ;;  %4664 = vmatmul.mubr.bf16.gmra.mrb[24].mxu0 %v8183_v58 }
 0x3c4   : > { %4347 = vmatprep.mubr.bf16.mxu1 %v8207_v8  ;;  %4671 = vmatprep.mubr.bf16.mxu0 %v8207_v8 }
 0x3c6   : > { %v5561_v40 = vpop.f32.mrb[176].mxu0 }
 0x3c7   : > { %v5562_v39 = vpop.f32.mrb[177].mxu0 }
 0x3c8   : > { %v8980_v9 = vadd.f32 %v5562_v39, %v5561_v40  ;;  %v5564_v10 = vpop.f32.mrb[178].mxu0 }
 0x3c9   : > { %v5565_v30 = vpop.f32.mrb[179].mxu0 }
 0x3ca   : > { %v8982_v38 = vadd.f32 %v5565_v30, %v5564_v10 }
 0x3cb   : > { %4348 = vmatmul.mubr.bf16.gmra.mrb[220].mxu1 %v8203_v51  ;;  %4672 = vmatmul.mubr.bf16.gmra.mrb[28].mxu0 %v8203_v51 }
 0x3ce   : > { %v5567_v20 = vpop.f32.mrb[180].mxu0 }
 0x3cf   : > { %v5568_v49 = vpop.f32.mrb[181].mxu0 }
 0x3d0   : > { %v8986_v44 = vadd.f32 %v5568_v49, %v5567_v20  ;;  %v5570_v58 = vpop.f32.mrb[182].mxu0 }
 0x3d1   : > { %v5571_v54 = vpop.f32.mrb[183].mxu0 }
 0x3d2   : > { %v8988_v36 = vadd.f32 %v5571_v54, %v5570_v58 }
 0x3d6   : > { %v5573_v8 = vpop.f32.mrb[184].mxu0 }
 0x3d7   : > { %v5574_v32 = vpop.f32.mrb[185].mxu0 }
 0x3d8   : > { %v8990_v50 = vadd.f32 %v5574_v32, %v5573_v8  ;;  %v5576_v12 = vpop.f32.mrb[186].mxu0 }
 0x3d9   : > { %v5577_v16 = vpop.f32.mrb[187].mxu0 }
 0x3da   : > { %v8992_v3 = vadd.f32 %v5577_v16, %v5576_v12 }
 0x3de   : > { %v5579_v37 = vpop.f32.mrb[188].mxu0 }
 0x3df   : > { %v5580_v28 = vpop.f32.mrb[189].mxu0 }
 0x3e0   : > { %v8994_v19 = vadd.f32 %v5580_v28, %v5579_v37  ;;  %v5582_v51 = vpop.f32.mrb[190].mxu0  ;;  %v2031_v28 = vsub.s32 4, %v9360_v13 }
 0x3e1   : > { %v5583_v42 = vpop.f32.mrb[191].mxu0 }
 0x3e2   : > { %v8996_v17 = vadd.f32 %v5583_v42, %v5582_v51  ;;  %v2039_v51 = vsub.s32 6, %v9360_v13 }
 0x3e6   : > { %v5585_v26 = vpop.f32.mrb[192].mxu0 }
 0x3e7   : > { %v5586_v62 = vpop.f32.mrb[193].mxu0 }
 0x3e8   : > { %v8998_v41 = vadd.f32 %v5586_v62, %v5585_v26  ;;  %v5588_v4 = vpop.f32.mrb[194].mxu0  ;;  %v2035_v62 = vsub.s32 5, %v9360_v13 }
 0x3e9   : > { %v5589_v14 = vpop.f32.mrb[195].mxu0 }
 0x3ea   : > { %v9000_v31 = vadd.f32 %v5589_v14, %v5588_v4 }
 0x3ee   : > { %v5591_v2 = vpop.f32.mrb[196].mxu0 }
 0x3ef   : > { %v5592_v53 = vpop.f32.mrb[197].mxu0 }
 0x3f0   : > { %v9002_v60 = vadd.f32 %v5592_v53, %v5591_v2  ;;  %v5594_v24 = vpop.f32.mrb[198].mxu0  ;;  %v7029_v2 = vld [vmem:[%s9275_s6] sm:$0xff] }
 0x3f1   : > { %v5595_v7 = vpop.f32.mrb[199].mxu0  ;;  %v9036_v53 = vrot.slane %v7029_v2, %v2031_v28 }
 0x3f2   : > { %v9004_v47 = vadd.f32 %v5595_v7, %v5594_v24  ;;  %v9038_v24 = vrot.slane %v7029_v2, %v2039_v51  ;;  %v9040_v7 = vrot.slane %v7029_v2, %v2035_v62 }
 0x3f4   : > { %v4393_v13 = vadd.f32 %v8937_v57, %v9038_v24  ;;  %v4404_v62 = vadd.f32 %v8957_v21, %v9038_v24 }
 0x3f6   : > { %v5597_v56 = vpop.f32.mrb[200].mxu0 }
 0x3f7   : > { %v5598_v27 = vpop.f32.mrb[201].mxu0 }
 0x3f8   : > { %v9006_v61 = vadd.f32 %v5598_v27, %v5597_v56  ;;  %v5600_v23 = vpop.f32.mrb[202].mxu0 }
 0x3f9   : > { %v5601_v45 = vpop.f32.mrb[203].mxu0 }
 0x3fa   : > { %v9008_v48 = vadd.f32 %v5601_v45, %v5600_v23 }
 0x3fe   : > { %v5603_v22 = vpop.f32.mrb[204].mxu0 }
 0x3ff   : > { %v5604_v18 = vpop.f32.mrb[205].mxu0 }
 0x400   : > { %v9010_v33 = vadd.f32 %v5604_v18, %v5603_v22  ;;  %v5606_v15 = vpop.f32.mrb[206].mxu0 }
 0x401   : > { %v5607_v59 = vpop.f32.mrb[207].mxu0 }
 0x402   : > { %v9012_v11 = vadd.f32 %v5607_v59, %v5606_v15 }
 0x406   : > { %v5609_v52 = vpop.f32.mrb[208].mxu0 }
 0x407   : > { %v5610_v1 = vpop.f32.mrb[209].mxu0 }
 0x408   : > { %v9014_v34 = vadd.f32 %v5610_v1, %v5609_v52  ;;  %v5612_v0 = vpop.f32.mrb[210].mxu0  ;;  %v4396_v1 = vadd.f32 %v8941_v29, %v9038_v24 }
 0x409   : > { %v5613_v35 = vpop.f32.mrb[211].mxu0 }
 0x40a   : > { %v9016_v5 = vadd.f32 %v5613_v35, %v5612_v0 }
 0x40e   : > { %v5615_v46 = vpop.f32.mrb[212].mxu0 }
 0x40f   : > { %v5616_v40 = vpop.f32.mrb[213].mxu0 }
 0x410   : > { %v9018_v39 = vadd.f32 %v5616_v40, %v5615_v46  ;;  %v5618_v10 = vpop.f32.mrb[214].mxu0 }
 0x411   : > { %v5619_v30 = vpop.f32.mrb[215].mxu0 }
 0x412   : > { %v9020_v20 = vadd.f32 %v5619_v30, %v5618_v10 }
 0x416   : > { %v5621_v49 = vpop.f32.mrb[216].mxu0 }
 0x417   : > { %v5622_v58 = vpop.f32.mrb[217].mxu0 }
 0x418   : > { %v9022_v54 = vadd.f32 %v5622_v58, %v5621_v49  ;;  %v5624_v8 = vpop.f32.mrb[218].mxu0 }
 0x419   : > { %v5625_v32 = vpop.f32.mrb[219].mxu0 }
 0x41a   : > { %v9024_v12 = vadd.f32 %v5625_v32, %v5624_v8 }
 0x41e   : > { %v5627_v16 = vpop.f32.mrb[220].mxu0 }
 0x41f   : > { %v5628_v37 = vpop.f32.mrb[221].mxu0 }
 0x420   : > { %v9028_v42 = vadd.f32 %v5628_v37, %v5627_v16  ;;  %v5630_v26 = vpop.f32.mrb[222].mxu0  ;;  %v4401_v16 = vadd.f32 %v8953_v63, %v9038_v24 }
 0x421   : > { %v5631_v4 = vpop.f32.mrb[223].mxu0 }
 0x422   : > { %v9031_v14 = vadd.f32 %v5631_v4, %v5630_v26 }
 0x426   : > { %v4199_v56 = vpop.f32.mrb[160].mxu1  ;;  %v5649_v27 = vpop.f32.mrb[224].mxu0 }
 0x427   : > { %v5877_v23 = vadd.f32 %v4199_v56, %v9036_v53  ;;  %v4201_v45 = vpop.f32.mrb[161].mxu1  ;;  %v5650_v22 = vpop.f32.mrb[225].mxu0 }
 0x428   : > { %v5878_v18 = vadd.f32 %v4201_v45, %v9040_v7  ;;  %v5651_v15 = vadd.f32 %v5650_v22, %v5649_v27  ;;  %v4203_v59 = vpop.f32.mrb[162].mxu1  ;;  %v5652_v52 = vpop.f32.mrb[226].mxu0 }
 0x429   : > { %6837 = vtanh.f32 %v5877_v23  ;;  %v5879_v0 = vadd.f32 %v4203_v59, %v9036_v53  ;;  %v4205_v35 = vpop.f32.mrb[163].mxu1  ;;  %v5653_v46 = vpop.f32.mrb[227].mxu0 }
 0x42a   : > { %6839 = vtanh.f32 %v5878_v18  ;;  %v4554_v40 = vadd.f32 %v5651_v15, %v4393_v13  ;;  %v5880_v10 = vadd.f32 %v4205_v35, %v9040_v7  ;;  %v5654_v30 = vadd.f32 %v5653_v46, %v5652_v52 }
 0x42b   : > { %6841 = vtanh.f32 %v5879_v0 }
 0x42c   : > { %6843 = vtanh.f32 %v4554_v40  ;;  %v4557_v57 = vadd.f32 %v5654_v30, %v4396_v1  ;;  %v4409_v40 = vadd.f32 %v8964_v6, %v9038_v24 }
 0x42d   : > { %6845 = vtanh.f32 %v5880_v10 }
 0x42e   : > { %6847 = vtanh.f32 %v4557_v57  ;;  %v4209_v49 = vpop.f32.mrb[164].mxu1  ;;  %v5655_v58 = vpop.f32.mrb[228].mxu0 }
 0x42f   : > { %v5881_v8 = vadd.f32 %v4209_v49, %v9036_v53  ;;  %v4211_v29 = vpop.f32.mrb[165].mxu1  ;;  %v5656_v32 = vpop.f32.mrb[229].mxu0 }
 0x430   : > { %v5882_v37 = vadd.f32 %v4211_v29, %v9040_v7  ;;  %v5657_v28 = vadd.f32 %v5656_v32, %v5655_v58  ;;  %v4213_v51 = vpop.f32.mrb[166].mxu1  ;;  %v5658_v26 = vpop.f32.mrb[230].mxu0  ;;  %v4412_v58 = vadd.f32 %v8966_v43, %v9038_v24 }
 0x431   : > { %6849 = vtanh.f32 %v5881_v8  ;;  %v5883_v4 = vadd.f32 %v4213_v51, %v9036_v53  ;;  %v4215_v2 = vpop.f32.mrb[167].mxu1  ;;  %v5659_v56 = vpop.f32.mrb[231].mxu0 }
 0x432   : > { %6851 = vtanh.f32 %v5882_v37  ;;  %v4562_v27 = vadd.f32 %v5657_v28, %v4401_v16  ;;  %v5884_v63 = vadd.f32 %v4215_v2, %v9040_v7  ;;  %v5660_v23 = vadd.f32 %v5659_v56, %v5658_v26 }
 0x433   : > { %v6838_v45 = vpop.eup %6837  ;;  %6853 = vtanh.f32 %v5883_v4 }
 0x434   : > { %v6840_v22 = vpop.eup %6839  ;;  %4908 = vst [vmem:[%s8642_s16 + $0x20] sm:$0xff] %v6838_v45  ;;  %6855 = vtanh.f32 %v4562_v27  ;;  %v4565_v13 = vadd.f32 %v5660_v23, %v4404_v62 }
 0x435   : > { %v6842_v21 = vpop.eup %6841  ;;  %4909 = vst [vmem:[%s8642_s16 + $0x28] sm:$0xff] %v6840_v22  ;;  %6857 = vtanh.f32 %v5884_v63  ;;  %v4417_v22 = vadd.f32 %v8972_v25, %v9038_v24 }
 0x436   : > { %v6844_v18 = vpop.eup %6843  ;;  %4915 = vst [vmem:[%s8642_s16 + $0x58] sm:$0xff] %v6842_v21  ;;  %6859 = vtanh.f32 %v4565_v13  ;;  %v4219_v15 = vpop.f32.mrb[168].mxu1 }
 0x437   : > { %v5661_v59 = vpop.f32.mrb[232].mxu0  ;;  %v6846_v52 = vpop.eup %6845  ;;  %4910 = vst [vmem:[%s8642_s16 + $0x30] sm:$0xff] %v6844_v18  ;;  %v5885_v1 = vadd.f32 %v4219_v15, %v9036_v53 }
 0x438   : > { %v4221_v0 = vpop.f32.mrb[169].mxu1  ;;  %v5662_v35 = vpop.f32.mrb[233].mxu0  ;;  %4916 = vst [vmem:[%s8642_s16 + $0x60] sm:$0xff] %v6846_v52 }
 0x439   : > { %v6848_v46 = vpop.eup %6847  ;;  %v5886_v10 = vadd.f32 %v4221_v0, %v9040_v7  ;;  %v5663_v30 = vadd.f32 %v5662_v35, %v5661_v59  ;;  %v4223_v57 = vpop.f32.mrb[170].mxu1  ;;  %6861 = vtanh.f32 %v5885_v1  ;;  %v4420_v59 = vadd.f32 %v8974_v55, %v9038_v24 }
 0x43a   : > { %v5664_v49 = vpop.f32.mrb[234].mxu0  ;;  %4917 = vst [vmem:[%s8642_s16 + $0x68] sm:$0xff] %v6848_v46  ;;  %v5887_v8 = vadd.f32 %v4223_v57, %v9036_v53  ;;  %v4225_v29 = vpop.f32.mrb[171].mxu1 }
 0x43b   : > { %v5665_v32 = vpop.f32.mrb[235].mxu0  ;;  %6863 = vtanh.f32 %v5886_v10  ;;  %v4570_v6 = vadd.f32 %v5663_v30, %v4409_v40  ;;  %v5888_v16 = vadd.f32 %v4225_v29, %v9040_v7  ;;  %v6850_v28 = vpop.eup %6849 }
 0x43c   : > { %v5666_v37 = vadd.f32 %v5665_v32, %v5664_v49  ;;  %6865 = vtanh.f32 %v5887_v8  ;;  %v6852_v51 = vpop.eup %6851  ;;  %4922 = vst [vmem:[%s8642_s16 + $0x90] sm:$0xff] %v6850_v28 }
 0x43d   : > { %6867 = vtanh.f32 %v4570_v6  ;;  %v6854_v26 = vpop.eup %6853  ;;  %4923 = vst [vmem:[%s8642_s16 + $0x98] sm:$0xff] %v6852_v51 }
 0x43e   : > { %v4573_v43 = vadd.f32 %v5666_v37, %v4412_v58  ;;  %6869 = vtanh.f32 %v5888_v16  ;;  %v6856_v62 = vpop.eup %6855  ;;  %4929 = vst [vmem:[%s8642_s16 + $0xc8] sm:$0xff] %v6854_v26  ;;  %v4229_v4 = vpop.f32.mrb[172].mxu1  ;;  %v4425_v37 = vadd.f32 %v8980_v9, %v9038_v24 }
 0x43f   : > { %v5667_v2 = vpop.f32.mrb[236].mxu0  ;;  %v6858_v56 = vpop.eup %6857  ;;  %4924 = vst [vmem:[%s8642_s16 + $0xa0] sm:$0xff] %v6856_v62  ;;  %v5889_v27 = vadd.f32 %v4229_v4, %v9036_v53  ;;  %v4428_v62 = vadd.f32 %v8982_v38, %v9038_v24 }
 0x440   : > { %6871 = vtanh.f32 %v4573_v43  ;;  %v4231_v63 = vpop.f32.mrb[173].mxu1  ;;  %v5668_v23 = vpop.f32.mrb[237].mxu0  ;;  %4930 = vst [vmem:[%s8642_s16 + $0xd0] sm:$0xff] %v6858_v56 }
 0x441   : > { %v6860_v45 = vpop.eup %6859  ;;  %v5890_v13 = vadd.f32 %v4231_v63, %v9040_v7  ;;  %v5669_v21 = vadd.f32 %v5668_v23, %v5667_v2  ;;  %v4233_v18 = vpop.f32.mrb[174].mxu1  ;;  %6873 = vtanh.f32 %v5889_v27 }
 0x442   : > { %v5670_v15 = vpop.f32.mrb[238].mxu0  ;;  %4931 = vst [vmem:[%s8642_s16 + $0xd8] sm:$0xff] %v6860_v45  ;;  %v5891_v52 = vadd.f32 %v4233_v18, %v9036_v53  ;;  %v4235_v1 = vpop.f32.mrb[175].mxu1 }
 0x443   : > { %v5671_v0 = vpop.f32.mrb[239].mxu0  ;;  %6875 = vtanh.f32 %v5890_v13  ;;  %v4578_v25 = vadd.f32 %v5669_v21, %v4417_v22  ;;  %v5892_v35 = vadd.f32 %v4235_v1, %v9040_v7  ;;  %v6862_v40 = vpop.eup %6861 }
 0x444   : > { %v5672_v46 = vadd.f32 %v5671_v0, %v5670_v15  ;;  %6877 = vtanh.f32 %v5891_v52  ;;  %4936 = vst [vmem:[%s8642_s16 + $0x100] sm:$0xff] %v6862_v40 }
 0x445   : > { %v6864_v10 = vpop.eup %6863  ;;  %6879 = vtanh.f32 %v4578_v25  ;;  %v4433_v25 = vadd.f32 %v8986_v44, %v9038_v24 }
 0x446   : > { %v4581_v55 = vadd.f32 %v5672_v46, %v4420_v59  ;;  %v6866_v30 = vpop.eup %6865  ;;  %4937 = vst [vmem:[%s8642_s16 + $0x108] sm:$0xff] %v6864_v10  ;;  %6881 = vtanh.f32 %v5892_v35  ;;  %v4239_v49 = vpop.f32.mrb[176].mxu1 }
 0x447   : > { %v6868_v57 = vpop.eup %6867  ;;  %4943 = vst [vmem:[%s8642_s16 + $0x138] sm:$0xff] %v6866_v30  ;;  %v5673_v58 = vpop.f32.mrb[240].mxu0  ;;  %v5893_v29 = vadd.f32 %v4239_v49, %v9036_v53 }
 0x448   : > { %6883 = vtanh.f32 %v4581_v55  ;;  %v6870_v8 = vpop.eup %6869  ;;  %4938 = vst [vmem:[%s8642_s16 + $0x110] sm:$0xff] %v6868_v57  ;;  %v4241_v32 = vpop.f32.mrb[177].mxu1  ;;  %v4436_v55 = vadd.f32 %v8988_v36, %v9038_v24 }
 0x449   : > { %v5674_v6 = vpop.f32.mrb[241].mxu0  ;;  %4944 = vst [vmem:[%s8642_s16 + $0x140] sm:$0xff] %v6870_v8  ;;  %v5894_v28 = vadd.f32 %v4241_v32, %v9040_v7  ;;  %v4243_v43 = vpop.f32.mrb[178].mxu1  ;;  %6885 = vtanh.f32 %v5893_v29 }
 0x44a   : > { %v6872_v16 = vpop.eup %6871  ;;  %v5675_v51 = vadd.f32 %v5674_v6, %v5673_v58  ;;  %v5676_v26 = vpop.f32.mrb[242].mxu0  ;;  %v5895_v4 = vadd.f32 %v4243_v43, %v9036_v53 }
 0x44b   : > { %4945 = vst [vmem:[%s8642_s16 + $0x148] sm:$0xff] %v6872_v16  ;;  %v4245_v2 = vpop.f32.mrb[179].mxu1  ;;  %v5677_v56 = vpop.f32.mrb[243].mxu0  ;;  %6887 = vtanh.f32 %v5894_v28 }
 0x44c   : > { %v4586_v9 = vadd.f32 %v5675_v51, %v4425_v37  ;;  %v5896_v27 = vadd.f32 %v4245_v2, %v9040_v7  ;;  %v5678_v63 = vadd.f32 %v5677_v56, %v5676_v26  ;;  %v6874_v23 = vpop.eup %6873  ;;  %6889 = vtanh.f32 %v5895_v4 }
 0x44d   : > { %v6876_v45 = vpop.eup %6875  ;;  %4950 = vst [vmem:[%s8642_s16 + $0x170] sm:$0xff] %v6874_v23  ;;  %v4441_v2 = vadd.f32 %v8990_v50, %v9038_v24  ;;  %v4444_v23 = vadd.f32 %v8992_v3, %v9038_v24 }
 0x44e   : > { %6891 = vtanh.f32 %v4586_v9  ;;  %v4589_v38 = vadd.f32 %v5678_v63, %v4428_v62  ;;  %v6878_v22 = vpop.eup %6877  ;;  %4951 = vst [vmem:[%s8642_s16 + $0x178] sm:$0xff] %v6876_v45  ;;  %v4249_v21 = vpop.f32.mrb[180].mxu1 }
 0x44f   : > { %6893 = vtanh.f32 %v5896_v27  ;;  %v6880_v13 = vpop.eup %6879  ;;  %4957 = vst [vmem:[%s8642_s16 + $0x1a8] sm:$0xff] %v6878_v22  ;;  %v5679_v18 = vpop.f32.mrb[244].mxu0  ;;  %v5897_v59 = vadd.f32 %v4249_v21, %v9036_v53 }
 0x450   : > { %6895 = vtanh.f32 %v4589_v38  ;;  %v6882_v15 = vpop.eup %6881  ;;  %4952 = vst [vmem:[%s8642_s16 + $0x180] sm:$0xff] %v6880_v13  ;;  %v4251_v52 = vpop.f32.mrb[181].mxu1 }
 0x451   : > { %v5680_v1 = vpop.f32.mrb[245].mxu0  ;;  %4958 = vst [vmem:[%s8642_s16 + $0x1b0] sm:$0xff] %v6882_v15  ;;  %v5898_v35 = vadd.f32 %v4251_v52, %v9040_v7  ;;  %v4253_v40 = vpop.f32.mrb[182].mxu1  ;;  %6897 = vtanh.f32 %v5897_v59 }
 0x452   : > { %v6884_v0 = vpop.eup %6883  ;;  %v5681_v46 = vadd.f32 %v5680_v1, %v5679_v18  ;;  %v5682_v10 = vpop.f32.mrb[246].mxu0  ;;  %v5899_v30 = vadd.f32 %v4253_v40, %v9036_v53 }
 0x453   : > { %4959 = vst [vmem:[%s8642_s16 + $0x1b8] sm:$0xff] %v6884_v0  ;;  %v4255_v57 = vpop.f32.mrb[183].mxu1  ;;  %v5683_v49 = vpop.f32.mrb[247].mxu0  ;;  %6899 = vtanh.f32 %v5898_v35 }
 0x454   : > { %v4594_v44 = vadd.f32 %v5681_v46, %v4433_v25  ;;  %v5900_v58 = vadd.f32 %v4255_v57, %v9040_v7  ;;  %v5684_v8 = vadd.f32 %v5683_v49, %v5682_v10  ;;  %v6886_v29 = vpop.eup %6885  ;;  %6901 = vtanh.f32 %v5899_v30 }
 0x455   : > { %v6888_v32 = vpop.eup %6887  ;;  %4964 = vst [vmem:[%s8642_s16 + $0x1e0] sm:$0xff] %v6886_v29 }
 0x456   : > { %6903 = vtanh.f32 %v4594_v44  ;;  %v4597_v36 = vadd.f32 %v5684_v8, %v4436_v55  ;;  %v6890_v6 = vpop.eup %6889  ;;  %4965 = vst [vmem:[%s8642_s16 + $0x1e8] sm:$0xff] %v6888_v32  ;;  %v4259_v37 = vpop.f32.mrb[184].mxu1  ;;  %v4449_v55 = vadd.f32 %v8994_v19, %v9038_v24 }
 0x457   : > { %6905 = vtanh.f32 %v5900_v58  ;;  %4971 = vst [vmem:[%s8642_s16 + $0x218] sm:$0xff] %v6890_v6  ;;  %v5685_v28 = vpop.f32.mrb[248].mxu0  ;;  %v5901_v43 = vadd.f32 %v4259_v37, %v9036_v53  ;;  %v4261_v26 = vpop.f32.mrb[185].mxu1  ;;  %v4452_v58 = vadd.f32 %v8996_v17, %v9038_v24 }
 0x458   : > { %v6892_v16 = vpop.eup %6891  ;;  %6907 = vtanh.f32 %v4597_v36  ;;  %v5686_v62 = vpop.f32.mrb[249].mxu0  ;;  %v5902_v56 = vadd.f32 %v4261_v26, %v9040_v7 }
 0x459   : > { %v6894_v51 = vpop.eup %6893  ;;  %4966 = vst [vmem:[%s8642_s16 + $0x1f0] sm:$0xff] %v6892_v16  ;;  %v5687_v9 = vadd.f32 %v5686_v62, %v5685_v28  ;;  %v4263_v27 = vpop.f32.mrb[186].mxu1  ;;  %6909 = vtanh.f32 %v5901_v43 }
 0x45a   : > { %v6896_v4 = vpop.eup %6895  ;;  %4972 = vst [vmem:[%s8642_s16 + $0x220] sm:$0xff] %v6894_v51  ;;  %v5688_v63 = vpop.f32.mrb[250].mxu0  ;;  %v5903_v45 = vadd.f32 %v4263_v27, %v9036_v53  ;;  %6911 = vtanh.f32 %v5902_v56  ;;  %v4457_v27 = vadd.f32 %v8998_v41, %v9038_v24 }
 0x45b   : > { %4973 = vst [vmem:[%s8642_s16 + $0x228] sm:$0xff] %v6896_v4  ;;  %v4265_v38 = vpop.f32.mrb[187].mxu1  ;;  %v5689_v22 = vpop.f32.mrb[251].mxu0  ;;  %v4602_v50 = vadd.f32 %v5687_v9, %v4441_v2 }
 0x45c   : > { %v5904_v13 = vadd.f32 %v4265_v38, %v9040_v7  ;;  %v5690_v21 = vadd.f32 %v5689_v22, %v5688_v63  ;;  %v6898_v18 = vpop.eup %6897  ;;  %6913 = vtanh.f32 %v5903_v45  ;;  %v4460_v22 = vadd.f32 %v9000_v31, %v9038_v24 }
 0x45d   : > { %v6900_v15 = vpop.eup %6899  ;;  %4978 = vst [vmem:[%s8642_s16 + $0x250] sm:$0xff] %v6898_v18  ;;  %6915 = vtanh.f32 %v4602_v50 }
 0x45e   : > { %v4605_v3 = vadd.f32 %v5690_v21, %v4444_v23  ;;  %v6902_v59 = vpop.eup %6901  ;;  %4979 = vst [vmem:[%s8642_s16 + $0x258] sm:$0xff] %v6900_v15  ;;  %6917 = vtanh.f32 %v5904_v13  ;;  %v4269_v1 = vpop.f32.mrb[188].mxu1 }
 0x45f   : > { %4985 = vst [vmem:[%s8642_s16 + $0x288] sm:$0xff] %v6902_v59  ;;  %v5691_v0 = vpop.f32.mrb[252].mxu0  ;;  %v5905_v35 = vadd.f32 %v4269_v1, %v9036_v53  ;;  %v4271_v46 = vpop.f32.mrb[189].mxu1 }
 0x460   : > { %v6904_v52 = vpop.eup %6903  ;;  %6919 = vtanh.f32 %v4605_v3  ;;  %v5692_v40 = vpop.f32.mrb[253].mxu0  ;;  %v5906_v30 = vadd.f32 %v4271_v46, %v9040_v7 }
 0x461   : > { %v6906_v25 = vpop.eup %6905  ;;  %4980 = vst [vmem:[%s8642_s16 + $0x260] sm:$0xff] %v6904_v52  ;;  %v5693_v57 = vadd.f32 %v5692_v40, %v5691_v0  ;;  %v4273_v49 = vpop.f32.mrb[190].mxu1  ;;  %6921 = vtanh.f32 %v5905_v35 }
 0x462   : > { %v6908_v10 = vpop.eup %6907  ;;  %4986 = vst [vmem:[%s8642_s16 + $0x290] sm:$0xff] %v6906_v25  ;;  %v5694_v44 = vpop.f32.mrb[254].mxu0  ;;  %v5907_v8 = vadd.f32 %v4273_v49, %v9036_v53  ;;  %6923 = vtanh.f32 %v5906_v30  ;;  %v4465_v30 = vadd.f32 %v9002_v60, %v9038_v24 }
 0x463   : > { %4987 = vst [vmem:[%s8642_s16 + $0x298] sm:$0xff] %v6908_v10  ;;  %v4275_v29 = vpop.f32.mrb[191].mxu1  ;;  %v5695_v32 = vpop.f32.mrb[255].mxu0  ;;  %v4610_v19 = vadd.f32 %v5693_v57, %v4449_v55 }
 0x464   : > { %v5908_v36 = vadd.f32 %v4275_v29, %v9040_v7  ;;  %v5696_v6 = vadd.f32 %v5695_v32, %v5694_v44  ;;  %v6910_v16 = vpop.eup %6909  ;;  %6925 = vtanh.f32 %v5907_v8  ;;  %v4468_v8 = vadd.f32 %v9004_v47, %v9038_v24 }
 0x465   : > { %v6912_v37 = vpop.eup %6911  ;;  %4992 = vst [vmem:[%s8642_s16 + $0x2c0] sm:$0xff] %v6910_v16  ;;  %6927 = vtanh.f32 %v4610_v19 }
 0x466   : > { %v4613_v17 = vadd.f32 %v5696_v6, %v4452_v58  ;;  %v6914_v28 = vpop.eup %6913  ;;  %4993 = vst [vmem:[%s8642_s16 + $0x2c8] sm:$0xff] %v6912_v37  ;;  %6929 = vtanh.f32 %v5908_v36  ;;  %v4279_v43 = vpop.f32.mrb[192].mxu1 }
 0x467   : > { %v6916_v51 = vpop.eup %6915  ;;  %4999 = vst [vmem:[%s8642_s16 + $0x2f8] sm:$0xff] %v6914_v28  ;;  %v5697_v26 = vpop.f32.mrb[0].mxu0  ;;  %v5909_v4 = vadd.f32 %v4279_v43, %v9036_v53 }
 0x468   : > { %6931 = vtanh.f32 %v4613_v17  ;;  %v6918_v62 = vpop.eup %6917  ;;  %4994 = vst [vmem:[%s8642_s16 + $0x2d0] sm:$0xff] %v6916_v51  ;;  %v4281_v2 = vpop.f32.mrb[193].mxu1 }
 0x469   : > { %v5698_v56 = vpop.f32.mrb[1].mxu0  ;;  %5000 = vst [vmem:[%s8642_s16 + $0x300] sm:$0xff] %v6918_v62  ;;  %v5910_v63 = vadd.f32 %v4281_v2, %v9040_v7  ;;  %v4283_v45 = vpop.f32.mrb[194].mxu1  ;;  %6933 = vtanh.f32 %v5909_v4 }
 0x46a   : > { %v6920_v9 = vpop.eup %6919  ;;  %v5699_v23 = vadd.f32 %v5698_v56, %v5697_v26  ;;  %v5700_v38 = vpop.f32.mrb[2].mxu0  ;;  %v5911_v50 = vadd.f32 %v4283_v45, %v9036_v53 }
 0x46b   : > { %5001 = vst [vmem:[%s8642_s16 + $0x308] sm:$0xff] %v6920_v9  ;;  %v4285_v13 = vpop.f32.mrb[195].mxu1  ;;  %v5701_v21 = vpop.f32.mrb[3].mxu0  ;;  %6935 = vtanh.f32 %v5910_v63  ;;  %v4473_v9 = vadd.f32 %v9006_v61, %v9038_v24 }
 0x46c   : > { %v4618_v41 = vadd.f32 %v5699_v23, %v4457_v27  ;;  %v5912_v18 = vadd.f32 %v4285_v13, %v9040_v7  ;;  %v5702_v15 = vadd.f32 %v5701_v21, %v5700_v38  ;;  %v6922_v3 = vpop.eup %6921  ;;  %6937 = vtanh.f32 %v5911_v50 }
 0x46d   : > { %v6924_v59 = vpop.eup %6923  ;;  %5006 = vst [vmem:[%s8642_s16 + $0x330] sm:$0xff] %v6922_v3  ;;  %v4476_v38 = vadd.f32 %v9008_v48, %v9038_v24 }
 0x46e   : > { %6939 = vtanh.f32 %v4618_v41  ;;  %v4621_v31 = vadd.f32 %v5702_v15, %v4460_v22  ;;  %v6926_v52 = vpop.eup %6925  ;;  %5007 = vst [vmem:[%s8642_s16 + $0x338] sm:$0xff] %v6924_v59  ;;  %v4289_v0 = vpop.f32.mrb[196].mxu1 }
 0x46f   : > { %6941 = vtanh.f32 %v5912_v18  ;;  %v6928_v1 = vpop.eup %6927  ;;  %5013 = vst [vmem:[%s8642_s16 + $0x368] sm:$0xff] %v6926_v52  ;;  %v5703_v25 = vpop.f32.mrb[4].mxu0  ;;  %v5913_v46 = vadd.f32 %v4289_v0, %v9036_v53 }
 0x470   : > { %6943 = vtanh.f32 %v4621_v31  ;;  %v6930_v35 = vpop.eup %6929  ;;  %5008 = vst [vmem:[%s8642_s16 + $0x340] sm:$0xff] %v6928_v1  ;;  %v4291_v40 = vpop.f32.mrb[197].mxu1 }
 0x471   : > { %v5704_v10 = vpop.f32.mrb[5].mxu0  ;;  %5014 = vst [vmem:[%s8642_s16 + $0x370] sm:$0xff] %v6930_v35  ;;  %v5914_v57 = vadd.f32 %v4291_v40, %v9040_v7  ;;  %v4293_v44 = vpop.f32.mrb[198].mxu1  ;;  %6945 = vtanh.f32 %v5913_v46  ;;  %v4481_v40 = vadd.f32 %v9010_v33, %v9038_v24 }
 0x472   : > { %v6932_v55 = vpop.eup %6931  ;;  %v5705_v49 = vadd.f32 %v5704_v10, %v5703_v25  ;;  %v5706_v58 = vpop.f32.mrb[6].mxu0  ;;  %v5915_v29 = vadd.f32 %v4293_v44, %v9036_v53 }
 0x473   : > { %5015 = vst [vmem:[%s8642_s16 + $0x378] sm:$0xff] %v6932_v55  ;;  %v4295_v32 = vpop.f32.mrb[199].mxu1  ;;  %v5707_v19 = vpop.f32.mrb[7].mxu0  ;;  %6947 = vtanh.f32 %v5914_v57 }
 0x474   : > { %v4626_v60 = vadd.f32 %v5705_v49, %v4465_v30  ;;  %v5916_v36 = vadd.f32 %v4295_v32, %v9040_v7  ;;  %v5708_v6 = vadd.f32 %v5707_v19, %v5706_v58  ;;  %v6934_v16 = vpop.eup %6933  ;;  %6949 = vtanh.f32 %v5915_v29 }
 0x475   : > { %v6936_v37 = vpop.eup %6935  ;;  %5020 = vst [vmem:[%s8642_s16 + $0x3a0] sm:$0xff] %v6934_v16  ;;  %v4484_v49 = vadd.f32 %v9012_v11, %v9038_v24 }
 0x476   : > { %6951 = vtanh.f32 %v4626_v60  ;;  %v4629_v47 = vadd.f32 %v5708_v6, %v4468_v8  ;;  %v6938_v17 = vpop.eup %6937  ;;  %5021 = vst [vmem:[%s8642_s16 + $0x3a8] sm:$0xff] %v6936_v37  ;;  %v4299_v51 = vpop.f32.mrb[200].mxu1 }
 0x477   : > { %6953 = vtanh.f32 %v5916_v36  ;;  %5027 = vst [vmem:[%s8642_s16 + $0x3d8] sm:$0xff] %v6938_v17  ;;  %v5709_v43 = vpop.f32.mrb[8].mxu0  ;;  %v5917_v62 = vadd.f32 %v4299_v51, %v9036_v53  ;;  %v4301_v4 = vpop.f32.mrb[201].mxu1 }
 0x478   : > { %v6940_v28 = vpop.eup %6939  ;;  %6955 = vtanh.f32 %v4629_v47  ;;  %v5710_v2 = vpop.f32.mrb[9].mxu0  ;;  %v5918_v27 = vadd.f32 %v4301_v4, %v9040_v7 }
 0x479   : > { %v6942_v26 = vpop.eup %6941  ;;  %5022 = vst [vmem:[%s8642_s16 + $0x3b0] sm:$0xff] %v6940_v28  ;;  %v5711_v63 = vadd.f32 %v5710_v2, %v5709_v43  ;;  %v4303_v23 = vpop.f32.mrb[202].mxu1  ;;  %6957 = vtanh.f32 %v5917_v62 }
 0x47a   : > { %v6944_v56 = vpop.eup %6943  ;;  %5028 = vst [vmem:[%s8642_s16 + $0x3e0] sm:$0xff] %v6942_v26  ;;  %v5712_v45 = vpop.f32.mrb[10].mxu0  ;;  %v5919_v22 = vadd.f32 %v4303_v23, %v9036_v53  ;;  %6959 = vtanh.f32 %v5918_v27  ;;  %v4489_v26 = vadd.f32 %v9014_v34, %v9038_v24 }
 0x47b   : > { %5029 = vst [vmem:[%s8642_s16 + $0x3e8] sm:$0xff] %v6944_v56  ;;  %v4305_v50 = vpop.f32.mrb[203].mxu1  ;;  %v5713_v13 = vpop.f32.mrb[11].mxu0  ;;  %v4634_v61 = vadd.f32 %v5711_v63, %v4473_v9  ;;  %v4492_v9 = vadd.f32 %v9016_v5, %v9038_v24 }
 0x47c   : > { %v5920_v21 = vadd.f32 %v4305_v50, %v9040_v7  ;;  %v5714_v41 = vadd.f32 %v5713_v13, %v5712_v45  ;;  %v6946_v18 = vpop.eup %6945  ;;  %6961 = vtanh.f32 %v5919_v22 }
 0x47d   : > { %v6948_v15 = vpop.eup %6947  ;;  %5034 = vst [vmem:[%s8642_s16 + $0x410] sm:$0xff] %v6946_v18  ;;  %6963 = vtanh.f32 %v4634_v61 }
 0x47e   : > { %v4637_v48 = vadd.f32 %v5714_v41, %v4476_v38  ;;  %v6950_v3 = vpop.eup %6949  ;;  %5035 = vst [vmem:[%s8642_s16 + $0x418] sm:$0xff] %v6948_v15  ;;  %6965 = vtanh.f32 %v5920_v21  ;;  %v4309_v31 = vpop.f32.mrb[204].mxu1 }
 0x47f   : > { %5041 = vst [vmem:[%s8642_s16 + $0x448] sm:$0xff] %v6950_v3  ;;  %v5715_v52 = vpop.f32.mrb[12].mxu0  ;;  %v5921_v0 = vadd.f32 %v4309_v31, %v9036_v53  ;;  %v4311_v25 = vpop.f32.mrb[205].mxu1  ;;  %v4497_v31 = vadd.f32 %v9018_v39, %v9038_v24 }
 0x480   : > { %v6952_v59 = vpop.eup %6951  ;;  %6967 = vtanh.f32 %v4637_v48  ;;  %v5716_v35 = vpop.f32.mrb[13].mxu0  ;;  %v5922_v10 = vadd.f32 %v4311_v25, %v9040_v7 }
 0x481   : > { %v6954_v1 = vpop.eup %6953  ;;  %5036 = vst [vmem:[%s8642_s16 + $0x420] sm:$0xff] %v6952_v59  ;;  %v5717_v55 = vadd.f32 %v5716_v35, %v5715_v52  ;;  %v4313_v30 = vpop.f32.mrb[206].mxu1  ;;  %6969 = vtanh.f32 %v5921_v0  ;;  %v4500_v35 = vadd.f32 %v9020_v20, %v9038_v24 }
 0x482   : > { %v6956_v46 = vpop.eup %6955  ;;  %5042 = vst [vmem:[%s8642_s16 + $0x450] sm:$0xff] %v6954_v1  ;;  %v5718_v57 = vpop.f32.mrb[14].mxu0  ;;  %v5923_v44 = vadd.f32 %v4313_v30, %v9036_v53  ;;  %6971 = vtanh.f32 %v5922_v10 }
 0x483   : > { %5043 = vst [vmem:[%s8642_s16 + $0x458] sm:$0xff] %v6956_v46  ;;  %v4315_v58 = vpop.f32.mrb[207].mxu1  ;;  %v5719_v8 = vpop.f32.mrb[15].mxu0  ;;  %v4642_v33 = vadd.f32 %v5717_v55, %v4481_v40 }
 0x484   : > { %v5924_v29 = vadd.f32 %v4315_v58, %v9040_v7  ;;  %v5720_v32 = vadd.f32 %v5719_v8, %v5718_v57  ;;  %v6958_v19 = vpop.eup %6957  ;;  %6973 = vtanh.f32 %v5923_v44 }
 0x485   : > { %v6960_v60 = vpop.eup %6959  ;;  %5048 = vst [vmem:[%s8642_s16 + $0x480] sm:$0xff] %v6958_v19  ;;  %6975 = vtanh.f32 %v4642_v33 }
 0x486   : > { %v4645_v11 = vadd.f32 %v5720_v32, %v4484_v49  ;;  %v6962_v36 = vpop.eup %6961  ;;  %5049 = vst [vmem:[%s8642_s16 + $0x488] sm:$0xff] %v6960_v60  ;;  %6977 = vtanh.f32 %v5924_v29  ;;  %v4319_v16 = vpop.f32.mrb[208].mxu1 }
 0x487   : > { %v6964_v6 = vpop.eup %6963  ;;  %5055 = vst [vmem:[%s8642_s16 + $0x4b8] sm:$0xff] %v6962_v36  ;;  %v5721_v37 = vpop.f32.mrb[16].mxu0  ;;  %v5925_v17 = vadd.f32 %v4319_v16, %v9036_v53  ;;  %v4505_v36 = vadd.f32 %v9022_v54, %v9038_v24 }
 0x488   : > { %6979 = vtanh.f32 %v4645_v11  ;;  %v6966_v47 = vpop.eup %6965  ;;  %5050 = vst [vmem:[%s8642_s16 + $0x490] sm:$0xff] %v6964_v6  ;;  %v4321_v28 = vpop.f32.mrb[209].mxu1 }
 0x489   : > { %v5722_v51 = vpop.f32.mrb[17].mxu0  ;;  %5056 = vst [vmem:[%s8642_s16 + $0x4c0] sm:$0xff] %v6966_v47  ;;  %v5926_v62 = vadd.f32 %v4321_v28, %v9040_v7  ;;  %v4323_v2 = vpop.f32.mrb[210].mxu1  ;;  %6981 = vtanh.f32 %v5925_v17  ;;  %v4508_v17 = vadd.f32 %v9024_v12, %v9038_v24 }
 0x48a   : > { %v6968_v43 = vpop.eup %6967  ;;  %v5723_v4 = vadd.f32 %v5722_v51, %v5721_v37  ;;  %v5724_v56 = vpop.f32.mrb[18].mxu0  ;;  %v5927_v27 = vadd.f32 %v4323_v2, %v9036_v53 }
 0x48b   : > { %5057 = vst [vmem:[%s8642_s16 + $0x4c8] sm:$0xff] %v6968_v43  ;;  %v4325_v63 = vpop.f32.mrb[211].mxu1  ;;  %v5725_v23 = vpop.f32.mrb[19].mxu0  ;;  %6983 = vtanh.f32 %v5926_v62 }
 0x48c   : > { %v4650_v34 = vadd.f32 %v5723_v4, %v4489_v26  ;;  %v5928_v45 = vadd.f32 %v4325_v63, %v9040_v7  ;;  %v5726_v38 = vadd.f32 %v5725_v23, %v5724_v56  ;;  %v6970_v22 = vpop.eup %6969  ;;  %6985 = vtanh.f32 %v5927_v27 }
 0x48d   : > { %v6972_v50 = vpop.eup %6971  ;;  %5062 = vst [vmem:[%s8642_s16 + $0x4f0] sm:$0xff] %v6970_v22 }
 0x48e   : > { %6987 = vtanh.f32 %v4650_v34  ;;  %v4653_v5 = vadd.f32 %v5726_v38, %v4492_v9  ;;  %v6974_v13 = vpop.eup %6973  ;;  %5063 = vst [vmem:[%s8642_s16 + $0x4f8] sm:$0xff] %v6972_v50  ;;  %v4329_v21 = vpop.f32.mrb[212].mxu1  ;;  %v4513_v50 = vadd.f32 %v9028_v42, %v9038_v24 }
 0x48f   : > { %6989 = vtanh.f32 %v5928_v45  ;;  %v6976_v61 = vpop.eup %6975  ;;  %5069 = vst [vmem:[%s8642_s16 + $0x528] sm:$0xff] %v6974_v13  ;;  %v5727_v41 = vpop.f32.mrb[20].mxu0  ;;  %v5929_v15 = vadd.f32 %v4329_v21, %v9036_v53 }
 0x490   : > { %6991 = vtanh.f32 %v4653_v5  ;;  %v6978_v18 = vpop.eup %6977  ;;  %5064 = vst [vmem:[%s8642_s16 + $0x500] sm:$0xff] %v6976_v61  ;;  %v4331_v48 = vpop.f32.mrb[213].mxu1 }
 0x491   : > { %v5728_v3 = vpop.f32.mrb[21].mxu0  ;;  %5070 = vst [vmem:[%s8642_s16 + $0x530] sm:$0xff] %v6978_v18  ;;  %v5930_v52 = vadd.f32 %v4331_v48, %v9040_v7  ;;  %v4333_v0 = vpop.f32.mrb[214].mxu1  ;;  %6993 = vtanh.f32 %v5929_v15 }
 0x492   : > { %v6980_v59 = vpop.eup %6979  ;;  %v5729_v1 = vadd.f32 %v5728_v3, %v5727_v41  ;;  %v5730_v25 = vpop.f32.mrb[22].mxu0  ;;  %v5931_v46 = vadd.f32 %v4333_v0, %v9036_v53  ;;  %v4516_v41 = vadd.f32 %v9031_v14, %v9038_v24 }
 0x493   : > { %5071 = vst [vmem:[%s8642_s16 + $0x538] sm:$0xff] %v6980_v59  ;;  %v4335_v40 = vpop.f32.mrb[215].mxu1  ;;  %v5731_v10 = vpop.f32.mrb[23].mxu0  ;;  %6995 = vtanh.f32 %v5930_v52 }
 0x494   : > { %v4658_v39 = vadd.f32 %v5729_v1, %v4497_v31  ;;  %v5932_v55 = vadd.f32 %v4335_v40, %v9040_v7  ;;  %v5732_v30 = vadd.f32 %v5731_v10, %v5730_v25  ;;  %v6982_v57 = vpop.eup %6981  ;;  %6997 = vtanh.f32 %v5931_v46 }
 0x495   : > { %v6984_v49 = vpop.eup %6983  ;;  %5076 = vst [vmem:[%s8642_s16 + $0x560] sm:$0xff] %v6982_v57 }
 0x496   : > { %6999 = vtanh.f32 %v4658_v39  ;;  %v4661_v20 = vadd.f32 %v5732_v30, %v4500_v35  ;;  %v6986_v44 = vpop.eup %6985  ;;  %5077 = vst [vmem:[%s8642_s16 + $0x568] sm:$0xff] %v6984_v49  ;;  %v4339_v8 = vpop.f32.mrb[216].mxu1 }
 0x497   : > { %7001 = vtanh.f32 %v5932_v55  ;;  %5083 = vst [vmem:[%s8642_s16 + $0x598] sm:$0xff] %v6986_v44  ;;  %v5733_v33 = vpop.f32.mrb[24].mxu0  ;;  %v5933_v32 = vadd.f32 %v4339_v8, %v9036_v53  ;;  %v4341_v19 = vpop.f32.mrb[217].mxu1 }
 0x498   : > { %v6988_v58 = vpop.eup %6987  ;;  %7003 = vtanh.f32 %v4661_v20  ;;  %v5734_v60 = vpop.f32.mrb[25].mxu0  ;;  %v5934_v6 = vadd.f32 %v4341_v19, %v9040_v7 }
 0x499   : > { %v6990_v29 = vpop.eup %6989  ;;  %5078 = vst [vmem:[%s8642_s16 + $0x570] sm:$0xff] %v6988_v58  ;;  %v5735_v16 = vadd.f32 %v5734_v60, %v5733_v33  ;;  %v4343_v37 = vpop.f32.mrb[218].mxu1  ;;  %7005 = vtanh.f32 %v5933_v32 }
 0x49a   : > { %v6992_v11 = vpop.eup %6991  ;;  %5084 = vst [vmem:[%s8642_s16 + $0x5a0] sm:$0xff] %v6990_v29  ;;  %v5736_v47 = vpop.f32.mrb[26].mxu0  ;;  %v5935_v28 = vadd.f32 %v4343_v37, %v9036_v53  ;;  %7007 = vtanh.f32 %v5934_v6 }
 0x49b   : > { %5085 = vst [vmem:[%s8642_s16 + $0x5a8] sm:$0xff] %v6992_v11  ;;  %v4345_v51 = vpop.f32.mrb[219].mxu1  ;;  %v5737_v43 = vpop.f32.mrb[27].mxu0  ;;  %v4666_v54 = vadd.f32 %v5735_v16, %v4505_v36 }
 0x49c   : > { %v5936_v26 = vadd.f32 %v4345_v51, %v9040_v7  ;;  %v5738_v62 = vadd.f32 %v5737_v43, %v5736_v47  ;;  %v6994_v4 = vpop.eup %6993  ;;  %7009 = vtanh.f32 %v5935_v28 }
 0x49d   : > { %v6996_v2 = vpop.eup %6995  ;;  %5090 = vst [vmem:[%s8642_s16 + $0x5d0] sm:$0xff] %v6994_v4  ;;  %7011 = vtanh.f32 %v4666_v54 }
 0x49e   : > { %v4669_v12 = vadd.f32 %v5738_v62, %v4508_v17  ;;  %v6998_v56 = vpop.eup %6997  ;;  %5091 = vst [vmem:[%s8642_s16 + $0x5d8] sm:$0xff] %v6996_v2  ;;  %7013 = vtanh.f32 %v5936_v26  ;;  %v4349_v27 = vpop.f32.mrb[220].mxu1 }
 0x49f   : > { %5097 = vst [vmem:[%s8642_s16 + $0x608] sm:$0xff] %v6998_v56  ;;  %v5739_v63 = vpop.f32.mrb[28].mxu0  ;;  %v5937_v34 = vadd.f32 %v4349_v27, %v9036_v53  ;;  %v4351_v45 = vpop.f32.mrb[221].mxu1 }
 0x4a0   : > { %v7000_v9 = vpop.eup %6999  ;;  %7015 = vtanh.f32 %v4669_v12  ;;  %v5740_v38 = vpop.f32.mrb[29].mxu0  ;;  %v5938_v5 = vadd.f32 %v4351_v45, %v9040_v7 }
 0x4a1   : > { %v7002_v23 = vpop.eup %7001  ;;  %5092 = vst [vmem:[%s8642_s16 + $0x5e0] sm:$0xff] %v7000_v9  ;;  %v5741_v13 = vadd.f32 %v5740_v38, %v5739_v63  ;;  %v4353_v61 = vpop.f32.mrb[222].mxu1  ;;  %7017 = vtanh.f32 %v5937_v34 }
 0x4a2   : > { %v7004_v22 = vpop.eup %7003  ;;  %5098 = vst [vmem:[%s8642_s16 + $0x610] sm:$0xff] %v7002_v23  ;;  %v5742_v21 = vpop.f32.mrb[30].mxu0  ;;  %v5939_v18 = vadd.f32 %v4353_v61, %v9036_v53  ;;  %7019 = vtanh.f32 %v5938_v5 }
 0x4a3   : > { %5099 = vst [vmem:[%s8642_s16 + $0x618] sm:$0xff] %v7004_v22  ;;  %v4355_v15 = vpop.f32.mrb[223].mxu1  ;;  %v5743_v48 = vpop.f32.mrb[31].mxu0  ;;  %v4674_v42 = vadd.f32 %v5741_v13, %v4513_v50 }
 0x4a4   : > { %v5940_v3 = vadd.f32 %v4355_v15, %v9040_v7  ;;  %v5744_v59 = vadd.f32 %v5743_v48, %v5742_v21  ;;  %v7006_v31 = vpop.eup %7005  ;;  %7021 = vtanh.f32 %v5939_v18 }
 0x4a5   : > { %v7008_v52 = vpop.eup %7007  ;;  %5104 = vst [vmem:[%s8642_s16 + $0x640] sm:$0xff] %v7006_v31  ;;  %7023 = vtanh.f32 %v4674_v42 }
 0x4a6   : > { %v4677_v14 = vadd.f32 %v5744_v59, %v4516_v41  ;;  %v7010_v53 = vpop.eup %7009  ;;  %5105 = vst [vmem:[%s8642_s16 + $0x648] sm:$0xff] %v7008_v52  ;;  %7025 = vtanh.f32 %v5940_v3 }
 0x4a7   : > { %v7012_v24 = vpop.eup %7011  ;;  %5111 = vst [vmem:[%s8642_s16 + $0x678] sm:$0xff] %v7010_v53 }
 0x4a8   : > { %7027 = vtanh.f32 %v4677_v14  ;;  %v7014_v7 = vpop.eup %7013  ;;  %5106 = vst [vmem:[%s8642_s16 + $0x650] sm:$0xff] %v7012_v24 }
 0x4a9   : > { %5112 = vst [vmem:[%s8642_s16 + $0x680] sm:$0xff] %v7014_v7 }
 0x4aa   : > { %v7016_v1 = vpop.eup %7015 }
 0x4ab   : > { %5113 = vst [vmem:[%s8642_s16 + $0x688] sm:$0xff] %v7016_v1  ;;  %v7018_v0 = vpop.eup %7017 }
 0x4ac   : > { %v7020_v25 = vpop.eup %7019  ;;  %5118 = vst [vmem:[%s8642_s16 + $0x6b0] sm:$0xff] %v7018_v0 }
 0x4ad   : > { %5119 = vst [vmem:[%s8642_s16 + $0x6b8] sm:$0xff] %v7020_v25 }
 0x4ae   : > { %v7022_v35 = vpop.eup %7021 }
 0x4af   : > { %v7024_v46 = vpop.eup %7023  ;;  %5125 = vst [vmem:[%s8642_s16 + $0x6e8] sm:$0xff] %v7022_v35 }
 0x4b0   : > { %v7026_v40 = vpop.eup %7025  ;;  %5120 = vst [vmem:[%s8642_s16 + $0x6c0] sm:$0xff] %v7024_v46 }
 0x4b1   : > { %5126 = vst [vmem:[%s8642_s16 + $0x6f0] sm:$0xff] %v7026_v40 }
 0x4b2   : > { %v7028_v10 = vpop.eup %7027 }
 0x4b3   : > { %5127 = vst [vmem:[%s8642_s16 + $0x6f8] sm:$0xff] %v7028_v10 }
 0x4b4 PF: > { %s17_s24 = sadd.s32 1, %s7036_s24  }
 0x4b5   : > { %p14_p4 = scmp.ge.s32.totalorder %s17_s24, 4  }
 0x4b7   :  { %16 = sbr.rel (!%p14_p4) target bundleno = 1 (0x1), region = 78 }

</bundles_post_ra>
